<compile_context>
chip_gen: v7x
topology: tpu7x:2x2x1
jax: 0.10.0
libtpu: 0.0.40
codegen_flags: <defaults>
</compile_context>

<pallas_src>
import math

import jax
import jax.numpy as jnp
from jax.experimental import pallas as pl
from jax.experimental.pallas import tpu as pltpu

_GATE = 128  # per-gate lane padding (vreg boundary)


# ------------------------------ GRU weight packing ------------------------------

def _pad_gates(w, R, G):
    """(rows, 3R) with gates [r|z|n] -> (rows, 3G), each gate zero-padded to G lanes."""
    parts = []
    for g in range(3):
        blk = w[:, g * R:(g + 1) * R]
        parts.append(jnp.pad(blk, ((0, 0), (0, G - R))))
    return jnp.concatenate(parts, axis=-1)


def _pack_layer(layer, R, G):
    """PyTorch per-direction params -> gate-padded, direction-stacked arrays."""
    wf_ih, wf_hh, bf_ih, bf_hh = layer["fwd"]
    wb_ih, wb_hh, bb_ih, bb_hh = layer["bwd"]
    wih = jnp.concatenate([_pad_gates(wf_ih.T, R, G),
                           _pad_gates(wb_ih.T, R, G)], axis=-1)            # (In, 6G)
    bih = jnp.concatenate([_pad_gates(bf_ih.reshape(1, -1), R, G),
                           _pad_gates(bb_ih.reshape(1, -1), R, G)], axis=-1)  # (1, 6G)
    whh = jnp.stack([_pad_gates(wf_hh.T, R, G),
                     _pad_gates(wb_hh.T, R, G)])                            # (2, R, 3G)
    bhh = jnp.stack([_pad_gates(bf_hh.reshape(1, -1), R, G),
                     _pad_gates(bb_hh.reshape(1, -1), R, G)])               # (2, 1, 3G)
    return wih, bih, whh, bhh


# ------------------------------ fused bi-GRU kernel ------------------------------

def _make_fused_bigru_kernel(T, Nb, L, R, G):
    """One program: all L layers, both directions, inter-layer data in VMEM."""
    G3 = 3 * G

    def kernel(*refs):
        x_ref = refs[0]
        wrefs = refs[1:1 + 4 * L]
        out_ref = refs[1 + 4 * L]
        xi_ref = refs[2 + 4 * L]                         # (T*Nb, 6G) hoisted projection
        ybuf_ref = refs[3 + 4 * L] if L > 1 else None    # (T, Nb, 2R) inter-layer buffer

        def cell(gi, gh, h):
            # fused r/z sigmoid on the contiguous, vreg-aligned [:, :2G] slab
            rz = jax.nn.sigmoid(gi[:, :2 * G] + gh[:, :2 * G])
            n = jnp.tanh(gi[:, 2 * G:] + rz[:, :G] * gh[:, 2 * G:])
            z = rz[:, G:G + R]
            return (1.0 - z) * n[:, :R] + z * h

        for l in range(L):
            wih_ref, bih_ref, whh_ref, bhh_ref = wrefs[4 * l:4 * l + 4]
            src = x_ref if l == 0 else ybuf_ref
            dst = out_ref if l == L - 1 else ybuf_ref
            in_dim = src.shape[-1]

            # Hoisted input projection for BOTH directions: one well-shaped matmul.
            x_all = src[...].reshape(T * Nb, in_dim)
            xi_ref[...] = (jnp.dot(x_all, wih_ref[...],
                                   preferred_element_type=jnp.float32) + bih_ref[...])

            whh_f, whh_b = whh_ref[0], whh_ref[1]        # (R, 3G)
            bhh_f, bhh_b = bhh_ref[0], bhh_ref[1]        # (1, 3G)

            h_f = jnp.zeros((Nb, R), jnp.float32)
            h_b = jnp.zeros((Nb, R), jnp.float32)

            # Statically unrolled time loop; fwd walks t=0..T-1, bwd walks T-1..0.
            # The two recurrences are independent chains -> latency hiding.
            for i in range(T):
                tf = i
                tb = T - 1 - i
                gi_f = xi_ref[tf * Nb:(tf + 1) * Nb, :G3]
                gi_b = xi_ref[tb * Nb:(tb + 1) * Nb, G3:]
                gh_f = jnp.dot(h_f, whh_f, preferred_element_type=jnp.float32) + bhh_f
                gh_b = jnp.dot(h_b, whh_b, preferred_element_type=jnp.float32) + bhh_b
                h_f = cell(gi_f, gh_f, h_f)
                h_b = cell(gi_b, gh_b, h_b)
                dst[tf, :, 0:R] = h_f                    # fwd output lanes [0:R)
                dst[tb, :, R:] = h_b                     # bwd output lanes [R:2R)

    return kernel


def fused_bigru_time_major(x_tm, layers, rnn_size):
    """x_tm: (T, Nb, E) time-major -> (T, Nb, 2R), single pallas_call for all layers."""
    T, Nb, E = x_tm.shape
    R = rnn_size
    G = _GATE
    L = len(layers)

    packed = []
    in_specs = [pl.BlockSpec((T, Nb, E), lambda i: (0, 0, 0))]
    for l, layer in enumerate(layers):
        in_dim = E if l == 0 else 2 * R
        packed.extend(_pack_layer(layer, R, G))
        in_specs += [
            pl.BlockSpec((in_dim, 6 * G), lambda i: (0, 0)),      # W_ih (both dirs)
            pl.BlockSpec((1, 6 * G), lambda i: (0, 0)),           # b_ih (both dirs)
            pl.BlockSpec((2, R, 3 * G), lambda i: (0, 0, 0)),     # W_hh per dir
            pl.BlockSpec((2, 1, 3 * G), lambda i: (0, 0, 0)),     # b_hh per dir
        ]

    scratch = [pltpu.VMEM((T * Nb, 6 * G), jnp.float32)]          # hoisted projection
    if L > 1:
        scratch.append(pltpu.VMEM((T, Nb, 2 * R), jnp.float32))   # inter-layer activation

    # TODO(synk): for large T/E (esp. on v7x's 64 MiB VMEM), chunk the hoisted
    # projection over T and/or set vmem_limit_bytes explicitly.
    kernel = _make_fused_bigru_kernel(T, Nb, L, R, G)
    return pl.pallas_call(
        kernel,
        out_shape=jax.ShapeDtypeStruct((T, Nb, 2 * R), jnp.float32),
        grid_spec=pltpu.PrefetchScalarGridSpec(
            num_scalar_prefetch=0,
            grid=(1,),
            in_specs=in_specs,
            out_specs=pl.BlockSpec((T, Nb, 2 * R), lambda i: (0, 0, 0)),
            scratch_shapes=scratch,
        ),
        compiler_params=pltpu.CompilerParams(dimension_semantics=("arbitrary",)),
    )(x_tm, *packed)


# --------------------------- attention Pallas kernel --------------------------

def _make_word_attn_kernel(N, D):
    scale = 1.0 / math.sqrt(D)

    def kernel(q_ref, kv_ref, kw_ref, sent_ref, vsum_ref, asum_ref):
        q = q_ref[0]                     # (S, D)
        kw = kw_ref[0]                   # (S, E)
        for n in range(N):               # static unroll over sentences
            kvn = kv_ref[0, n]           # (S, D)  key == value
            stn = sent_ref[0, n]         # (S, E)
            # scores and padding mask both as plain 2-D MXU matmuls (no broadcast_to,
            # no (S,S) f32 mask shipped through HBM)
            sc = jnp.dot(q, kvn.T, preferred_element_type=jnp.float32) * scale  # (Sq, St)
            mg = jnp.dot(kw, stn.T, preferred_element_type=jnp.float32)         # (Sq, St)
            sc = jnp.where(mg != 0.0, sc, -1e9)
            m = jnp.max(sc, axis=-1, keepdims=True)
            e = jnp.exp(sc - m)
            denom = jnp.sum(e, axis=-1, keepdims=True)
            p = e * pl.reciprocal(denom, approx=True)
            a = jnp.sum(p, axis=0, keepdims=True)                                # (1, St)
            asum_ref[0, n:n + 1, :] = a
            # sum-over-queries commutes with the value matmul: vsum = (sum_q p) . kv
            vsum_ref[0, n:n + 1, :] = jnp.dot(a, kvn, preferred_element_type=jnp.float32)

    return kernel


# --------------------------------- forward pass --------------------------------

def word_attention_forward(sentences, keywords, layers, rnn_size):
    """sentences: (B, N, S, E), keywords: (B, S, E) -> (B, N, 2R), (B, N, S)."""
    B, N, S, E = sentences.shape
    R = rnn_size
    R2 = 2 * R

    # One fused GRU pass: sentence rows and keyword rows share the batch axis.
    x_in = jnp.concatenate([sentences.reshape(B * N, S, E), keywords], axis=0)  # (Nb, S, E)
    x_tm = jnp.transpose(x_in, (1, 0, 2))                  # single entry transpose
    h_tm = fused_bigru_time_major(x_tm, layers, R)         # (S, Nb, 2R), one pallas_call
    h = jnp.transpose(h_tm, (1, 0, 2))                     # single exit transpose
    x4 = h[:B * N].reshape(B, N, S, R2)                    # sentence GRU outputs
    q = h[B * N:]                                          # (B, S, 2R) keyword GRU outputs

    values_sum, attn_sum = pl.pallas_call(
        _make_word_attn_kernel(N, R2),
        out_shape=(
            jax.ShapeDtypeStruct((B, N, R2), jnp.float32),
            jax.ShapeDtypeStruct((B, N, S), jnp.float32),
        ),
        grid_spec=pltpu.PrefetchScalarGridSpec(
            num_scalar_prefetch=0,
            grid=(B,),
            in_specs=[
                pl.BlockSpec((1, S, R2), lambda b: (b, 0, 0)),        # q
                pl.BlockSpec((1, N, S, R2), lambda b: (b, 0, 0, 0)),  # x (key = value)
                pl.BlockSpec((1, S, E), lambda b: (b, 0, 0)),         # keywords (for mask)
                pl.BlockSpec((1, N, S, E), lambda b: (b, 0, 0, 0)),   # sentences (for mask)
            ],
            out_specs=[
                pl.BlockSpec((1, N, R2), lambda b: (b, 0, 0)),
                pl.BlockSpec((1, N, S), lambda b: (b, 0, 0)),
            ],
        ),
        compiler_params=pltpu.CompilerParams(dimension_semantics=("parallel",)),
    )(q, x4, keywords, sentences)

    return values_sum, attn_sum


word_attention_forward = jax.jit(word_attention_forward, static_argnums=(3,))


# --------------------------- parameters & reference ---------------------------

def init_gru_params(key, embedding_dim, rnn_size, rnn_layers):
    layers = []
    bound = 1.0 / math.sqrt(rnn_size)
    for l in range(rnn_layers):
        in_dim = embedding_dim if l == 0 else 2 * rnn_size
        layer = {}
        for d in ("fwd", "bwd"):
            key, k1, k2, k3, k4 = jax.random.split(key, 5)
            w_ih = jax.random.uniform(k1, (3 * rnn_size, in_dim), jnp.float32, -bound, bound)
            w_hh = jax.random.uniform(k2, (3 * rnn_size, rnn_size), jnp.float32, -bound, bound)
            b_ih = jax.random.uniform(k3, (3 * rnn_size,), jnp.float32, -bound, bound)
            b_hh = jax.random.uniform(k4, (3 * rnn_size,), jnp.float32, -bound, bound)
            layer[d] = (w_ih, w_hh, b_ih, b_hh)
        layers.append(layer)
    return layers, key


def _ref_gru_dir(x, w_ih, w_hh, b_ih, b_hh, reverse=False):
    if reverse:
        x = x[:, ::-1]
    R = w_hh.shape[1]

    def cell(h, x_t):
        gi = x_t @ w_ih.T + b_ih
        gh = h @ w_hh.T + b_hh
        i_r, i_z, i_n = jnp.split(gi, 3, axis=-1)
        h_r, h_z, h_n = jnp.split(gh, 3, axis=-1)
        r = jax.nn.sigmoid(i_r + h_r)
        z = jax.nn.sigmoid(i_z + h_z)
        n = jnp.tanh(i_n + r * h_n)
        h_new = (1.0 - z) * n + z * h
        return h_new, h_new

    h0 = jnp.zeros((x.shape[0], R), jnp.float32)
    _, hs = jax.lax.scan(cell, h0, jnp.transpose(x, (1, 0, 2)))
    hs = jnp.transpose(hs, (1, 0, 2))
    if reverse:
        hs = hs[:, ::-1]
    return hs


def _ref_bigru(x, layers):
    h = x
    for layer in layers:
        hf = _ref_gru_dir(h, *layer["fwd"])
        hb = _ref_gru_dir(h, *layer["bwd"], reverse=True)
        h = jnp.concatenate([hf, hb], axis=-1)
    return h


def _ref_forward(sentences, keywords, layers, rnn_size):
    B, N, S, E = sentences.shape
    x = _ref_bigru(sentences.reshape(B * N, S, E), layers).reshape(B, N, S, 2 * rnn_size)
    q = jnp.broadcast_to(_ref_bigru(keywords, layers)[:, None], x.shape)
    mask = jnp.einsum("bse,bnte->bnst", keywords, sentences) != 0
    scores = jnp.einsum("bnsd,bntd->bnst", q, x) / math.sqrt(2 * rnn_size)
    scores = jnp.where(mask, scores, -1e9)
    p = jax.nn.softmax(scores, axis=-1)
    values = jnp.einsum("bnst,bntd->bnsd", p, x)
    return values.sum(axis=2), p.sum(axis=2)


# ------------------------------------ main ------------------------------------

if __name__ == "__main__":
    # small shapes: batch=2, num_sentences=3, sequence_length=8,
    #               embedding_dim=32, rnn_size=16, rnn_layers=2
    B, N, S, E, R, L = 2, 3, 8, 32, 16, 2

    key = jax.random.PRNGKey(0)
    layers, key = init_gru_params(key, E, R, L)
    key, ks, kk = jax.random.split(key, 3)
    sentences = jax.random.normal(ks, (B, N, S, E), jnp.float32)
    keywords = jax.random.normal(kk, (B, S, E), jnp.float32)

    values, word_attn = word_attention_forward(sentences, keywords, layers, R)
    values = jax.block_until_ready(values)
    word_attn = jax.block_until_ready(word_attn)

    assert values.shape == (B, N, 2 * R)
    assert word_attn.shape == (B, N, S)

    # sanity check against a pure-JAX reference of the same math
    ref_values, ref_attn = _ref_forward(sentences, keywords, layers, R)
    import numpy as np
    np.testing.assert_allclose(np.asarray(values), np.asarray(ref_values), rtol=1e-3, atol=1e-3)
    np.testing.assert_allclose(np.asarray(word_attn), np.asarray(ref_attn), rtol=1e-3, atol=1e-3)

    print("KERNEL_OK")
</pallas_src>

<mosaic_0001>
module attributes {stable_mosaic.version = 11 : i64} {
  func.func @kernel(%arg0: i32, %arg1: memref<1x8x32xf32, #tpu.memory_space<vmem>>, %arg2: memref<1x3x8x32xf32, #tpu.memory_space<vmem>>, %arg3: memref<1x8x32xf32, #tpu.memory_space<vmem>>, %arg4: memref<1x3x8x32xf32, #tpu.memory_space<vmem>>, %arg5: memref<1x3x32xf32, #tpu.memory_space<vmem>>, %arg6: memref<1x3x8xf32, #tpu.memory_space<vmem>>) attributes {dimension_semantics = [#tpu.dimension_semantics<parallel>], iteration_bounds = array<i64: 2>, scalar_prefetch = 0 : i64, scratch_operands = 0 : i64, tpu.core_type = #tpu.core_type<tc>, window_params = [{transform_indices = @transform_0, window_bounds = array<i64: 1, 8, 32>}, {transform_indices = @transform_1, window_bounds = array<i64: 1, 3, 8, 32>}, {transform_indices = @transform_2, window_bounds = array<i64: 1, 8, 32>}, {transform_indices = @transform_3, window_bounds = array<i64: 1, 3, 8, 32>}, {transform_indices = @transform_4, window_bounds = array<i64: 1, 3, 32>}, {transform_indices = @transform_5, window_bounds = array<i64: 1, 3, 8>}]} {
    %c0 = arith.constant 0 : index
    %c0_0 = arith.constant 0 : index
    %c0_1 = arith.constant 0 : index
    %0 = vector.load %arg1[%c0, %c0_0, %c0_1] : memref<1x8x32xf32, #tpu.memory_space<vmem>>, vector<1x8x32xf32>
    %1 = vector.shape_cast %0 : vector<1x8x32xf32> to vector<8x32xf32>
    %c0_2 = arith.constant 0 : index
    %c0_3 = arith.constant 0 : index
    %c0_4 = arith.constant 0 : index
    %2 = vector.load %arg3[%c0_2, %c0_3, %c0_4] : memref<1x8x32xf32, #tpu.memory_space<vmem>>, vector<1x8x32xf32>
    %3 = vector.shape_cast %2 : vector<1x8x32xf32> to vector<8x32xf32>
    %c0_5 = arith.constant 0 : index
    %c0_6 = arith.constant 0 : index
    %c0_7 = arith.constant 0 : index
    %c0_8 = arith.constant 0 : index
    %4 = vector.load %arg2[%c0_5, %c0_6, %c0_7, %c0_8] : memref<1x3x8x32xf32, #tpu.memory_space<vmem>>, vector<1x1x8x32xf32>
    %5 = vector.shape_cast %4 : vector<1x1x8x32xf32> to vector<8x32xf32>
    %c0_9 = arith.constant 0 : index
    %c0_10 = arith.constant 0 : index
    %c0_11 = arith.constant 0 : index
    %c0_12 = arith.constant 0 : index
    %6 = vector.load %arg4[%c0_9, %c0_10, %c0_11, %c0_12] : memref<1x3x8x32xf32, #tpu.memory_space<vmem>>, vector<1x1x8x32xf32>
    %7 = vector.shape_cast %6 : vector<1x1x8x32xf32> to vector<8x32xf32>
    %8 = tpu.transpose %5, [1, 0] : vector<8x32xf32> -> vector<32x8xf32>
    %cst = arith.constant dense<0.000000e+00> : vector<8x8xf32>
    %9 = tpu.matmul %1, %8, %cst {dimension_numbers = #tpu.dot_dimension_numbers<[1], [0], [0], [1], [0, 0, 1, 1], [], []>} : vector<8x32xf32>, vector<32x8xf32>, vector<8x8xf32> -> vector<8x8xf32>
    %cst_13 = arith.constant 0.176776692 : f32
    %10 = vector.broadcast %cst_13 : f32 to vector<8x8xf32>
    %11 = arith.mulf %9, %10 : vector<8x8xf32>
    %12 = tpu.transpose %7, [1, 0] : vector<8x32xf32> -> vector<32x8xf32>
    %cst_14 = arith.constant dense<0.000000e+00> : vector<8x8xf32>
    %13 = tpu.matmul %3, %12, %cst_14 {dimension_numbers = #tpu.dot_dimension_numbers<[1], [0], [0], [1], [0, 0, 1, 1], [], []>} : vector<8x32xf32>, vector<32x8xf32>, vector<8x8xf32> -> vector<8x8xf32>
    %cst_15 = arith.constant 0.000000e+00 : f32
    %14 = vector.broadcast %cst_15 : f32 to vector<8x8xf32>
    %15 = arith.cmpf one, %13, %14 : vector<8x8xf32>
    %cst_16 = arith.constant -1.000000e+09 : f32
    %16 = vector.broadcast %cst_16 : f32 to vector<8x8xf32>
    %17 = arith.select %15, %11, %16 : vector<8x8xi1>, vector<8x8xf32>
    %cst_17 = arith.constant dense<0xFF800000> : vector<8xf32>
    %18 = vector.multi_reduction <maximumf>, %17, %cst_17 [1] : vector<8x8xf32> to vector<8xf32>
    %19 = vector.shape_cast %18 : vector<8xf32> to vector<8x1xf32>
    %20 = vector.broadcast %19 : vector<8x1xf32> to vector<8x8xf32>
    %21 = arith.subf %17, %20 : vector<8x8xf32>
    %22 = math.exp %21 : vector<8x8xf32>
    %cst_18 = arith.constant dense<0.000000e+00> : vector<8xf32>
    %23 = vector.multi_reduction <add>, %22, %cst_18 [1] : vector<8x8xf32> to vector<8xf32>
    %24 = vector.shape_cast %23 : vector<8xf32> to vector<8x1xf32>
    %25 = tpu.reciprocal %24 {approx = true} : vector<8x1xf32> -> vector<8x1xf32>
    %26 = vector.broadcast %25 : vector<8x1xf32> to vector<8x8xf32>
    %27 = arith.mulf %22, %26 : vector<8x8xf32>
    %cst_19 = arith.constant dense<0.000000e+00> : vector<8xf32>
    %28 = vector.multi_reduction <add>, %27, %cst_19 [0] : vector<8x8xf32> to vector<8xf32>
    %29 = vector.shape_cast %28 : vector<8xf32> to vector<1x8xf32>
    %c0_20 = arith.constant 0 : index
    %c0_21 = arith.constant 0 : index
    %c0_22 = arith.constant 0 : index
    %30 = vector.load %arg6[%c0_20, %c0_21, %c0_22] : memref<1x3x8xf32, #tpu.memory_space<vmem>>, vector<1x1x8xf32>
    %31 = vector.shape_cast %30 : vector<1x1x8xf32> to vector<1x8xf32>
    %32 = vector.shape_cast %29 : vector<1x8xf32> to vector<1x1x8xf32>
    tpu.vector_store %arg6[%c0_20, %c0_21, %c0_22], %32 {strides = array<i32>} : memref<1x3x8xf32, #tpu.memory_space<vmem>>, vector<1x1x8xf32>,
    %cst_23 = arith.constant dense<0.000000e+00> : vector<1x32xf32>
    %33 = tpu.matmul %29, %5, %cst_23 {dimension_numbers = #tpu.dot_dimension_numbers<[1], [0], [0], [1], [0, 0, 1, 1], [], []>} : vector<1x8xf32>, vector<8x32xf32>, vector<1x32xf32> -> vector<1x32xf32>
    %c0_24 = arith.constant 0 : index
    %c0_25 = arith.constant 0 : index
    %c0_26 = arith.constant 0 : index
    %34 = vector.load %arg5[%c0_24, %c0_25, %c0_26] : memref<1x3x32xf32, #tpu.memory_space<vmem>>, vector<1x1x32xf32>
    %35 = vector.shape_cast %34 : vector<1x1x32xf32> to vector<1x32xf32>
    %36 = vector.shape_cast %33 : vector<1x32xf32> to vector<1x1x32xf32>
    tpu.vector_store %arg5[%c0_24, %c0_25, %c0_26], %36 {strides = array<i32>} : memref<1x3x32xf32, #tpu.memory_space<vmem>>, vector<1x1x32xf32>,
    %c0_27 = arith.constant 0 : index
    %c1 = arith.constant 1 : index
    %c0_28 = arith.constant 0 : index
    %c0_29 = arith.constant 0 : index
    %37 = vector.load %arg2[%c0_27, %c1, %c0_28, %c0_29] : memref<1x3x8x32xf32, #tpu.memory_space<vmem>>, vector<1x1x8x32xf32>
    %38 = vector.shape_cast %37 : vector<1x1x8x32xf32> to vector<8x32xf32>
    %c0_30 = arith.constant 0 : index
    %c1_31 = arith.constant 1 : index
    %c0_32 = arith.constant 0 : index
    %c0_33 = arith.constant 0 : index
    %39 = vector.load %arg4[%c0_30, %c1_31, %c0_32, %c0_33] : memref<1x3x8x32xf32, #tpu.memory_space<vmem>>, vector<1x1x8x32xf32>
    %40 = vector.shape_cast %39 : vector<1x1x8x32xf32> to vector<8x32xf32>
    %41 = tpu.transpose %38, [1, 0] : vector<8x32xf32> -> vector<32x8xf32>
    %cst_34 = arith.constant dense<0.000000e+00> : vector<8x8xf32>
    %42 = tpu.matmul %1, %41, %cst_34 {dimension_numbers = #tpu.dot_dimension_numbers<[1], [0], [0], [1], [0, 0, 1, 1], [], []>} : vector<8x32xf32>, vector<32x8xf32>, vector<8x8xf32> -> vector<8x8xf32>
    %cst_35 = arith.constant 0.176776692 : f32
    %43 = vector.broadcast %cst_35 : f32 to vector<8x8xf32>
    %44 = arith.mulf %42, %43 : vector<8x8xf32>
    %45 = tpu.transpose %40, [1, 0] : vector<8x32xf32> -> vector<32x8xf32>
    %cst_36 = arith.constant dense<0.000000e+00> : vector<8x8xf32>
    %46 = tpu.matmul %3, %45, %cst_36 {dimension_numbers = #tpu.dot_dimension_numbers<[1], [0], [0], [1], [0, 0, 1, 1], [], []>} : vector<8x32xf32>, vector<32x8xf32>, vector<8x8xf32> -> vector<8x8xf32>
    %cst_37 = arith.constant 0.000000e+00 : f32
    %47 = vector.broadcast %cst_37 : f32 to vector<8x8xf32>
    %48 = arith.cmpf one, %46, %47 : vector<8x8xf32>
    %cst_38 = arith.constant -1.000000e+09 : f32
    %49 = vector.broadcast %cst_38 : f32 to vector<8x8xf32>
    %50 = arith.select %48, %44, %49 : vector<8x8xi1>, vector<8x8xf32>
    %cst_39 = arith.constant dense<0xFF800000> : vector<8xf32>
    %51 = vector.multi_reduction <maximumf>, %50, %cst_39 [1] : vector<8x8xf32> to vector<8xf32>
    %52 = vector.shape_cast %51 : vector<8xf32> to vector<8x1xf32>
    %53 = vector.broadcast %52 : vector<8x1xf32> to vector<8x8xf32>
    %54 = arith.subf %50, %53 : vector<8x8xf32>
    %55 = math.exp %54 : vector<8x8xf32>
    %cst_40 = arith.constant dense<0.000000e+00> : vector<8xf32>
    %56 = vector.multi_reduction <add>, %55, %cst_40 [1] : vector<8x8xf32> to vector<8xf32>
    %57 = vector.shape_cast %56 : vector<8xf32> to vector<8x1xf32>
    %58 = tpu.reciprocal %57 {approx = true} : vector<8x1xf32> -> vector<8x1xf32>
    %59 = vector.broadcast %58 : vector<8x1xf32> to vector<8x8xf32>
    %60 = arith.mulf %55, %59 : vector<8x8xf32>
    %cst_41 = arith.constant dense<0.000000e+00> : vector<8xf32>
    %61 = vector.multi_reduction <add>, %60, %cst_41 [0] : vector<8x8xf32> to vector<8xf32>
    %62 = vector.shape_cast %61 : vector<8xf32> to vector<1x8xf32>
    %c0_42 = arith.constant 0 : index
    %c1_43 = arith.constant 1 : index
    %c0_44 = arith.constant 0 : index
    %63 = vector.load %arg6[%c0_42, %c1_43, %c0_44] : memref<1x3x8xf32, #tpu.memory_space<vmem>>, vector<1x1x8xf32>
    %64 = vector.shape_cast %63 : vector<1x1x8xf32> to vector<1x8xf32>
    %65 = vector.shape_cast %62 : vector<1x8xf32> to vector<1x1x8xf32>
    tpu.vector_store %arg6[%c0_42, %c1_43, %c0_44], %65 {strides = array<i32>} : memref<1x3x8xf32, #tpu.memory_space<vmem>>, vector<1x1x8xf32>,
    %cst_45 = arith.constant dense<0.000000e+00> : vector<1x32xf32>
    %66 = tpu.matmul %62, %38, %cst_45 {dimension_numbers = #tpu.dot_dimension_numbers<[1], [0], [0], [1], [0, 0, 1, 1], [], []>} : vector<1x8xf32>, vector<8x32xf32>, vector<1x32xf32> -> vector<1x32xf32>
    %c0_46 = arith.constant 0 : index
    %c1_47 = arith.constant 1 : index
    %c0_48 = arith.constant 0 : index
    %67 = vector.load %arg5[%c0_46, %c1_47, %c0_48] : memref<1x3x32xf32, #tpu.memory_space<vmem>>, vector<1x1x32xf32>
    %68 = vector.shape_cast %67 : vector<1x1x32xf32> to vector<1x32xf32>
    %69 = vector.shape_cast %66 : vector<1x32xf32> to vector<1x1x32xf32>
    tpu.vector_store %arg5[%c0_46, %c1_47, %c0_48], %69 {strides = array<i32>} : memref<1x3x32xf32, #tpu.memory_space<vmem>>, vector<1x1x32xf32>,
    %c0_49 = arith.constant 0 : index
    %c2 = arith.constant 2 : index
    %c0_50 = arith.constant 0 : index
    %c0_51 = arith.constant 0 : index
    %70 = vector.load %arg2[%c0_49, %c2, %c0_50, %c0_51] : memref<1x3x8x32xf32, #tpu.memory_space<vmem>>, vector<1x1x8x32xf32>
    %71 = vector.shape_cast %70 : vector<1x1x8x32xf32> to vector<8x32xf32>
    %c0_52 = arith.constant 0 : index
    %c2_53 = arith.constant 2 : index
    %c0_54 = arith.constant 0 : index
    %c0_55 = arith.constant 0 : index
    %72 = vector.load %arg4[%c0_52, %c2_53, %c0_54, %c0_55] : memref<1x3x8x32xf32, #tpu.memory_space<vmem>>, vector<1x1x8x32xf32>
    %73 = vector.shape_cast %72 : vector<1x1x8x32xf32> to vector<8x32xf32>
    %74 = tpu.transpose %71, [1, 0] : vector<8x32xf32> -> vector<32x8xf32>
    %cst_56 = arith.constant dense<0.000000e+00> : vector<8x8xf32>
    %75 = tpu.matmul %1, %74, %cst_56 {dimension_numbers = #tpu.dot_dimension_numbers<[1], [0], [0], [1], [0, 0, 1, 1], [], []>} : vector<8x32xf32>, vector<32x8xf32>, vector<8x8xf32> -> vector<8x8xf32>
    %cst_57 = arith.constant 0.176776692 : f32
    %76 = vector.broadcast %cst_57 : f32 to vector<8x8xf32>
    %77 = arith.mulf %75, %76 : vector<8x8xf32>
    %78 = tpu.transpose %73, [1, 0] : vector<8x32xf32> -> vector<32x8xf32>
    %cst_58 = arith.constant dense<0.000000e+00> : vector<8x8xf32>
    %79 = tpu.matmul %3, %78, %cst_58 {dimension_numbers = #tpu.dot_dimension_numbers<[1], [0], [0], [1], [0, 0, 1, 1], [], []>} : vector<8x32xf32>, vector<32x8xf32>, vector<8x8xf32> -> vector<8x8xf32>
    %cst_59 = arith.constant 0.000000e+00 : f32
    %80 = vector.broadcast %cst_59 : f32 to vector<8x8xf32>
    %81 = arith.cmpf one, %79, %80 : vector<8x8xf32>
    %cst_60 = arith.constant -1.000000e+09 : f32
    %82 = vector.broadcast %cst_60 : f32 to vector<8x8xf32>
    %83 = arith.select %81, %77, %82 : vector<8x8xi1>, vector<8x8xf32>
    %cst_61 = arith.constant dense<0xFF800000> : vector<8xf32>
    %84 = vector.multi_reduction <maximumf>, %83, %cst_61 [1] : vector<8x8xf32> to vector<8xf32>
    %85 = vector.shape_cast %84 : vector<8xf32> to vector<8x1xf32>
    %86 = vector.broadcast %85 : vector<8x1xf32> to vector<8x8xf32>
    %87 = arith.subf %83, %86 : vector<8x8xf32>
    %88 = math.exp %87 : vector<8x8xf32>
    %cst_62 = arith.constant dense<0.000000e+00> : vector<8xf32>
    %89 = vector.multi_reduction <add>, %88, %cst_62 [1] : vector<8x8xf32> to vector<8xf32>
    %90 = vector.shape_cast %89 : vector<8xf32> to vector<8x1xf32>
    %91 = tpu.reciprocal %90 {approx = true} : vector<8x1xf32> -> vector<8x1xf32>
    %92 = vector.broadcast %91 : vector<8x1xf32> to vector<8x8xf32>
    %93 = arith.mulf %88, %92 : vector<8x8xf32>
    %cst_63 = arith.constant dense<0.000000e+00> : vector<8xf32>
    %94 = vector.multi_reduction <add>, %93, %cst_63 [0] : vector<8x8xf32> to vector<8xf32>
    %95 = vector.shape_cast %94 : vector<8xf32> to vector<1x8xf32>
    %c0_64 = arith.constant 0 : index
    %c2_65 = arith.constant 2 : index
    %c0_66 = arith.constant 0 : index
    %96 = vector.load %arg6[%c0_64, %c2_65, %c0_66] : memref<1x3x8xf32, #tpu.memory_space<vmem>>, vector<1x1x8xf32>
    %97 = vector.shape_cast %96 : vector<1x1x8xf32> to vector<1x8xf32>
    %98 = vector.shape_cast %95 : vector<1x8xf32> to vector<1x1x8xf32>
    tpu.vector_store %arg6[%c0_64, %c2_65, %c0_66], %98 {strides = array<i32>} : memref<1x3x8xf32, #tpu.memory_space<vmem>>, vector<1x1x8xf32>,
    %cst_67 = arith.constant dense<0.000000e+00> : vector<1x32xf32>
    %99 = tpu.matmul %95, %71, %cst_67 {dimension_numbers = #tpu.dot_dimension_numbers<[1], [0], [0], [1], [0, 0, 1, 1], [], []>} : vector<1x8xf32>, vector<8x32xf32>, vector<1x32xf32> -> vector<1x32xf32>
    %c0_68 = arith.constant 0 : index
    %c2_69 = arith.constant 2 : index
    %c0_70 = arith.constant 0 : index
    %100 = vector.load %arg5[%c0_68, %c2_69, %c0_70] : memref<1x3x32xf32, #tpu.memory_space<vmem>>, vector<1x1x32xf32>
    %101 = vector.shape_cast %100 : vector<1x1x32xf32> to vector<1x32xf32>
    %102 = vector.shape_cast %99 : vector<1x32xf32> to vector<1x1x32xf32>
    tpu.vector_store %arg5[%c0_68, %c2_69, %c0_70], %102 {strides = array<i32>} : memref<1x3x32xf32, #tpu.memory_space<vmem>>, vector<1x1x32xf32>,
    return
  }
  func.func @transform_0(%arg0: i32) -> (i32, i32, i32) {
    %c0_i32 = arith.constant 0 : i32
    %c0_i32_0 = arith.constant 0 : i32
    %c0_i32_1 = arith.constant 0 : i32
    return %arg0, %c0_i32, %c0_i32_0 : i32, i32, i32
  }
  func.func @transform_1(%arg0: i32) -> (i32, i32, i32, i32) {
    %c0_i32 = arith.constant 0 : i32
    %c0_i32_0 = arith.constant 0 : i32
    %c0_i32_1 = arith.constant 0 : i32
    %c0_i32_2 = arith.constant 0 : i32
    return %arg0, %c0_i32, %c0_i32_0, %c0_i32_1 : i32, i32, i32, i32
  }
  func.func @transform_2(%arg0: i32) -> (i32, i32, i32) {
    %c0_i32 = arith.constant 0 : i32
    %c0_i32_0 = arith.constant 0 : i32
    %c0_i32_1 = arith.constant 0 : i32
    return %arg0, %c0_i32, %c0_i32_0 : i32, i32, i32
  }
  func.func @transform_3(%arg0: i32) -> (i32, i32, i32, i32) {
    %c0_i32 = arith.constant 0 : i32
    %c0_i32_0 = arith.constant 0 : i32
    %c0_i32_1 = arith.constant 0 : i32
    %c0_i32_2 = arith.constant 0 : i32
    return %arg0, %c0_i32, %c0_i32_0, %c0_i32_1 : i32, i32, i32, i32
  }
  func.func @transform_4(%arg0: i32) -> (i32, i32, i32) {
    %c0_i32 = arith.constant 0 : i32
    %c0_i32_0 = arith.constant 0 : i32
    %c0_i32_1 = arith.constant 0 : i32
    return %arg0, %c0_i32, %c0_i32_0 : i32, i32, i32
  }
  func.func @transform_5(%arg0: i32) -> (i32, i32, i32) {
    %c0_i32 = arith.constant 0 : i32
    %c0_i32_0 = arith.constant 0 : i32
    %c0_i32_1 = arith.constant 0 : i32
    return %arg0, %c0_i32, %c0_i32_0 : i32, i32, i32
  }
}

module attributes {stable_mosaic.version = 11 : i64} {
  func.func @kernel(%arg0: i32, %arg1: memref<8x8x32xf32, #tpu.memory_space<vmem>>, %arg2: memref<32x768xf32, #tpu.memory_space<vmem>>, %arg3: memref<1x768xf32, #tpu.memory_space<vmem>>, %arg4: memref<2x16x384xf32, #tpu.memory_space<vmem>>, %arg5: memref<2x1x384xf32, #tpu.memory_space<vmem>>, %arg6: memref<32x768xf32, #tpu.memory_space<vmem>>, %arg7: memref<1x768xf32, #tpu.memory_space<vmem>>, %arg8: memref<2x16x384xf32, #tpu.memory_space<vmem>>, %arg9: memref<2x1x384xf32, #tpu.memory_space<vmem>>, %arg10: memref<8x8x32xf32, #tpu.memory_space<vmem>>, %arg11: memref<64x768xf32, #tpu.memory_space<vmem>>, %arg12: memref<8x8x32xf32, #tpu.memory_space<vmem>>) attributes {dimension_semantics = [#tpu.dimension_semantics<arbitrary>], iteration_bounds = array<i64: 1>, scalar_prefetch = 0 : i64, scratch_operands = 2 : i64, tpu.core_type = #tpu.core_type<tc>, window_params = [{pipeline_mode = #tpu.pipeline_mode<synchronous>, transform_indices = @transform_0, window_bounds = array<i64: 8, 8, 32>}, {pipeline_mode = #tpu.pipeline_mode<synchronous>, transform_indices = @transform_1, window_bounds = array<i64: 32, 768>}, {pipeline_mode = #tpu.pipeline_mode<synchronous>, transform_indices = @transform_2, window_bounds = array<i64: 1, 768>}, {pipeline_mode = #tpu.pipeline_mode<synchronous>, transform_indices = @transform_3, window_bounds = array<i64: 2, 16, 384>}, {pipeline_mode = #tpu.pipeline_mode<synchronous>, transform_indices = @transform_4, window_bounds = array<i64: 2, 1, 384>}, {pipeline_mode = #tpu.pipeline_mode<synchronous>, transform_indices = @transform_5, window_bounds = array<i64: 32, 768>}, {pipeline_mode = #tpu.pipeline_mode<synchronous>, transform_indices = @transform_6, window_bounds = array<i64: 1, 768>}, {pipeline_mode = #tpu.pipeline_mode<synchronous>, transform_indices = @transform_7, window_bounds = array<i64: 2, 16, 384>}, {pipeline_mode = #tpu.pipeline_mode<synchronous>, transform_indices = @transform_8, window_bounds = array<i64: 2, 1, 384>}, {pipeline_mode = #tpu.pipeline_mode<synchronous>, transform_indices = @transform_9, window_bounds = array<i64: 8, 8, 32>}]} {
    %c0 = arith.constant 0 : index
    %c0_0 = arith.constant 0 : index
    %c0_1 = arith.constant 0 : index
    %0 = vector.load %arg1[%c0, %c0_0, %c0_1] : memref<8x8x32xf32, #tpu.memory_space<vmem>>, vector<8x8x32xf32>
    %1 = vector.shape_cast %0 : vector<8x8x32xf32> to vector<64x32xf32>
    %c0_2 = arith.constant 0 : index
    %c0_3 = arith.constant 0 : index
    %2 = vector.load %arg2[%c0_2, %c0_3] : memref<32x768xf32, #tpu.memory_space<vmem>>, vector<32x768xf32>
    %cst = arith.constant dense<0.000000e+00> : vector<64x768xf32>
    %3 = tpu.matmul %1, %2, %cst {dimension_numbers = #tpu.dot_dimension_numbers<[1], [0], [0], [1], [0, 0, 1, 1], [], []>} : vector<64x32xf32>, vector<32x768xf32>, vector<64x768xf32> -> vector<64x768xf32>
    %c0_4 = arith.constant 0 : index
    %c0_5 = arith.constant 0 : index
    %4 = vector.load %arg3[%c0_4, %c0_5] : memref<1x768xf32, #tpu.memory_space<vmem>>, vector<1x768xf32>
    %5 = vector.broadcast %4 : vector<1x768xf32> to vector<64x768xf32>
    %6 = arith.addf %3, %5 : vector<64x768xf32>
    %c0_6 = arith.constant 0 : index
    %c0_7 = arith.constant 0 : index
    %7 = vector.load %arg11[%c0_6, %c0_7] : memref<64x768xf32, #tpu.memory_space<vmem>>, vector<64x768xf32>
    tpu.vector_store %arg11[%c0_6, %c0_7], %6 {strides = array<i32>} : memref<64x768xf32, #tpu.memory_space<vmem>>, vector<64x768xf32>,
    %c0_8 = arith.constant 0 : index
    %c0_9 = arith.constant 0 : index
    %c0_10 = arith.constant 0 : index
    %8 = vector.load %arg4[%c0_8, %c0_9, %c0_10] : memref<2x16x384xf32, #tpu.memory_space<vmem>>, vector<1x16x384xf32>
    %9 = vector.shape_cast %8 : vector<1x16x384xf32> to vector<16x384xf32>
    %c1 = arith.constant 1 : index
    %c0_11 = arith.constant 0 : index
    %c0_12 = arith.constant 0 : index
    %10 = vector.load %arg4[%c1, %c0_11, %c0_12] : memref<2x16x384xf32, #tpu.memory_space<vmem>>, vector<1x16x384xf32>
    %11 = vector.shape_cast %10 : vector<1x16x384xf32> to vector<16x384xf32>
    %c0_13 = arith.constant 0 : index
    %c0_14 = arith.constant 0 : index
    %c0_15 = arith.constant 0 : index
    %12 = vector.load %arg5[%c0_13, %c0_14, %c0_15] : memref<2x1x384xf32, #tpu.memory_space<vmem>>, vector<1x1x384xf32>
    %13 = vector.shape_cast %12 : vector<1x1x384xf32> to vector<1x384xf32>
    %c1_16 = arith.constant 1 : index
    %c0_17 = arith.constant 0 : index
    %c0_18 = arith.constant 0 : index
    %14 = vector.load %arg5[%c1_16, %c0_17, %c0_18] : memref<2x1x384xf32, #tpu.memory_space<vmem>>, vector<1x1x384xf32>
    %15 = vector.shape_cast %14 : vector<1x1x384xf32> to vector<1x384xf32>
    %cst_19 = arith.constant 0.000000e+00 : f32
    %16 = vector.broadcast %cst_19 : f32 to vector<8x16xf32>
    %cst_20 = arith.constant 0.000000e+00 : f32
    %17 = vector.broadcast %cst_20 : f32 to vector<8x16xf32>
    %c0_21 = arith.constant 0 : index
    %c0_22 = arith.constant 0 : index
    %18 = vector.load %arg11[%c0_21, %c0_22] : memref<64x768xf32, #tpu.memory_space<vmem>>, vector<8x384xf32>
    %c56 = arith.constant 56 : index
    %c384 = arith.constant 384 : index
    %19 = vector.load %arg11[%c56, %c384] : memref<64x768xf32, #tpu.memory_space<vmem>>, vector<8x384xf32>
    %cst_23 = arith.constant dense<0.000000e+00> : vector<8x384xf32>
    %20 = tpu.matmul %16, %9, %cst_23 {dimension_numbers = #tpu.dot_dimension_numbers<[1], [0], [0], [1], [0, 0, 1, 1], [], []>} : vector<8x16xf32>, vector<16x384xf32>, vector<8x384xf32> -> vector<8x384xf32>
    %21 = vector.broadcast %13 : vector<1x384xf32> to vector<8x384xf32>
    %22 = arith.addf %20, %21 : vector<8x384xf32>
    %cst_24 = arith.constant dense<0.000000e+00> : vector<8x384xf32>
    %23 = tpu.matmul %17, %11, %cst_24 {dimension_numbers = #tpu.dot_dimension_numbers<[1], [0], [0], [1], [0, 0, 1, 1], [], []>} : vector<8x16xf32>, vector<16x384xf32>, vector<8x384xf32> -> vector<8x384xf32>
    %24 = vector.broadcast %15 : vector<1x384xf32> to vector<8x384xf32>
    %25 = arith.addf %23, %24 : vector<8x384xf32>
    %26 = vector.extract_strided_slice %18 {offsets = [0, 0], sizes = [8, 256], strides = [1, 1]} : vector<8x384xf32> to vector<8x256xf32>
    %27 = vector.extract_strided_slice %22 {offsets = [0, 0], sizes = [8, 256], strides = [1, 1]} : vector<8x384xf32> to vector<8x256xf32>
    %28 = arith.addf %26, %27 : vector<8x256xf32>
    %29 = arith.negf %28 : vector<8x256xf32>
    %30 = math.exp %29 : vector<8x256xf32>
    %cst_25 = arith.constant 1.000000e+00 : f32
    %31 = vector.broadcast %cst_25 : f32 to vector<8x256xf32>
    %32 = arith.addf %31, %30 : vector<8x256xf32>
    %33 = arith.divf %31, %32 : vector<8x256xf32>
    %34 = vector.extract_strided_slice %18 {offsets = [0, 256], sizes = [8, 128], strides = [1, 1]} : vector<8x384xf32> to vector<8x128xf32>
    %35 = vector.extract_strided_slice %33 {offsets = [0, 0], sizes = [8, 128], strides = [1, 1]} : vector<8x256xf32> to vector<8x128xf32>
    %36 = vector.extract_strided_slice %22 {offsets = [0, 256], sizes = [8, 128], strides = [1, 1]} : vector<8x384xf32> to vector<8x128xf32>
    %37 = arith.mulf %35, %36 : vector<8x128xf32>
    %38 = arith.addf %34, %37 : vector<8x128xf32>
    %39 = math.tanh %38 : vector<8x128xf32>
    %40 = vector.extract_strided_slice %33 {offsets = [0, 128], sizes = [8, 16], strides = [1, 1]} : vector<8x256xf32> to vector<8x16xf32>
    %cst_26 = arith.constant 1.000000e+00 : f32
    %41 = vector.broadcast %cst_26 : f32 to vector<8x16xf32>
    %42 = arith.subf %41, %40 : vector<8x16xf32>
    %43 = vector.extract_strided_slice %39 {offsets = [0, 0], sizes = [8, 16], strides = [1, 1]} : vector<8x128xf32> to vector<8x16xf32>
    %44 = arith.mulf %42, %43 : vector<8x16xf32>
    %45 = arith.mulf %40, %16 : vector<8x16xf32>
    %46 = arith.addf %44, %45 : vector<8x16xf32>
    %47 = vector.extract_strided_slice %19 {offsets = [0, 0], sizes = [8, 256], strides = [1, 1]} : vector<8x384xf32> to vector<8x256xf32>
    %48 = vector.extract_strided_slice %25 {offsets = [0, 0], sizes = [8, 256], strides = [1, 1]} : vector<8x384xf32> to vector<8x256xf32>
    %49 = arith.addf %47, %48 : vector<8x256xf32>
    %50 = arith.negf %49 : vector<8x256xf32>
    %51 = math.exp %50 : vector<8x256xf32>
    %cst_27 = arith.constant 1.000000e+00 : f32
    %52 = vector.broadcast %cst_27 : f32 to vector<8x256xf32>
    %53 = arith.addf %52, %51 : vector<8x256xf32>
    %54 = arith.divf %52, %53 : vector<8x256xf32>
    %55 = vector.extract_strided_slice %19 {offsets = [0, 256], sizes = [8, 128], strides = [1, 1]} : vector<8x384xf32> to vector<8x128xf32>
    %56 = vector.extract_strided_slice %54 {offsets = [0, 0], sizes = [8, 128], strides = [1, 1]} : vector<8x256xf32> to vector<8x128xf32>
    %57 = vector.extract_strided_slice %25 {offsets = [0, 256], sizes = [8, 128], strides = [1, 1]} : vector<8x384xf32> to vector<8x128xf32>
    %58 = arith.mulf %56, %57 : vector<8x128xf32>
    %59 = arith.addf %55, %58 : vector<8x128xf32>
    %60 = math.tanh %59 : vector<8x128xf32>
    %61 = vector.extract_strided_slice %54 {offsets = [0, 128], sizes = [8, 16], strides = [1, 1]} : vector<8x256xf32> to vector<8x16xf32>
    %cst_28 = arith.constant 1.000000e+00 : f32
    %62 = vector.broadcast %cst_28 : f32 to vector<8x16xf32>
    %63 = arith.subf %62, %61 : vector<8x16xf32>
    %64 = vector.extract_strided_slice %60 {offsets = [0, 0], sizes = [8, 16], strides = [1, 1]} : vector<8x128xf32> to vector<8x16xf32>
    %65 = arith.mulf %63, %64 : vector<8x16xf32>
    %66 = arith.mulf %61, %17 : vector<8x16xf32>
    %67 = arith.addf %65, %66 : vector<8x16xf32>
    %c0_29 = arith.constant 0 : index
    %c0_30 = arith.constant 0 : index
    %c0_31 = arith.constant 0 : index
    %68 = vector.load %arg12[%c0_29, %c0_30, %c0_31] : memref<8x8x32xf32, #tpu.memory_space<vmem>>, vector<1x8x16xf32>
    %69 = vector.shape_cast %68 : vector<1x8x16xf32> to vector<8x16xf32>
    %70 = vector.shape_cast %46 : vector<8x16xf32> to vector<1x8x16xf32>
    tpu.vector_store %arg12[%c0_29, %c0_30, %c0_31], %70 {strides = array<i32>} : memref<8x8x32xf32, #tpu.memory_space<vmem>>, vector<1x8x16xf32>,
    %c7 = arith.constant 7 : index
    %c0_32 = arith.constant 0 : index
    %c16 = arith.constant 16 : index
    %71 = vector.load %arg12[%c7, %c0_32, %c16] : memref<8x8x32xf32, #tpu.memory_space<vmem>>, vector<1x8x16xf32>
    %72 = vector.shape_cast %71 : vector<1x8x16xf32> to vector<8x16xf32>
    %73 = vector.shape_cast %67 : vector<8x16xf32> to vector<1x8x16xf32>
    tpu.vector_store %arg12[%c7, %c0_32, %c16], %73 {strides = array<i32>} : memref<8x8x32xf32, #tpu.memory_space<vmem>>, vector<1x8x16xf32>,
    %c8 = arith.constant 8 : index
    %c0_33 = arith.constant 0 : index
    %74 = vector.load %arg11[%c8, %c0_33] : memref<64x768xf32, #tpu.memory_space<vmem>>, vector<8x384xf32>
    %c48 = arith.constant 48 : index
    %c384_34 = arith.constant 384 : index
    %75 = vector.load %arg11[%c48, %c384_34] : memref<64x768xf32, #tpu.memory_space<vmem>>, vector<8x384xf32>
    %cst_35 = arith.constant dense<0.000000e+00> : vector<8x384xf32>
    %76 = tpu.matmul %46, %9, %cst_35 {dimension_numbers = #tpu.dot_dimension_numbers<[1], [0], [0], [1], [0, 0, 1, 1], [], []>} : vector<8x16xf32>, vector<16x384xf32>, vector<8x384xf32> -> vector<8x384xf32>
    %77 = vector.broadcast %13 : vector<1x384xf32> to vector<8x384xf32>
    %78 = arith.addf %76, %77 : vector<8x384xf32>
    %cst_36 = arith.constant dense<0.000000e+00> : vector<8x384xf32>
    %79 = tpu.matmul %67, %11, %cst_36 {dimension_numbers = #tpu.dot_dimension_numbers<[1], [0], [0], [1], [0, 0, 1, 1], [], []>} : vector<8x16xf32>, vector<16x384xf32>, vector<8x384xf32> -> vector<8x384xf32>
    %80 = vector.broadcast %15 : vector<1x384xf32> to vector<8x384xf32>
    %81 = arith.addf %79, %80 : vector<8x384xf32>
    %82 = vector.extract_strided_slice %74 {offsets = [0, 0], sizes = [8, 256], strides = [1, 1]} : vector<8x384xf32> to vector<8x256xf32>
    %83 = vector.extract_strided_slice %78 {offsets = [0, 0], sizes = [8, 256], strides = [1, 1]} : vector<8x384xf32> to vector<8x256xf32>
    %84 = arith.addf %82, %83 : vector<8x256xf32>
    %85 = arith.negf %84 : vector<8x256xf32>
    %86 = math.exp %85 : vector<8x256xf32>
    %cst_37 = arith.constant 1.000000e+00 : f32
    %87 = vector.broadcast %cst_37 : f32 to vector<8x256xf32>
    %88 = arith.addf %87, %86 : vector<8x256xf32>
    %89 = arith.divf %87, %88 : vector<8x256xf32>
    %90 = vector.extract_strided_slice %74 {offsets = [0, 256], sizes = [8, 128], strides = [1, 1]} : vector<8x384xf32> to vector<8x128xf32>
    %91 = vector.extract_strided_slice %89 {offsets = [0, 0], sizes = [8, 128], strides = [1, 1]} : vector<8x256xf32> to vector<8x128xf32>
    %92 = vector.extract_strided_slice %78 {offsets = [0, 256], sizes = [8, 128], strides = [1, 1]} : vector<8x384xf32> to vector<8x128xf32>
    %93 = arith.mulf %91, %92 : vector<8x128xf32>
    %94 = arith.addf %90, %93 : vector<8x128xf32>
    %95 = math.tanh %94 : vector<8x128xf32>
    %96 = vector.extract_strided_slice %89 {offsets = [0, 128], sizes = [8, 16], strides = [1, 1]} : vector<8x256xf32> to vector<8x16xf32>
    %cst_38 = arith.constant 1.000000e+00 : f32
    %97 = vector.broadcast %cst_38 : f32 to vector<8x16xf32>
    %98 = arith.subf %97, %96 : vector<8x16xf32>
    %99 = vector.extract_strided_slice %95 {offsets = [0, 0], sizes = [8, 16], strides = [1, 1]} : vector<8x128xf32> to vector<8x16xf32>
    %100 = arith.mulf %98, %99 : vector<8x16xf32>
    %101 = arith.mulf %96, %46 : vector<8x16xf32>
    %102 = arith.addf %100, %101 : vector<8x16xf32>
    %103 = vector.extract_strided_slice %75 {offsets = [0, 0], sizes = [8, 256], strides = [1, 1]} : vector<8x384xf32> to vector<8x256xf32>
    %104 = vector.extract_strided_slice %81 {offsets = [0, 0], sizes = [8, 256], strides = [1, 1]} : vector<8x384xf32> to vector<8x256xf32>
    %105 = arith.addf %103, %104 : vector<8x256xf32>
    %106 = arith.negf %105 : vector<8x256xf32>
    %107 = math.exp %106 : vector<8x256xf32>
    %cst_39 = arith.constant 1.000000e+00 : f32
    %108 = vector.broadcast %cst_39 : f32 to vector<8x256xf32>
    %109 = arith.addf %108, %107 : vector<8x256xf32>
    %110 = arith.divf %108, %109 : vector<8x256xf32>
    %111 = vector.extract_strided_slice %75 {offsets = [0, 256], sizes = [8, 128], strides = [1, 1]} : vector<8x384xf32> to vector<8x128xf32>
    %112 = vector.extract_strided_slice %110 {offsets = [0, 0], sizes = [8, 128], strides = [1, 1]} : vector<8x256xf32> to vector<8x128xf32>
    %113 = vector.extract_strided_slice %81 {offsets = [0, 256], sizes = [8, 128], strides = [1, 1]} : vector<8x384xf32> to vector<8x128xf32>
    %114 = arith.mulf %112, %113 : vector<8x128xf32>
    %115 = arith.addf %111, %114 : vector<8x128xf32>
    %116 = math.tanh %115 : vector<8x128xf32>
    %117 = vector.extract_strided_slice %110 {offsets = [0, 128], sizes = [8, 16], strides = [1, 1]} : vector<8x256xf32> to vector<8x16xf32>
    %cst_40 = arith.constant 1.000000e+00 : f32
    %118 = vector.broadcast %cst_40 : f32 to vector<8x16xf32>
    %119 = arith.subf %118, %117 : vector<8x16xf32>
    %120 = vector.extract_strided_slice %116 {offsets = [0, 0], sizes = [8, 16], strides = [1, 1]} : vector<8x128xf32> to vector<8x16xf32>
    %121 = arith.mulf %119, %120 : vector<8x16xf32>
    %122 = arith.mulf %117, %67 : vector<8x16xf32>
    %123 = arith.addf %121, %122 : vector<8x16xf32>
    %c1_41 = arith.constant 1 : index
    %c0_42 = arith.constant 0 : index
    %c0_43 = arith.constant 0 : index
    %124 = vector.load %arg12[%c1_41, %c0_42, %c0_43] : memref<8x8x32xf32, #tpu.memory_space<vmem>>, vector<1x8x16xf32>
    %125 = vector.shape_cast %124 : vector<1x8x16xf32> to vector<8x16xf32>
    %126 = vector.shape_cast %102 : vector<8x16xf32> to vector<1x8x16xf32>
    tpu.vector_store %arg12[%c1_41, %c0_42, %c0_43], %126 {strides = array<i32>} : memref<8x8x32xf32, #tpu.memory_space<vmem>>, vector<1x8x16xf32>,
    %c6 = arith.constant 6 : index
    %c0_44 = arith.constant 0 : index
    %c16_45 = arith.constant 16 : index
    %127 = vector.load %arg12[%c6, %c0_44, %c16_45] : memref<8x8x32xf32, #tpu.memory_space<vmem>>, vector<1x8x16xf32>
    %128 = vector.shape_cast %127 : vector<1x8x16xf32> to vector<8x16xf32>
    %129 = vector.shape_cast %123 : vector<8x16xf32> to vector<1x8x16xf32>
    tpu.vector_store %arg12[%c6, %c0_44, %c16_45], %129 {strides = array<i32>} : memref<8x8x32xf32, #tpu.memory_space<vmem>>, vector<1x8x16xf32>,
    %c16_46 = arith.constant 16 : index
    %c0_47 = arith.constant 0 : index
    %130 = vector.load %arg11[%c16_46, %c0_47] : memref<64x768xf32, #tpu.memory_space<vmem>>, vector<8x384xf32>
    %c40 = arith.constant 40 : index
    %c384_48 = arith.constant 384 : index
    %131 = vector.load %arg11[%c40, %c384_48] : memref<64x768xf32, #tpu.memory_space<vmem>>, vector<8x384xf32>
    %cst_49 = arith.constant dense<0.000000e+00> : vector<8x384xf32>
    %132 = tpu.matmul %102, %9, %cst_49 {dimension_numbers = #tpu.dot_dimension_numbers<[1], [0], [0], [1], [0, 0, 1, 1], [], []>} : vector<8x16xf32>, vector<16x384xf32>, vector<8x384xf32> -> vector<8x384xf32>
    %133 = vector.broadcast %13 : vector<1x384xf32> to vector<8x384xf32>
    %134 = arith.addf %132, %133 : vector<8x384xf32>
    %cst_50 = arith.constant dense<0.000000e+00> : vector<8x384xf32>
    %135 = tpu.matmul %123, %11, %cst_50 {dimension_numbers = #tpu.dot_dimension_numbers<[1], [0], [0], [1], [0, 0, 1, 1], [], []>} : vector<8x16xf32>, vector<16x384xf32>, vector<8x384xf32> -> vector<8x384xf32>
    %136 = vector.broadcast %15 : vector<1x384xf32> to vector<8x384xf32>
    %137 = arith.addf %135, %136 : vector<8x384xf32>
    %138 = vector.extract_strided_slice %130 {offsets = [0, 0], sizes = [8, 256], strides = [1, 1]} : vector<8x384xf32> to vector<8x256xf32>
    %139 = vector.extract_strided_slice %134 {offsets = [0, 0], sizes = [8, 256], strides = [1, 1]} : vector<8x384xf32> to vector<8x256xf32>
    %140 = arith.addf %138, %139 : vector<8x256xf32>
    %141 = arith.negf %140 : vector<8x256xf32>
    %142 = math.exp %141 : vector<8x256xf32>
    %cst_51 = arith.constant 1.000000e+00 : f32
    %143 = vector.broadcast %cst_51 : f32 to vector<8x256xf32>
    %144 = arith.addf %143, %142 : vector<8x256xf32>
    %145 = arith.divf %143, %144 : vector<8x256xf32>
    %146 = vector.extract_strided_slice %130 {offsets = [0, 256], sizes = [8, 128], strides = [1, 1]} : vector<8x384xf32> to vector<8x128xf32>
    %147 = vector.extract_strided_slice %145 {offsets = [0, 0], sizes = [8, 128], strides = [1, 1]} : vector<8x256xf32> to vector<8x128xf32>
    %148 = vector.extract_strided_slice %134 {offsets = [0, 256], sizes = [8, 128], strides = [1, 1]} : vector<8x384xf32> to vector<8x128xf32>
    %149 = arith.mulf %147, %148 : vector<8x128xf32>
    %150 = arith.addf %146, %149 : vector<8x128xf32>
    %151 = math.tanh %150 : vector<8x128xf32>
    %152 = vector.extract_strided_slice %145 {offsets = [0, 128], sizes = [8, 16], strides = [1, 1]} : vector<8x256xf32> to vector<8x16xf32>
    %cst_52 = arith.constant 1.000000e+00 : f32
    %153 = vector.broadcast %cst_52 : f32 to vector<8x16xf32>
    %154 = arith.subf %153, %152 : vector<8x16xf32>
    %155 = vector.extract_strided_slice %151 {offsets = [0, 0], sizes = [8, 16], strides = [1, 1]} : vector<8x128xf32> to vector<8x16xf32>
    %156 = arith.mulf %154, %155 : vector<8x16xf32>
    %157 = arith.mulf %152, %102 : vector<8x16xf32>
    %158 = arith.addf %156, %157 : vector<8x16xf32>
    %159 = vector.extract_strided_slice %131 {offsets = [0, 0], sizes = [8, 256], strides = [1, 1]} : vector<8x384xf32> to vector<8x256xf32>
    %160 = vector.extract_strided_slice %137 {offsets = [0, 0], sizes = [8, 256], strides = [1, 1]} : vector<8x384xf32> to vector<8x256xf32>
    %161 = arith.addf %159, %160 : vector<8x256xf32>
    %162 = arith.negf %161 : vector<8x256xf32>
    %163 = math.exp %162 : vector<8x256xf32>
    %cst_53 = arith.constant 1.000000e+00 : f32
    %164 = vector.broadcast %cst_53 : f32 to vector<8x256xf32>
    %165 = arith.addf %164, %163 : vector<8x256xf32>
    %166 = arith.divf %164, %165 : vector<8x256xf32>
    %167 = vector.extract_strided_slice %131 {offsets = [0, 256], sizes = [8, 128], strides = [1, 1]} : vector<8x384xf32> to vector<8x128xf32>
    %168 = vector.extract_strided_slice %166 {offsets = [0, 0], sizes = [8, 128], strides = [1, 1]} : vector<8x256xf32> to vector<8x128xf32>
    %169 = vector.extract_strided_slice %137 {offsets = [0, 256], sizes = [8, 128], strides = [1, 1]} : vector<8x384xf32> to vector<8x128xf32>
    %170 = arith.mulf %168, %169 : vector<8x128xf32>
    %171 = arith.addf %167, %170 : vector<8x128xf32>
    %172 = math.tanh %171 : vector<8x128xf32>
    %173 = vector.extract_strided_slice %166 {offsets = [0, 128], sizes = [8, 16], strides = [1, 1]} : vector<8x256xf32> to vector<8x16xf32>
    %cst_54 = arith.constant 1.000000e+00 : f32
    %174 = vector.broadcast %cst_54 : f32 to vector<8x16xf32>
    %175 = arith.subf %174, %173 : vector<8x16xf32>
    %176 = vector.extract_strided_slice %172 {offsets = [0, 0], sizes = [8, 16], strides = [1, 1]} : vector<8x128xf32> to vector<8x16xf32>
    %177 = arith.mulf %175, %176 : vector<8x16xf32>
    %178 = arith.mulf %173, %123 : vector<8x16xf32>
    %179 = arith.addf %177, %178 : vector<8x16xf32>
    %c2 = arith.constant 2 : index
    %c0_55 = arith.constant 0 : index
    %c0_56 = arith.constant 0 : index
    %180 = vector.load %arg12[%c2, %c0_55, %c0_56] : memref<8x8x32xf32, #tpu.memory_space<vmem>>, vector<1x8x16xf32>
    %181 = vector.shape_cast %180 : vector<1x8x16xf32> to vector<8x16xf32>
    %182 = vector.shape_cast %158 : vector<8x16xf32> to vector<1x8x16xf32>
    tpu.vector_store %arg12[%c2, %c0_55, %c0_56], %182 {strides = array<i32>} : memref<8x8x32xf32, #tpu.memory_space<vmem>>, vector<1x8x16xf32>,
    %c5 = arith.constant 5 : index
    %c0_57 = arith.constant 0 : index
    %c16_58 = arith.constant 16 : index
    %183 = vector.load %arg12[%c5, %c0_57, %c16_58] : memref<8x8x32xf32, #tpu.memory_space<vmem>>, vector<1x8x16xf32>
    %184 = vector.shape_cast %183 : vector<1x8x16xf32> to vector<8x16xf32>
    %185 = vector.shape_cast %179 : vector<8x16xf32> to vector<1x8x16xf32>
    tpu.vector_store %arg12[%c5, %c0_57, %c16_58], %185 {strides = array<i32>} : memref<8x8x32xf32, #tpu.memory_space<vmem>>, vector<1x8x16xf32>,
    %c24 = arith.constant 24 : index
    %c0_59 = arith.constant 0 : index
    %186 = vector.load %arg11[%c24, %c0_59] : memref<64x768xf32, #tpu.memory_space<vmem>>, vector<8x384xf32>
    %c32 = arith.constant 32 : index
    %c384_60 = arith.constant 384 : index
    %187 = vector.load %arg11[%c32, %c384_60] : memref<64x768xf32, #tpu.memory_space<vmem>>, vector<8x384xf32>
    %cst_61 = arith.constant dense<0.000000e+00> : vector<8x384xf32>
    %188 = tpu.matmul %158, %9, %cst_61 {dimension_numbers = #tpu.dot_dimension_numbers<[1], [0], [0], [1], [0, 0, 1, 1], [], []>} : vector<8x16xf32>, vector<16x384xf32>, vector<8x384xf32> -> vector<8x384xf32>
    %189 = vector.broadcast %13 : vector<1x384xf32> to vector<8x384xf32>
    %190 = arith.addf %188, %189 : vector<8x384xf32>
    %cst_62 = arith.constant dense<0.000000e+00> : vector<8x384xf32>
    %191 = tpu.matmul %179, %11, %cst_62 {dimension_numbers = #tpu.dot_dimension_numbers<[1], [0], [0], [1], [0, 0, 1, 1], [], []>} : vector<8x16xf32>, vector<16x384xf32>, vector<8x384xf32> -> vector<8x384xf32>
    %192 = vector.broadcast %15 : vector<1x384xf32> to vector<8x384xf32>
    %193 = arith.addf %191, %192 : vector<8x384xf32>
    %194 = vector.extract_strided_slice %186 {offsets = [0, 0], sizes = [8, 256], strides = [1, 1]} : vector<8x384xf32> to vector<8x256xf32>
    %195 = vector.extract_strided_slice %190 {offsets = [0, 0], sizes = [8, 256], strides = [1, 1]} : vector<8x384xf32> to vector<8x256xf32>
    %196 = arith.addf %194, %195 : vector<8x256xf32>
    %197 = arith.negf %196 : vector<8x256xf32>
    %198 = math.exp %197 : vector<8x256xf32>
    %cst_63 = arith.constant 1.000000e+00 : f32
    %199 = vector.broadcast %cst_63 : f32 to vector<8x256xf32>
    %200 = arith.addf %199, %198 : vector<8x256xf32>
    %201 = arith.divf %199, %200 : vector<8x256xf32>
    %202 = vector.extract_strided_slice %186 {offsets = [0, 256], sizes = [8, 128], strides = [1, 1]} : vector<8x384xf32> to vector<8x128xf32>
    %203 = vector.extract_strided_slice %201 {offsets = [0, 0], sizes = [8, 128], strides = [1, 1]} : vector<8x256xf32> to vector<8x128xf32>
    %204 = vector.extract_strided_slice %190 {offsets = [0, 256], sizes = [8, 128], strides = [1, 1]} : vector<8x384xf32> to vector<8x128xf32>
    %205 = arith.mulf %203, %204 : vector<8x128xf32>
    %206 = arith.addf %202, %205 : vector<8x128xf32>
    %207 = math.tanh %206 : vector<8x128xf32>
    %208 = vector.extract_strided_slice %201 {offsets = [0, 128], sizes = [8, 16], strides = [1, 1]} : vector<8x256xf32> to vector<8x16xf32>
    %cst_64 = arith.constant 1.000000e+00 : f32
    %209 = vector.broadcast %cst_64 : f32 to vector<8x16xf32>
    %210 = arith.subf %209, %208 : vector<8x16xf32>
    %211 = vector.extract_strided_slice %207 {offsets = [0, 0], sizes = [8, 16], strides = [1, 1]} : vector<8x128xf32> to vector<8x16xf32>
    %212 = arith.mulf %210, %211 : vector<8x16xf32>
    %213 = arith.mulf %208, %158 : vector<8x16xf32>
    %214 = arith.addf %212, %213 : vector<8x16xf32>
    %215 = vector.extract_strided_slice %187 {offsets = [0, 0], sizes = [8, 256], strides = [1, 1]} : vector<8x384xf32> to vector<8x256xf32>
    %216 = vector.extract_strided_slice %193 {offsets = [0, 0], sizes = [8, 256], strides = [1, 1]} : vector<8x384xf32> to vector<8x256xf32>
    %217 = arith.addf %215, %216 : vector<8x256xf32>
    %218 = arith.negf %217 : vector<8x256xf32>
    %219 = math.exp %218 : vector<8x256xf32>
    %cst_65 = arith.constant 1.000000e+00 : f32
    %220 = vector.broadcast %cst_65 : f32 to vector<8x256xf32>
    %221 = arith.addf %220, %219 : vector<8x256xf32>
    %222 = arith.divf %220, %221 : vector<8x256xf32>
    %223 = vector.extract_strided_slice %187 {offsets = [0, 256], sizes = [8, 128], strides = [1, 1]} : vector<8x384xf32> to vector<8x128xf32>
    %224 = vector.extract_strided_slice %222 {offsets = [0, 0], sizes = [8, 128], strides = [1, 1]} : vector<8x256xf32> to vector<8x128xf32>
    %225 = vector.extract_strided_slice %193 {offsets = [0, 256], sizes = [8, 128], strides = [1, 1]} : vector<8x384xf32> to vector<8x128xf32>
    %226 = arith.mulf %224, %225 : vector<8x128xf32>
    %227 = arith.addf %223, %226 : vector<8x128xf32>
    %228 = math.tanh %227 : vector<8x128xf32>
    %229 = vector.extract_strided_slice %222 {offsets = [0, 128], sizes = [8, 16], strides = [1, 1]} : vector<8x256xf32> to vector<8x16xf32>
    %cst_66 = arith.constant 1.000000e+00 : f32
    %230 = vector.broadcast %cst_66 : f32 to vector<8x16xf32>
    %231 = arith.subf %230, %229 : vector<8x16xf32>
    %232 = vector.extract_strided_slice %228 {offsets = [0, 0], sizes = [8, 16], strides = [1, 1]} : vector<8x128xf32> to vector<8x16xf32>
    %233 = arith.mulf %231, %232 : vector<8x16xf32>
    %234 = arith.mulf %229, %179 : vector<8x16xf32>
    %235 = arith.addf %233, %234 : vector<8x16xf32>
    %c3 = arith.constant 3 : index
    %c0_67 = arith.constant 0 : index
    %c0_68 = arith.constant 0 : index
    %236 = vector.load %arg12[%c3, %c0_67, %c0_68] : memref<8x8x32xf32, #tpu.memory_space<vmem>>, vector<1x8x16xf32>
    %237 = vector.shape_cast %236 : vector<1x8x16xf32> to vector<8x16xf32>
    %238 = vector.shape_cast %214 : vector<8x16xf32> to vector<1x8x16xf32>
    tpu.vector_store %arg12[%c3, %c0_67, %c0_68], %238 {strides = array<i32>} : memref<8x8x32xf32, #tpu.memory_space<vmem>>, vector<1x8x16xf32>,
    %c4 = arith.constant 4 : index
    %c0_69 = arith.constant 0 : index
    %c16_70 = arith.constant 16 : index
    %239 = vector.load %arg12[%c4, %c0_69, %c16_70] : memref<8x8x32xf32, #tpu.memory_space<vmem>>, vector<1x8x16xf32>
    %240 = vector.shape_cast %239 : vector<1x8x16xf32> to vector<8x16xf32>
    %241 = vector.shape_cast %235 : vector<8x16xf32> to vector<1x8x16xf32>
    tpu.vector_store %arg12[%c4, %c0_69, %c16_70], %241 {strides = array<i32>} : memref<8x8x32xf32, #tpu.memory_space<vmem>>, vector<1x8x16xf32>,
    %c32_71 = arith.constant 32 : index
    %c0_72 = arith.constant 0 : index
    %242 = vector.load %arg11[%c32_71, %c0_72] : memref<64x768xf32, #tpu.memory_space<vmem>>, vector<8x384xf32>
    %c24_73 = arith.constant 24 : index
    %c384_74 = arith.constant 384 : index
    %243 = vector.load %arg11[%c24_73, %c384_74] : memref<64x768xf32, #tpu.memory_space<vmem>>, vector<8x384xf32>
    %cst_75 = arith.constant dense<0.000000e+00> : vector<8x384xf32>
    %244 = tpu.matmul %214, %9, %cst_75 {dimension_numbers = #tpu.dot_dimension_numbers<[1], [0], [0], [1], [0, 0, 1, 1], [], []>} : vector<8x16xf32>, vector<16x384xf32>, vector<8x384xf32> -> vector<8x384xf32>
    %245 = vector.broadcast %13 : vector<1x384xf32> to vector<8x384xf32>
    %246 = arith.addf %244, %245 : vector<8x384xf32>
    %cst_76 = arith.constant dense<0.000000e+00> : vector<8x384xf32>
    %247 = tpu.matmul %235, %11, %cst_76 {dimension_numbers = #tpu.dot_dimension_numbers<[1], [0], [0], [1], [0, 0, 1, 1], [], []>} : vector<8x16xf32>, vector<16x384xf32>, vector<8x384xf32> -> vector<8x384xf32>
    %248 = vector.broadcast %15 : vector<1x384xf32> to vector<8x384xf32>
    %249 = arith.addf %247, %248 : vector<8x384xf32>
    %250 = vector.extract_strided_slice %242 {offsets = [0, 0], sizes = [8, 256], strides = [1, 1]} : vector<8x384xf32> to vector<8x256xf32>
    %251 = vector.extract_strided_slice %246 {offsets = [0, 0], sizes = [8, 256], strides = [1, 1]} : vector<8x384xf32> to vector<8x256xf32>
    %252 = arith.addf %250, %251 : vector<8x256xf32>
    %253 = arith.negf %252 : vector<8x256xf32>
    %254 = math.exp %253 : vector<8x256xf32>
    %cst_77 = arith.constant 1.000000e+00 : f32
    %255 = vector.broadcast %cst_77 : f32 to vector<8x256xf32>
    %256 = arith.addf %255, %254 : vector<8x256xf32>
    %257 = arith.divf %255, %256 : vector<8x256xf32>
    %258 = vector.extract_strided_slice %242 {offsets = [0, 256], sizes = [8, 128], strides = [1, 1]} : vector<8x384xf32> to vector<8x128xf32>
    %259 = vector.extract_strided_slice %257 {offsets = [0, 0], sizes = [8, 128], strides = [1, 1]} : vector<8x256xf32> to vector<8x128xf32>
    %260 = vector.extract_strided_slice %246 {offsets = [0, 256], sizes = [8, 128], strides = [1, 1]} : vector<8x384xf32> to vector<8x128xf32>
    %261 = arith.mulf %259, %260 : vector<8x128xf32>
    %262 = arith.addf %258, %261 : vector<8x128xf32>
    %263 = math.tanh %262 : vector<8x128xf32>
    %264 = vector.extract_strided_slice %257 {offsets = [0, 128], sizes = [8, 16], strides = [1, 1]} : vector<8x256xf32> to vector<8x16xf32>
    %cst_78 = arith.constant 1.000000e+00 : f32
    %265 = vector.broadcast %cst_78 : f32 to vector<8x16xf32>
    %266 = arith.subf %265, %264 : vector<8x16xf32>
    %267 = vector.extract_strided_slice %263 {offsets = [0, 0], sizes = [8, 16], strides = [1, 1]} : vector<8x128xf32> to vector<8x16xf32>
    %268 = arith.mulf %266, %267 : vector<8x16xf32>
    %269 = arith.mulf %264, %214 : vector<8x16xf32>
    %270 = arith.addf %268, %269 : vector<8x16xf32>
    %271 = vector.extract_strided_slice %243 {offsets = [0, 0], sizes = [8, 256], strides = [1, 1]} : vector<8x384xf32> to vector<8x256xf32>
    %272 = vector.extract_strided_slice %249 {offsets = [0, 0], sizes = [8, 256], strides = [1, 1]} : vector<8x384xf32> to vector<8x256xf32>
    %273 = arith.addf %271, %272 : vector<8x256xf32>
    %274 = arith.negf %273 : vector<8x256xf32>
    %275 = math.exp %274 : vector<8x256xf32>
    %cst_79 = arith.constant 1.000000e+00 : f32
    %276 = vector.broadcast %cst_79 : f32 to vector<8x256xf32>
    %277 = arith.addf %276, %275 : vector<8x256xf32>
    %278 = arith.divf %276, %277 : vector<8x256xf32>
    %279 = vector.extract_strided_slice %243 {offsets = [0, 256], sizes = [8, 128], strides = [1, 1]} : vector<8x384xf32> to vector<8x128xf32>
    %280 = vector.extract_strided_slice %278 {offsets = [0, 0], sizes = [8, 128], strides = [1, 1]} : vector<8x256xf32> to vector<8x128xf32>
    %281 = vector.extract_strided_slice %249 {offsets = [0, 256], sizes = [8, 128], strides = [1, 1]} : vector<8x384xf32> to vector<8x128xf32>
    %282 = arith.mulf %280, %281 : vector<8x128xf32>
    %283 = arith.addf %279, %282 : vector<8x128xf32>
    %284 = math.tanh %283 : vector<8x128xf32>
    %285 = vector.extract_strided_slice %278 {offsets = [0, 128], sizes = [8, 16], strides = [1, 1]} : vector<8x256xf32> to vector<8x16xf32>
    %cst_80 = arith.constant 1.000000e+00 : f32
    %286 = vector.broadcast %cst_80 : f32 to vector<8x16xf32>
    %287 = arith.subf %286, %285 : vector<8x16xf32>
    %288 = vector.extract_strided_slice %284 {offsets = [0, 0], sizes = [8, 16], strides = [1, 1]} : vector<8x128xf32> to vector<8x16xf32>
    %289 = arith.mulf %287, %288 : vector<8x16xf32>
    %290 = arith.mulf %285, %235 : vector<8x16xf32>
    %291 = arith.addf %289, %290 : vector<8x16xf32>
    %c4_81 = arith.constant 4 : index
    %c0_82 = arith.constant 0 : index
    %c0_83 = arith.constant 0 : index
    %292 = vector.load %arg12[%c4_81, %c0_82, %c0_83] : memref<8x8x32xf32, #tpu.memory_space<vmem>>, vector<1x8x16xf32>
    %293 = vector.shape_cast %292 : vector<1x8x16xf32> to vector<8x16xf32>
    %294 = vector.shape_cast %270 : vector<8x16xf32> to vector<1x8x16xf32>
    tpu.vector_store %arg12[%c4_81, %c0_82, %c0_83], %294 {strides = array<i32>} : memref<8x8x32xf32, #tpu.memory_space<vmem>>, vector<1x8x16xf32>,
    %c3_84 = arith.constant 3 : index
    %c0_85 = arith.constant 0 : index
    %c16_86 = arith.constant 16 : index
    %295 = vector.load %arg12[%c3_84, %c0_85, %c16_86] : memref<8x8x32xf32, #tpu.memory_space<vmem>>, vector<1x8x16xf32>
    %296 = vector.shape_cast %295 : vector<1x8x16xf32> to vector<8x16xf32>
    %297 = vector.shape_cast %291 : vector<8x16xf32> to vector<1x8x16xf32>
    tpu.vector_store %arg12[%c3_84, %c0_85, %c16_86], %297 {strides = array<i32>} : memref<8x8x32xf32, #tpu.memory_space<vmem>>, vector<1x8x16xf32>,
    %c40_87 = arith.constant 40 : index
    %c0_88 = arith.constant 0 : index
    %298 = vector.load %arg11[%c40_87, %c0_88] : memref<64x768xf32, #tpu.memory_space<vmem>>, vector<8x384xf32>
    %c16_89 = arith.constant 16 : index
    %c384_90 = arith.constant 384 : index
    %299 = vector.load %arg11[%c16_89, %c384_90] : memref<64x768xf32, #tpu.memory_space<vmem>>, vector<8x384xf32>
    %cst_91 = arith.constant dense<0.000000e+00> : vector<8x384xf32>
    %300 = tpu.matmul %270, %9, %cst_91 {dimension_numbers = #tpu.dot_dimension_numbers<[1], [0], [0], [1], [0, 0, 1, 1], [], []>} : vector<8x16xf32>, vector<16x384xf32>, vector<8x384xf32> -> vector<8x384xf32>
    %301 = vector.broadcast %13 : vector<1x384xf32> to vector<8x384xf32>
    %302 = arith.addf %300, %301 : vector<8x384xf32>
    %cst_92 = arith.constant dense<0.000000e+00> : vector<8x384xf32>
    %303 = tpu.matmul %291, %11, %cst_92 {dimension_numbers = #tpu.dot_dimension_numbers<[1], [0], [0], [1], [0, 0, 1, 1], [], []>} : vector<8x16xf32>, vector<16x384xf32>, vector<8x384xf32> -> vector<8x384xf32>
    %304 = vector.broadcast %15 : vector<1x384xf32> to vector<8x384xf32>
    %305 = arith.addf %303, %304 : vector<8x384xf32>
    %306 = vector.extract_strided_slice %298 {offsets = [0, 0], sizes = [8, 256], strides = [1, 1]} : vector<8x384xf32> to vector<8x256xf32>
    %307 = vector.extract_strided_slice %302 {offsets = [0, 0], sizes = [8, 256], strides = [1, 1]} : vector<8x384xf32> to vector<8x256xf32>
    %308 = arith.addf %306, %307 : vector<8x256xf32>
    %309 = arith.negf %308 : vector<8x256xf32>
    %310 = math.exp %309 : vector<8x256xf32>
    %cst_93 = arith.constant 1.000000e+00 : f32
    %311 = vector.broadcast %cst_93 : f32 to vector<8x256xf32>
    %312 = arith.addf %311, %310 : vector<8x256xf32>
    %313 = arith.divf %311, %312 : vector<8x256xf32>
    %314 = vector.extract_strided_slice %298 {offsets = [0, 256], sizes = [8, 128], strides = [1, 1]} : vector<8x384xf32> to vector<8x128xf32>
    %315 = vector.extract_strided_slice %313 {offsets = [0, 0], sizes = [8, 128], strides = [1, 1]} : vector<8x256xf32> to vector<8x128xf32>
    %316 = vector.extract_strided_slice %302 {offsets = [0, 256], sizes = [8, 128], strides = [1, 1]} : vector<8x384xf32> to vector<8x128xf32>
    %317 = arith.mulf %315, %316 : vector<8x128xf32>
    %318 = arith.addf %314, %317 : vector<8x128xf32>
    %319 = math.tanh %318 : vector<8x128xf32>
    %320 = vector.extract_strided_slice %313 {offsets = [0, 128], sizes = [8, 16], strides = [1, 1]} : vector<8x256xf32> to vector<8x16xf32>
    %cst_94 = arith.constant 1.000000e+00 : f32
    %321 = vector.broadcast %cst_94 : f32 to vector<8x16xf32>
    %322 = arith.subf %321, %320 : vector<8x16xf32>
    %323 = vector.extract_strided_slice %319 {offsets = [0, 0], sizes = [8, 16], strides = [1, 1]} : vector<8x128xf32> to vector<8x16xf32>
    %324 = arith.mulf %322, %323 : vector<8x16xf32>
    %325 = arith.mulf %320, %270 : vector<8x16xf32>
    %326 = arith.addf %324, %325 : vector<8x16xf32>
    %327 = vector.extract_strided_slice %299 {offsets = [0, 0], sizes = [8, 256], strides = [1, 1]} : vector<8x384xf32> to vector<8x256xf32>
    %328 = vector.extract_strided_slice %305 {offsets = [0, 0], sizes = [8, 256], strides = [1, 1]} : vector<8x384xf32> to vector<8x256xf32>
    %329 = arith.addf %327, %328 : vector<8x256xf32>
    %330 = arith.negf %329 : vector<8x256xf32>
    %331 = math.exp %330 : vector<8x256xf32>
    %cst_95 = arith.constant 1.000000e+00 : f32
    %332 = vector.broadcast %cst_95 : f32 to vector<8x256xf32>
    %333 = arith.addf %332, %331 : vector<8x256xf32>
    %334 = arith.divf %332, %333 : vector<8x256xf32>
    %335 = vector.extract_strided_slice %299 {offsets = [0, 256], sizes = [8, 128], strides = [1, 1]} : vector<8x384xf32> to vector<8x128xf32>
    %336 = vector.extract_strided_slice %334 {offsets = [0, 0], sizes = [8, 128], strides = [1, 1]} : vector<8x256xf32> to vector<8x128xf32>
    %337 = vector.extract_strided_slice %305 {offsets = [0, 256], sizes = [8, 128], strides = [1, 1]} : vector<8x384xf32> to vector<8x128xf32>
    %338 = arith.mulf %336, %337 : vector<8x128xf32>
    %339 = arith.addf %335, %338 : vector<8x128xf32>
    %340 = math.tanh %339 : vector<8x128xf32>
    %341 = vector.extract_strided_slice %334 {offsets = [0, 128], sizes = [8, 16], strides = [1, 1]} : vector<8x256xf32> to vector<8x16xf32>
    %cst_96 = arith.constant 1.000000e+00 : f32
    %342 = vector.broadcast %cst_96 : f32 to vector<8x16xf32>
    %343 = arith.subf %342, %341 : vector<8x16xf32>
    %344 = vector.extract_strided_slice %340 {offsets = [0, 0], sizes = [8, 16], strides = [1, 1]} : vector<8x128xf32> to vector<8x16xf32>
    %345 = arith.mulf %343, %344 : vector<8x16xf32>
    %346 = arith.mulf %341, %291 : vector<8x16xf32>
    %347 = arith.addf %345, %346 : vector<8x16xf32>
    %c5_97 = arith.constant 5 : index
    %c0_98 = arith.constant 0 : index
    %c0_99 = arith.constant 0 : index
    %348 = vector.load %arg12[%c5_97, %c0_98, %c0_99] : memref<8x8x32xf32, #tpu.memory_space<vmem>>, vector<1x8x16xf32>
    %349 = vector.shape_cast %348 : vector<1x8x16xf32> to vector<8x16xf32>
    %350 = vector.shape_cast %326 : vector<8x16xf32> to vector<1x8x16xf32>
    tpu.vector_store %arg12[%c5_97, %c0_98, %c0_99], %350 {strides = array<i32>} : memref<8x8x32xf32, #tpu.memory_space<vmem>>, vector<1x8x16xf32>,
    %c2_100 = arith.constant 2 : index
    %c0_101 = arith.constant 0 : index
    %c16_102 = arith.constant 16 : index
    %351 = vector.load %arg12[%c2_100, %c0_101, %c16_102] : memref<8x8x32xf32, #tpu.memory_space<vmem>>, vector<1x8x16xf32>
    %352 = vector.shape_cast %351 : vector<1x8x16xf32> to vector<8x16xf32>
    %353 = vector.shape_cast %347 : vector<8x16xf32> to vector<1x8x16xf32>
    tpu.vector_store %arg12[%c2_100, %c0_101, %c16_102], %353 {strides = array<i32>} : memref<8x8x32xf32, #tpu.memory_space<vmem>>, vector<1x8x16xf32>,
    %c48_103 = arith.constant 48 : index
    %c0_104 = arith.constant 0 : index
    %354 = vector.load %arg11[%c48_103, %c0_104] : memref<64x768xf32, #tpu.memory_space<vmem>>, vector<8x384xf32>
    %c8_105 = arith.constant 8 : index
    %c384_106 = arith.constant 384 : index
    %355 = vector.load %arg11[%c8_105, %c384_106] : memref<64x768xf32, #tpu.memory_space<vmem>>, vector<8x384xf32>
    %cst_107 = arith.constant dense<0.000000e+00> : vector<8x384xf32>
    %356 = tpu.matmul %326, %9, %cst_107 {dimension_numbers = #tpu.dot_dimension_numbers<[1], [0], [0], [1], [0, 0, 1, 1], [], []>} : vector<8x16xf32>, vector<16x384xf32>, vector<8x384xf32> -> vector<8x384xf32>
    %357 = vector.broadcast %13 : vector<1x384xf32> to vector<8x384xf32>
    %358 = arith.addf %356, %357 : vector<8x384xf32>
    %cst_108 = arith.constant dense<0.000000e+00> : vector<8x384xf32>
    %359 = tpu.matmul %347, %11, %cst_108 {dimension_numbers = #tpu.dot_dimension_numbers<[1], [0], [0], [1], [0, 0, 1, 1], [], []>} : vector<8x16xf32>, vector<16x384xf32>, vector<8x384xf32> -> vector<8x384xf32>
    %360 = vector.broadcast %15 : vector<1x384xf32> to vector<8x384xf32>
    %361 = arith.addf %359, %360 : vector<8x384xf32>
    %362 = vector.extract_strided_slice %354 {offsets = [0, 0], sizes = [8, 256], strides = [1, 1]} : vector<8x384xf32> to vector<8x256xf32>
    %363 = vector.extract_strided_slice %358 {offsets = [0, 0], sizes = [8, 256], strides = [1, 1]} : vector<8x384xf32> to vector<8x256xf32>
    %364 = arith.addf %362, %363 : vector<8x256xf32>
    %365 = arith.negf %364 : vector<8x256xf32>
    %366 = math.exp %365 : vector<8x256xf32>
    %cst_109 = arith.constant 1.000000e+00 : f32
    %367 = vector.broadcast %cst_109 : f32 to vector<8x256xf32>
    %368 = arith.addf %367, %366 : vector<8x256xf32>
    %369 = arith.divf %367, %368 : vector<8x256xf32>
    %370 = vector.extract_strided_slice %354 {offsets = [0, 256], sizes = [8, 128], strides = [1, 1]} : vector<8x384xf32> to vector<8x128xf32>
    %371 = vector.extract_strided_slice %369 {offsets = [0, 0], sizes = [8, 128], strides = [1, 1]} : vector<8x256xf32> to vector<8x128xf32>
    %372 = vector.extract_strided_slice %358 {offsets = [0, 256], sizes = [8, 128], strides = [1, 1]} : vector<8x384xf32> to vector<8x128xf32>
    %373 = arith.mulf %371, %372 : vector<8x128xf32>
    %374 = arith.addf %370, %373 : vector<8x128xf32>
    %375 = math.tanh %374 : vector<8x128xf32>
    %376 = vector.extract_strided_slice %369 {offsets = [0, 128], sizes = [8, 16], strides = [1, 1]} : vector<8x256xf32> to vector<8x16xf32>
    %cst_110 = arith.constant 1.000000e+00 : f32
    %377 = vector.broadcast %cst_110 : f32 to vector<8x16xf32>
    %378 = arith.subf %377, %376 : vector<8x16xf32>
    %379 = vector.extract_strided_slice %375 {offsets = [0, 0], sizes = [8, 16], strides = [1, 1]} : vector<8x128xf32> to vector<8x16xf32>
    %380 = arith.mulf %378, %379 : vector<8x16xf32>
    %381 = arith.mulf %376, %326 : vector<8x16xf32>
    %382 = arith.addf %380, %381 : vector<8x16xf32>
    %383 = vector.extract_strided_slice %355 {offsets = [0, 0], sizes = [8, 256], strides = [1, 1]} : vector<8x384xf32> to vector<8x256xf32>
    %384 = vector.extract_strided_slice %361 {offsets = [0, 0], sizes = [8, 256], strides = [1, 1]} : vector<8x384xf32> to vector<8x256xf32>
    %385 = arith.addf %383, %384 : vector<8x256xf32>
    %386 = arith.negf %385 : vector<8x256xf32>
    %387 = math.exp %386 : vector<8x256xf32>
    %cst_111 = arith.constant 1.000000e+00 : f32
    %388 = vector.broadcast %cst_111 : f32 to vector<8x256xf32>
    %389 = arith.addf %388, %387 : vector<8x256xf32>
    %390 = arith.divf %388, %389 : vector<8x256xf32>
    %391 = vector.extract_strided_slice %355 {offsets = [0, 256], sizes = [8, 128], strides = [1, 1]} : vector<8x384xf32> to vector<8x128xf32>
    %392 = vector.extract_strided_slice %390 {offsets = [0, 0], sizes = [8, 128], strides = [1, 1]} : vector<8x256xf32> to vector<8x128xf32>
    %393 = vector.extract_strided_slice %361 {offsets = [0, 256], sizes = [8, 128], strides = [1, 1]} : vector<8x384xf32> to vector<8x128xf32>
    %394 = arith.mulf %392, %393 : vector<8x128xf32>
    %395 = arith.addf %391, %394 : vector<8x128xf32>
    %396 = math.tanh %395 : vector<8x128xf32>
    %397 = vector.extract_strided_slice %390 {offsets = [0, 128], sizes = [8, 16], strides = [1, 1]} : vector<8x256xf32> to vector<8x16xf32>
    %cst_112 = arith.constant 1.000000e+00 : f32
    %398 = vector.broadcast %cst_112 : f32 to vector<8x16xf32>
    %399 = arith.subf %398, %397 : vector<8x16xf32>
    %400 = vector.extract_strided_slice %396 {offsets = [0, 0], sizes = [8, 16], strides = [1, 1]} : vector<8x128xf32> to vector<8x16xf32>
    %401 = arith.mulf %399, %400 : vector<8x16xf32>
    %402 = arith.mulf %397, %347 : vector<8x16xf32>
    %403 = arith.addf %401, %402 : vector<8x16xf32>
    %c6_113 = arith.constant 6 : index
    %c0_114 = arith.constant 0 : index
    %c0_115 = arith.constant 0 : index
    %404 = vector.load %arg12[%c6_113, %c0_114, %c0_115] : memref<8x8x32xf32, #tpu.memory_space<vmem>>, vector<1x8x16xf32>
    %405 = vector.shape_cast %404 : vector<1x8x16xf32> to vector<8x16xf32>
    %406 = vector.shape_cast %382 : vector<8x16xf32> to vector<1x8x16xf32>
    tpu.vector_store %arg12[%c6_113, %c0_114, %c0_115], %406 {strides = array<i32>} : memref<8x8x32xf32, #tpu.memory_space<vmem>>, vector<1x8x16xf32>,
    %c1_116 = arith.constant 1 : index
    %c0_117 = arith.constant 0 : index
    %c16_118 = arith.constant 16 : index
    %407 = vector.load %arg12[%c1_116, %c0_117, %c16_118] : memref<8x8x32xf32, #tpu.memory_space<vmem>>, vector<1x8x16xf32>
    %408 = vector.shape_cast %407 : vector<1x8x16xf32> to vector<8x16xf32>
    %409 = vector.shape_cast %403 : vector<8x16xf32> to vector<1x8x16xf32>
    tpu.vector_store %arg12[%c1_116, %c0_117, %c16_118], %409 {strides = array<i32>} : memref<8x8x32xf32, #tpu.memory_space<vmem>>, vector<1x8x16xf32>,
    %c56_119 = arith.constant 56 : index
    %c0_120 = arith.constant 0 : index
    %410 = vector.load %arg11[%c56_119, %c0_120] : memref<64x768xf32, #tpu.memory_space<vmem>>, vector<8x384xf32>
    %c0_121 = arith.constant 0 : index
    %c384_122 = arith.constant 384 : index
    %411 = vector.load %arg11[%c0_121, %c384_122] : memref<64x768xf32, #tpu.memory_space<vmem>>, vector<8x384xf32>
    %cst_123 = arith.constant dense<0.000000e+00> : vector<8x384xf32>
    %412 = tpu.matmul %382, %9, %cst_123 {dimension_numbers = #tpu.dot_dimension_numbers<[1], [0], [0], [1], [0, 0, 1, 1], [], []>} : vector<8x16xf32>, vector<16x384xf32>, vector<8x384xf32> -> vector<8x384xf32>
    %413 = vector.broadcast %13 : vector<1x384xf32> to vector<8x384xf32>
    %414 = arith.addf %412, %413 : vector<8x384xf32>
    %cst_124 = arith.constant dense<0.000000e+00> : vector<8x384xf32>
    %415 = tpu.matmul %403, %11, %cst_124 {dimension_numbers = #tpu.dot_dimension_numbers<[1], [0], [0], [1], [0, 0, 1, 1], [], []>} : vector<8x16xf32>, vector<16x384xf32>, vector<8x384xf32> -> vector<8x384xf32>
    %416 = vector.broadcast %15 : vector<1x384xf32> to vector<8x384xf32>
    %417 = arith.addf %415, %416 : vector<8x384xf32>
    %418 = vector.extract_strided_slice %410 {offsets = [0, 0], sizes = [8, 256], strides = [1, 1]} : vector<8x384xf32> to vector<8x256xf32>
    %419 = vector.extract_strided_slice %414 {offsets = [0, 0], sizes = [8, 256], strides = [1, 1]} : vector<8x384xf32> to vector<8x256xf32>
    %420 = arith.addf %418, %419 : vector<8x256xf32>
    %421 = arith.negf %420 : vector<8x256xf32>
    %422 = math.exp %421 : vector<8x256xf32>
    %cst_125 = arith.constant 1.000000e+00 : f32
    %423 = vector.broadcast %cst_125 : f32 to vector<8x256xf32>
    %424 = arith.addf %423, %422 : vector<8x256xf32>
    %425 = arith.divf %423, %424 : vector<8x256xf32>
    %426 = vector.extract_strided_slice %410 {offsets = [0, 256], sizes = [8, 128], strides = [1, 1]} : vector<8x384xf32> to vector<8x128xf32>
    %427 = vector.extract_strided_slice %425 {offsets = [0, 0], sizes = [8, 128], strides = [1, 1]} : vector<8x256xf32> to vector<8x128xf32>
    %428 = vector.extract_strided_slice %414 {offsets = [0, 256], sizes = [8, 128], strides = [1, 1]} : vector<8x384xf32> to vector<8x128xf32>
    %429 = arith.mulf %427, %428 : vector<8x128xf32>
    %430 = arith.addf %426, %429 : vector<8x128xf32>
    %431 = math.tanh %430 : vector<8x128xf32>
    %432 = vector.extract_strided_slice %425 {offsets = [0, 128], sizes = [8, 16], strides = [1, 1]} : vector<8x256xf32> to vector<8x16xf32>
    %cst_126 = arith.constant 1.000000e+00 : f32
    %433 = vector.broadcast %cst_126 : f32 to vector<8x16xf32>
    %434 = arith.subf %433, %432 : vector<8x16xf32>
    %435 = vector.extract_strided_slice %431 {offsets = [0, 0], sizes = [8, 16], strides = [1, 1]} : vector<8x128xf32> to vector<8x16xf32>
    %436 = arith.mulf %434, %435 : vector<8x16xf32>
    %437 = arith.mulf %432, %382 : vector<8x16xf32>
    %438 = arith.addf %436, %437 : vector<8x16xf32>
    %439 = vector.extract_strided_slice %411 {offsets = [0, 0], sizes = [8, 256], strides = [1, 1]} : vector<8x384xf32> to vector<8x256xf32>
    %440 = vector.extract_strided_slice %417 {offsets = [0, 0], sizes = [8, 256], strides = [1, 1]} : vector<8x384xf32> to vector<8x256xf32>
    %441 = arith.addf %439, %440 : vector<8x256xf32>
    %442 = arith.negf %441 : vector<8x256xf32>
    %443 = math.exp %442 : vector<8x256xf32>
    %cst_127 = arith.constant 1.000000e+00 : f32
    %444 = vector.broadcast %cst_127 : f32 to vector<8x256xf32>
    %445 = arith.addf %444, %443 : vector<8x256xf32>
    %446 = arith.divf %444, %445 : vector<8x256xf32>
    %447 = vector.extract_strided_slice %411 {offsets = [0, 256], sizes = [8, 128], strides = [1, 1]} : vector<8x384xf32> to vector<8x128xf32>
    %448 = vector.extract_strided_slice %446 {offsets = [0, 0], sizes = [8, 128], strides = [1, 1]} : vector<8x256xf32> to vector<8x128xf32>
    %449 = vector.extract_strided_slice %417 {offsets = [0, 256], sizes = [8, 128], strides = [1, 1]} : vector<8x384xf32> to vector<8x128xf32>
    %450 = arith.mulf %448, %449 : vector<8x128xf32>
    %451 = arith.addf %447, %450 : vector<8x128xf32>
    %452 = math.tanh %451 : vector<8x128xf32>
    %453 = vector.extract_strided_slice %446 {offsets = [0, 128], sizes = [8, 16], strides = [1, 1]} : vector<8x256xf32> to vector<8x16xf32>
    %cst_128 = arith.constant 1.000000e+00 : f32
    %454 = vector.broadcast %cst_128 : f32 to vector<8x16xf32>
    %455 = arith.subf %454, %453 : vector<8x16xf32>
    %456 = vector.extract_strided_slice %452 {offsets = [0, 0], sizes = [8, 16], strides = [1, 1]} : vector<8x128xf32> to vector<8x16xf32>
    %457 = arith.mulf %455, %456 : vector<8x16xf32>
    %458 = arith.mulf %453, %403 : vector<8x16xf32>
    %459 = arith.addf %457, %458 : vector<8x16xf32>
    %c7_129 = arith.constant 7 : index
    %c0_130 = arith.constant 0 : index
    %c0_131 = arith.constant 0 : index
    %460 = vector.load %arg12[%c7_129, %c0_130, %c0_131] : memref<8x8x32xf32, #tpu.memory_space<vmem>>, vector<1x8x16xf32>
    %461 = vector.shape_cast %460 : vector<1x8x16xf32> to vector<8x16xf32>
    %462 = vector.shape_cast %438 : vector<8x16xf32> to vector<1x8x16xf32>
    tpu.vector_store %arg12[%c7_129, %c0_130, %c0_131], %462 {strides = array<i32>} : memref<8x8x32xf32, #tpu.memory_space<vmem>>, vector<1x8x16xf32>,
    %c0_132 = arith.constant 0 : index
    %c0_133 = arith.constant 0 : index
    %c16_134 = arith.constant 16 : index
    %463 = vector.load %arg12[%c0_132, %c0_133, %c16_134] : memref<8x8x32xf32, #tpu.memory_space<vmem>>, vector<1x8x16xf32>
    %464 = vector.shape_cast %463 : vector<1x8x16xf32> to vector<8x16xf32>
    %465 = vector.shape_cast %459 : vector<8x16xf32> to vector<1x8x16xf32>
    tpu.vector_store %arg12[%c0_132, %c0_133, %c16_134], %465 {strides = array<i32>} : memref<8x8x32xf32, #tpu.memory_space<vmem>>, vector<1x8x16xf32>,
    %c0_135 = arith.constant 0 : index
    %c0_136 = arith.constant 0 : index
    %c0_137 = arith.constant 0 : index
    %466 = vector.load %arg12[%c0_135, %c0_136, %c0_137] : memref<8x8x32xf32, #tpu.memory_space<vmem>>, vector<8x8x32xf32>
    %467 = vector.shape_cast %466 : vector<8x8x32xf32> to vector<64x32xf32>
    %c0_138 = arith.constant 0 : index
    %c0_139 = arith.constant 0 : index
    %468 = vector.load %arg6[%c0_138, %c0_139] : memref<32x768xf32, #tpu.memory_space<vmem>>, vector<32x768xf32>
    %cst_140 = arith.constant dense<0.000000e+00> : vector<64x768xf32>
    %469 = tpu.matmul %467, %468, %cst_140 {dimension_numbers = #tpu.dot_dimension_numbers<[1], [0], [0], [1], [0, 0, 1, 1], [], []>} : vector<64x32xf32>, vector<32x768xf32>, vector<64x768xf32> -> vector<64x768xf32>
    %c0_141 = arith.constant 0 : index
    %c0_142 = arith.constant 0 : index
    %470 = vector.load %arg7[%c0_141, %c0_142] : memref<1x768xf32, #tpu.memory_space<vmem>>, vector<1x768xf32>
    %471 = vector.broadcast %470 : vector<1x768xf32> to vector<64x768xf32>
    %472 = arith.addf %469, %471 : vector<64x768xf32>
    %c0_143 = arith.constant 0 : index
    %c0_144 = arith.constant 0 : index
    %473 = vector.load %arg11[%c0_143, %c0_144] : memref<64x768xf32, #tpu.memory_space<vmem>>, vector<64x768xf32>
    tpu.vector_store %arg11[%c0_143, %c0_144], %472 {strides = array<i32>} : memref<64x768xf32, #tpu.memory_space<vmem>>, vector<64x768xf32>,
    %c0_145 = arith.constant 0 : index
    %c0_146 = arith.constant 0 : index
    %c0_147 = arith.constant 0 : index
    %474 = vector.load %arg8[%c0_145, %c0_146, %c0_147] : memref<2x16x384xf32, #tpu.memory_space<vmem>>, vector<1x16x384xf32>
    %475 = vector.shape_cast %474 : vector<1x16x384xf32> to vector<16x384xf32>
    %c1_148 = arith.constant 1 : index
    %c0_149 = arith.constant 0 : index
    %c0_150 = arith.constant 0 : index
    %476 = vector.load %arg8[%c1_148, %c0_149, %c0_150] : memref<2x16x384xf32, #tpu.memory_space<vmem>>, vector<1x16x384xf32>
    %477 = vector.shape_cast %476 : vector<1x16x384xf32> to vector<16x384xf32>
    %c0_151 = arith.constant 0 : index
    %c0_152 = arith.constant 0 : index
    %c0_153 = arith.constant 0 : index
    %478 = vector.load %arg9[%c0_151, %c0_152, %c0_153] : memref<2x1x384xf32, #tpu.memory_space<vmem>>, vector<1x1x384xf32>
    %479 = vector.shape_cast %478 : vector<1x1x384xf32> to vector<1x384xf32>
    %c1_154 = arith.constant 1 : index
    %c0_155 = arith.constant 0 : index
    %c0_156 = arith.constant 0 : index
    %480 = vector.load %arg9[%c1_154, %c0_155, %c0_156] : memref<2x1x384xf32, #tpu.memory_space<vmem>>, vector<1x1x384xf32>
    %481 = vector.shape_cast %480 : vector<1x1x384xf32> to vector<1x384xf32>
    %cst_157 = arith.constant 0.000000e+00 : f32
    %482 = vector.broadcast %cst_157 : f32 to vector<8x16xf32>
    %cst_158 = arith.constant 0.000000e+00 : f32
    %483 = vector.broadcast %cst_158 : f32 to vector<8x16xf32>
    %c0_159 = arith.constant 0 : index
    %c0_160 = arith.constant 0 : index
    %484 = vector.load %arg11[%c0_159, %c0_160] : memref<64x768xf32, #tpu.memory_space<vmem>>, vector<8x384xf32>
    %c56_161 = arith.constant 56 : index
    %c384_162 = arith.constant 384 : index
    %485 = vector.load %arg11[%c56_161, %c384_162] : memref<64x768xf32, #tpu.memory_space<vmem>>, vector<8x384xf32>
    %cst_163 = arith.constant dense<0.000000e+00> : vector<8x384xf32>
    %486 = tpu.matmul %482, %475, %cst_163 {dimension_numbers = #tpu.dot_dimension_numbers<[1], [0], [0], [1], [0, 0, 1, 1], [], []>} : vector<8x16xf32>, vector<16x384xf32>, vector<8x384xf32> -> vector<8x384xf32>
    %487 = vector.broadcast %479 : vector<1x384xf32> to vector<8x384xf32>
    %488 = arith.addf %486, %487 : vector<8x384xf32>
    %cst_164 = arith.constant dense<0.000000e+00> : vector<8x384xf32>
    %489 = tpu.matmul %483, %477, %cst_164 {dimension_numbers = #tpu.dot_dimension_numbers<[1], [0], [0], [1], [0, 0, 1, 1], [], []>} : vector<8x16xf32>, vector<16x384xf32>, vector<8x384xf32> -> vector<8x384xf32>
    %490 = vector.broadcast %481 : vector<1x384xf32> to vector<8x384xf32>
    %491 = arith.addf %489, %490 : vector<8x384xf32>
    %492 = vector.extract_strided_slice %484 {offsets = [0, 0], sizes = [8, 256], strides = [1, 1]} : vector<8x384xf32> to vector<8x256xf32>
    %493 = vector.extract_strided_slice %488 {offsets = [0, 0], sizes = [8, 256], strides = [1, 1]} : vector<8x384xf32> to vector<8x256xf32>
    %494 = arith.addf %492, %493 : vector<8x256xf32>
    %495 = arith.negf %494 : vector<8x256xf32>
    %496 = math.exp %495 : vector<8x256xf32>
    %cst_165 = arith.constant 1.000000e+00 : f32
    %497 = vector.broadcast %cst_165 : f32 to vector<8x256xf32>
    %498 = arith.addf %497, %496 : vector<8x256xf32>
    %499 = arith.divf %497, %498 : vector<8x256xf32>
    %500 = vector.extract_strided_slice %484 {offsets = [0, 256], sizes = [8, 128], strides = [1, 1]} : vector<8x384xf32> to vector<8x128xf32>
    %501 = vector.extract_strided_slice %499 {offsets = [0, 0], sizes = [8, 128], strides = [1, 1]} : vector<8x256xf32> to vector<8x128xf32>
    %502 = vector.extract_strided_slice %488 {offsets = [0, 256], sizes = [8, 128], strides = [1, 1]} : vector<8x384xf32> to vector<8x128xf32>
    %503 = arith.mulf %501, %502 : vector<8x128xf32>
    %504 = arith.addf %500, %503 : vector<8x128xf32>
    %505 = math.tanh %504 : vector<8x128xf32>
    %506 = vector.extract_strided_slice %499 {offsets = [0, 128], sizes = [8, 16], strides = [1, 1]} : vector<8x256xf32> to vector<8x16xf32>
    %cst_166 = arith.constant 1.000000e+00 : f32
    %507 = vector.broadcast %cst_166 : f32 to vector<8x16xf32>
    %508 = arith.subf %507, %506 : vector<8x16xf32>
    %509 = vector.extract_strided_slice %505 {offsets = [0, 0], sizes = [8, 16], strides = [1, 1]} : vector<8x128xf32> to vector<8x16xf32>
    %510 = arith.mulf %508, %509 : vector<8x16xf32>
    %511 = arith.mulf %506, %482 : vector<8x16xf32>
    %512 = arith.addf %510, %511 : vector<8x16xf32>
    %513 = vector.extract_strided_slice %485 {offsets = [0, 0], sizes = [8, 256], strides = [1, 1]} : vector<8x384xf32> to vector<8x256xf32>
    %514 = vector.extract_strided_slice %491 {offsets = [0, 0], sizes = [8, 256], strides = [1, 1]} : vector<8x384xf32> to vector<8x256xf32>
    %515 = arith.addf %513, %514 : vector<8x256xf32>
    %516 = arith.negf %515 : vector<8x256xf32>
    %517 = math.exp %516 : vector<8x256xf32>
    %cst_167 = arith.constant 1.000000e+00 : f32
    %518 = vector.broadcast %cst_167 : f32 to vector<8x256xf32>
    %519 = arith.addf %518, %517 : vector<8x256xf32>
    %520 = arith.divf %518, %519 : vector<8x256xf32>
    %521 = vector.extract_strided_slice %485 {offsets = [0, 256], sizes = [8, 128], strides = [1, 1]} : vector<8x384xf32> to vector<8x128xf32>
    %522 = vector.extract_strided_slice %520 {offsets = [0, 0], sizes = [8, 128], strides = [1, 1]} : vector<8x256xf32> to vector<8x128xf32>
    %523 = vector.extract_strided_slice %491 {offsets = [0, 256], sizes = [8, 128], strides = [1, 1]} : vector<8x384xf32> to vector<8x128xf32>
    %524 = arith.mulf %522, %523 : vector<8x128xf32>
    %525 = arith.addf %521, %524 : vector<8x128xf32>
    %526 = math.tanh %525 : vector<8x128xf32>
    %527 = vector.extract_strided_slice %520 {offsets = [0, 128], sizes = [8, 16], strides = [1, 1]} : vector<8x256xf32> to vector<8x16xf32>
    %cst_168 = arith.constant 1.000000e+00 : f32
    %528 = vector.broadcast %cst_168 : f32 to vector<8x16xf32>
    %529 = arith.subf %528, %527 : vector<8x16xf32>
    %530 = vector.extract_strided_slice %526 {offsets = [0, 0], sizes = [8, 16], strides = [1, 1]} : vector<8x128xf32> to vector<8x16xf32>
    %531 = arith.mulf %529, %530 : vector<8x16xf32>
    %532 = arith.mulf %527, %483 : vector<8x16xf32>
    %533 = arith.addf %531, %532 : vector<8x16xf32>
    %c0_169 = arith.constant 0 : index
    %c0_170 = arith.constant 0 : index
    %c0_171 = arith.constant 0 : index
    %534 = vector.load %arg10[%c0_169, %c0_170, %c0_171] : memref<8x8x32xf32, #tpu.memory_space<vmem>>, vector<1x8x16xf32>
    %535 = vector.shape_cast %534 : vector<1x8x16xf32> to vector<8x16xf32>
    %536 = vector.shape_cast %512 : vector<8x16xf32> to vector<1x8x16xf32>
    tpu.vector_store %arg10[%c0_169, %c0_170, %c0_171], %536 {strides = array<i32>} : memref<8x8x32xf32, #tpu.memory_space<vmem>>, vector<1x8x16xf32>,
    %c7_172 = arith.constant 7 : index
    %c0_173 = arith.constant 0 : index
    %c16_174 = arith.constant 16 : index
    %537 = vector.load %arg10[%c7_172, %c0_173, %c16_174] : memref<8x8x32xf32, #tpu.memory_space<vmem>>, vector<1x8x16xf32>
    %538 = vector.shape_cast %537 : vector<1x8x16xf32> to vector<8x16xf32>
    %539 = vector.shape_cast %533 : vector<8x16xf32> to vector<1x8x16xf32>
    tpu.vector_store %arg10[%c7_172, %c0_173, %c16_174], %539 {strides = array<i32>} : memref<8x8x32xf32, #tpu.memory_space<vmem>>, vector<1x8x16xf32>,
    %c8_175 = arith.constant 8 : index
    %c0_176 = arith.constant 0 : index
    %540 = vector.load %arg11[%c8_175, %c0_176] : memref<64x768xf32, #tpu.memory_space<vmem>>, vector<8x384xf32>
    %c48_177 = arith.constant 48 : index
    %c384_178 = arith.constant 384 : index
    %541 = vector.load %arg11[%c48_177, %c384_178] : memref<64x768xf32, #tpu.memory_space<vmem>>, vector<8x384xf32>
    %cst_179 = arith.constant dense<0.000000e+00> : vector<8x384xf32>
    %542 = tpu.matmul %512, %475, %cst_179 {dimension_numbers = #tpu.dot_dimension_numbers<[1], [0], [0], [1], [0, 0, 1, 1], [], []>} : vector<8x16xf32>, vector<16x384xf32>, vector<8x384xf32> -> vector<8x384xf32>
    %543 = vector.broadcast %479 : vector<1x384xf32> to vector<8x384xf32>
    %544 = arith.addf %542, %543 : vector<8x384xf32>
    %cst_180 = arith.constant dense<0.000000e+00> : vector<8x384xf32>
    %545 = tpu.matmul %533, %477, %cst_180 {dimension_numbers = #tpu.dot_dimension_numbers<[1], [0], [0], [1], [0, 0, 1, 1], [], []>} : vector<8x16xf32>, vector<16x384xf32>, vector<8x384xf32> -> vector<8x384xf32>
    %546 = vector.broadcast %481 : vector<1x384xf32> to vector<8x384xf32>
    %547 = arith.addf %545, %546 : vector<8x384xf32>
    %548 = vector.extract_strided_slice %540 {offsets = [0, 0], sizes = [8, 256], strides = [1, 1]} : vector<8x384xf32> to vector<8x256xf32>
    %549 = vector.extract_strided_slice %544 {offsets = [0, 0], sizes = [8, 256], strides = [1, 1]} : vector<8x384xf32> to vector<8x256xf32>
    %550 = arith.addf %548, %549 : vector<8x256xf32>
    %551 = arith.negf %550 : vector<8x256xf32>
    %552 = math.exp %551 : vector<8x256xf32>
    %cst_181 = arith.constant 1.000000e+00 : f32
    %553 = vector.broadcast %cst_181 : f32 to vector<8x256xf32>
    %554 = arith.addf %553, %552 : vector<8x256xf32>
    %555 = arith.divf %553, %554 : vector<8x256xf32>
    %556 = vector.extract_strided_slice %540 {offsets = [0, 256], sizes = [8, 128], strides = [1, 1]} : vector<8x384xf32> to vector<8x128xf32>
    %557 = vector.extract_strided_slice %555 {offsets = [0, 0], sizes = [8, 128], strides = [1, 1]} : vector<8x256xf32> to vector<8x128xf32>
    %558 = vector.extract_strided_slice %544 {offsets = [0, 256], sizes = [8, 128], strides = [1, 1]} : vector<8x384xf32> to vector<8x128xf32>
    %559 = arith.mulf %557, %558 : vector<8x128xf32>
    %560 = arith.addf %556, %559 : vector<8x128xf32>
    %561 = math.tanh %560 : vector<8x128xf32>
    %562 = vector.extract_strided_slice %555 {offsets = [0, 128], sizes = [8, 16], strides = [1, 1]} : vector<8x256xf32> to vector<8x16xf32>
    %cst_182 = arith.constant 1.000000e+00 : f32
    %563 = vector.broadcast %cst_182 : f32 to vector<8x16xf32>
    %564 = arith.subf %563, %562 : vector<8x16xf32>
    %565 = vector.extract_strided_slice %561 {offsets = [0, 0], sizes = [8, 16], strides = [1, 1]} : vector<8x128xf32> to vector<8x16xf32>
    %566 = arith.mulf %564, %565 : vector<8x16xf32>
    %567 = arith.mulf %562, %512 : vector<8x16xf32>
    %568 = arith.addf %566, %567 : vector<8x16xf32>
    %569 = vector.extract_strided_slice %541 {offsets = [0, 0], sizes = [8, 256], strides = [1, 1]} : vector<8x384xf32> to vector<8x256xf32>
    %570 = vector.extract_strided_slice %547 {offsets = [0, 0], sizes = [8, 256], strides = [1, 1]} : vector<8x384xf32> to vector<8x256xf32>
    %571 = arith.addf %569, %570 : vector<8x256xf32>
    %572 = arith.negf %571 : vector<8x256xf32>
    %573 = math.exp %572 : vector<8x256xf32>
    %cst_183 = arith.constant 1.000000e+00 : f32
    %574 = vector.broadcast %cst_183 : f32 to vector<8x256xf32>
    %575 = arith.addf %574, %573 : vector<8x256xf32>
    %576 = arith.divf %574, %575 : vector<8x256xf32>
    %577 = vector.extract_strided_slice %541 {offsets = [0, 256], sizes = [8, 128], strides = [1, 1]} : vector<8x384xf32> to vector<8x128xf32>
    %578 = vector.extract_strided_slice %576 {offsets = [0, 0], sizes = [8, 128], strides = [1, 1]} : vector<8x256xf32> to vector<8x128xf32>
    %579 = vector.extract_strided_slice %547 {offsets = [0, 256], sizes = [8, 128], strides = [1, 1]} : vector<8x384xf32> to vector<8x128xf32>
    %580 = arith.mulf %578, %579 : vector<8x128xf32>
    %581 = arith.addf %577, %580 : vector<8x128xf32>
    %582 = math.tanh %581 : vector<8x128xf32>
    %583 = vector.extract_strided_slice %576 {offsets = [0, 128], sizes = [8, 16], strides = [1, 1]} : vector<8x256xf32> to vector<8x16xf32>
    %cst_184 = arith.constant 1.000000e+00 : f32
    %584 = vector.broadcast %cst_184 : f32 to vector<8x16xf32>
    %585 = arith.subf %584, %583 : vector<8x16xf32>
    %586 = vector.extract_strided_slice %582 {offsets = [0, 0], sizes = [8, 16], strides = [1, 1]} : vector<8x128xf32> to vector<8x16xf32>
    %587 = arith.mulf %585, %586 : vector<8x16xf32>
    %588 = arith.mulf %583, %533 : vector<8x16xf32>
    %589 = arith.addf %587, %588 : vector<8x16xf32>
    %c1_185 = arith.constant 1 : index
    %c0_186 = arith.constant 0 : index
    %c0_187 = arith.constant 0 : index
    %590 = vector.load %arg10[%c1_185, %c0_186, %c0_187] : memref<8x8x32xf32, #tpu.memory_space<vmem>>, vector<1x8x16xf32>
    %591 = vector.shape_cast %590 : vector<1x8x16xf32> to vector<8x16xf32>
    %592 = vector.shape_cast %568 : vector<8x16xf32> to vector<1x8x16xf32>
    tpu.vector_store %arg10[%c1_185, %c0_186, %c0_187], %592 {strides = array<i32>} : memref<8x8x32xf32, #tpu.memory_space<vmem>>, vector<1x8x16xf32>,
    %c6_188 = arith.constant 6 : index
    %c0_189 = arith.constant 0 : index
    %c16_190 = arith.constant 16 : index
    %593 = vector.load %arg10[%c6_188, %c0_189, %c16_190] : memref<8x8x32xf32, #tpu.memory_space<vmem>>, vector<1x8x16xf32>
    %594 = vector.shape_cast %593 : vector<1x8x16xf32> to vector<8x16xf32>
    %595 = vector.shape_cast %589 : vector<8x16xf32> to vector<1x8x16xf32>
    tpu.vector_store %arg10[%c6_188, %c0_189, %c16_190], %595 {strides = array<i32>} : memref<8x8x32xf32, #tpu.memory_space<vmem>>, vector<1x8x16xf32>,
    %c16_191 = arith.constant 16 : index
    %c0_192 = arith.constant 0 : index
    %596 = vector.load %arg11[%c16_191, %c0_192] : memref<64x768xf32, #tpu.memory_space<vmem>>, vector<8x384xf32>
    %c40_193 = arith.constant 40 : index
    %c384_194 = arith.constant 384 : index
    %597 = vector.load %arg11[%c40_193, %c384_194] : memref<64x768xf32, #tpu.memory_space<vmem>>, vector<8x384xf32>
    %cst_195 = arith.constant dense<0.000000e+00> : vector<8x384xf32>
    %598 = tpu.matmul %568, %475, %cst_195 {dimension_numbers = #tpu.dot_dimension_numbers<[1], [0], [0], [1], [0, 0, 1, 1], [], []>} : vector<8x16xf32>, vector<16x384xf32>, vector<8x384xf32> -> vector<8x384xf32>
    %599 = vector.broadcast %479 : vector<1x384xf32> to vector<8x384xf32>
    %600 = arith.addf %598, %599 : vector<8x384xf32>
    %cst_196 = arith.constant dense<0.000000e+00> : vector<8x384xf32>
    %601 = tpu.matmul %589, %477, %cst_196 {dimension_numbers = #tpu.dot_dimension_numbers<[1], [0], [0], [1], [0, 0, 1, 1], [], []>} : vector<8x16xf32>, vector<16x384xf32>, vector<8x384xf32> -> vector<8x384xf32>
    %602 = vector.broadcast %481 : vector<1x384xf32> to vector<8x384xf32>
    %603 = arith.addf %601, %602 : vector<8x384xf32>
    %604 = vector.extract_strided_slice %596 {offsets = [0, 0], sizes = [8, 256], strides = [1, 1]} : vector<8x384xf32> to vector<8x256xf32>
    %605 = vector.extract_strided_slice %600 {offsets = [0, 0], sizes = [8, 256], strides = [1, 1]} : vector<8x384xf32> to vector<8x256xf32>
    %606 = arith.addf %604, %605 : vector<8x256xf32>
    %607 = arith.negf %606 : vector<8x256xf32>
    %608 = math.exp %607 : vector<8x256xf32>
    %cst_197 = arith.constant 1.000000e+00 : f32
    %609 = vector.broadcast %cst_197 : f32 to vector<8x256xf32>
    %610 = arith.addf %609, %608 : vector<8x256xf32>
    %611 = arith.divf %609, %610 : vector<8x256xf32>
    %612 = vector.extract_strided_slice %596 {offsets = [0, 256], sizes = [8, 128], strides = [1, 1]} : vector<8x384xf32> to vector<8x128xf32>
    %613 = vector.extract_strided_slice %611 {offsets = [0, 0], sizes = [8, 128], strides = [1, 1]} : vector<8x256xf32> to vector<8x128xf32>
    %614 = vector.extract_strided_slice %600 {offsets = [0, 256], sizes = [8, 128], strides = [1, 1]} : vector<8x384xf32> to vector<8x128xf32>
    %615 = arith.mulf %613, %614 : vector<8x128xf32>
    %616 = arith.addf %612, %615 : vector<8x128xf32>
    %617 = math.tanh %616 : vector<8x128xf32>
    %618 = vector.extract_strided_slice %611 {offsets = [0, 128], sizes = [8, 16], strides = [1, 1]} : vector<8x256xf32> to vector<8x16xf32>
    %cst_198 = arith.constant 1.000000e+00 : f32
    %619 = vector.broadcast %cst_198 : f32 to vector<8x16xf32>
    %620 = arith.subf %619, %618 : vector<8x16xf32>
    %621 = vector.extract_strided_slice %617 {offsets = [0, 0], sizes = [8, 16], strides = [1, 1]} : vector<8x128xf32> to vector<8x16xf32>
    %622 = arith.mulf %620, %621 : vector<8x16xf32>
    %623 = arith.mulf %618, %568 : vector<8x16xf32>
    %624 = arith.addf %622, %623 : vector<8x16xf32>
    %625 = vector.extract_strided_slice %597 {offsets = [0, 0], sizes = [8, 256], strides = [1, 1]} : vector<8x384xf32> to vector<8x256xf32>
    %626 = vector.extract_strided_slice %603 {offsets = [0, 0], sizes = [8, 256], strides = [1, 1]} : vector<8x384xf32> to vector<8x256xf32>
    %627 = arith.addf %625, %626 : vector<8x256xf32>
    %628 = arith.negf %627 : vector<8x256xf32>
    %629 = math.exp %628 : vector<8x256xf32>
    %cst_199 = arith.constant 1.000000e+00 : f32
    %630 = vector.broadcast %cst_199 : f32 to vector<8x256xf32>
    %631 = arith.addf %630, %629 : vector<8x256xf32>
    %632 = arith.divf %630, %631 : vector<8x256xf32>
    %633 = vector.extract_strided_slice %597 {offsets = [0, 256], sizes = [8, 128], strides = [1, 1]} : vector<8x384xf32> to vector<8x128xf32>
    %634 = vector.extract_strided_slice %632 {offsets = [0, 0], sizes = [8, 128], strides = [1, 1]} : vector<8x256xf32> to vector<8x128xf32>
    %635 = vector.extract_strided_slice %603 {offsets = [0, 256], sizes = [8, 128], strides = [1, 1]} : vector<8x384xf32> to vector<8x128xf32>
    %636 = arith.mulf %634, %635 : vector<8x128xf32>
    %637 = arith.addf %633, %636 : vector<8x128xf32>
    %638 = math.tanh %637 : vector<8x128xf32>
    %639 = vector.extract_strided_slice %632 {offsets = [0, 128], sizes = [8, 16], strides = [1, 1]} : vector<8x256xf32> to vector<8x16xf32>
    %cst_200 = arith.constant 1.000000e+00 : f32
    %640 = vector.broadcast %cst_200 : f32 to vector<8x16xf32>
    %641 = arith.subf %640, %639 : vector<8x16xf32>
    %642 = vector.extract_strided_slice %638 {offsets = [0, 0], sizes = [8, 16], strides = [1, 1]} : vector<8x128xf32> to vector<8x16xf32>
    %643 = arith.mulf %641, %642 : vector<8x16xf32>
    %644 = arith.mulf %639, %589 : vector<8x16xf32>
    %645 = arith.addf %643, %644 : vector<8x16xf32>
    %c2_201 = arith.constant 2 : index
    %c0_202 = arith.constant 0 : index
    %c0_203 = arith.constant 0 : index
    %646 = vector.load %arg10[%c2_201, %c0_202, %c0_203] : memref<8x8x32xf32, #tpu.memory_space<vmem>>, vector<1x8x16xf32>
    %647 = vector.shape_cast %646 : vector<1x8x16xf32> to vector<8x16xf32>
    %648 = vector.shape_cast %624 : vector<8x16xf32> to vector<1x8x16xf32>
    tpu.vector_store %arg10[%c2_201, %c0_202, %c0_203], %648 {strides = array<i32>} : memref<8x8x32xf32, #tpu.memory_space<vmem>>, vector<1x8x16xf32>,
    %c5_204 = arith.constant 5 : index
    %c0_205 = arith.constant 0 : index
    %c16_206 = arith.constant 16 : index
    %649 = vector.load %arg10[%c5_204, %c0_205, %c16_206] : memref<8x8x32xf32, #tpu.memory_space<vmem>>, vector<1x8x16xf32>
    %650 = vector.shape_cast %649 : vector<1x8x16xf32> to vector<8x16xf32>
    %651 = vector.shape_cast %645 : vector<8x16xf32> to vector<1x8x16xf32>
    tpu.vector_store %arg10[%c5_204, %c0_205, %c16_206], %651 {strides = array<i32>} : memref<8x8x32xf32, #tpu.memory_space<vmem>>, vector<1x8x16xf32>,
    %c24_207 = arith.constant 24 : index
    %c0_208 = arith.constant 0 : index
    %652 = vector.load %arg11[%c24_207, %c0_208] : memref<64x768xf32, #tpu.memory_space<vmem>>, vector<8x384xf32>
    %c32_209 = arith.constant 32 : index
    %c384_210 = arith.constant 384 : index
    %653 = vector.load %arg11[%c32_209, %c384_210] : memref<64x768xf32, #tpu.memory_space<vmem>>, vector<8x384xf32>
    %cst_211 = arith.constant dense<0.000000e+00> : vector<8x384xf32>
    %654 = tpu.matmul %624, %475, %cst_211 {dimension_numbers = #tpu.dot_dimension_numbers<[1], [0], [0], [1], [0, 0, 1, 1], [], []>} : vector<8x16xf32>, vector<16x384xf32>, vector<8x384xf32> -> vector<8x384xf32>
    %655 = vector.broadcast %479 : vector<1x384xf32> to vector<8x384xf32>
    %656 = arith.addf %654, %655 : vector<8x384xf32>
    %cst_212 = arith.constant dense<0.000000e+00> : vector<8x384xf32>
    %657 = tpu.matmul %645, %477, %cst_212 {dimension_numbers = #tpu.dot_dimension_numbers<[1], [0], [0], [1], [0, 0, 1, 1], [], []>} : vector<8x16xf32>, vector<16x384xf32>, vector<8x384xf32> -> vector<8x384xf32>
    %658 = vector.broadcast %481 : vector<1x384xf32> to vector<8x384xf32>
    %659 = arith.addf %657, %658 : vector<8x384xf32>
    %660 = vector.extract_strided_slice %652 {offsets = [0, 0], sizes = [8, 256], strides = [1, 1]} : vector<8x384xf32> to vector<8x256xf32>
    %661 = vector.extract_strided_slice %656 {offsets = [0, 0], sizes = [8, 256], strides = [1, 1]} : vector<8x384xf32> to vector<8x256xf32>
    %662 = arith.addf %660, %661 : vector<8x256xf32>
    %663 = arith.negf %662 : vector<8x256xf32>
    %664 = math.exp %663 : vector<8x256xf32>
    %cst_213 = arith.constant 1.000000e+00 : f32
    %665 = vector.broadcast %cst_213 : f32 to vector<8x256xf32>
    %666 = arith.addf %665, %664 : vector<8x256xf32>
    %667 = arith.divf %665, %666 : vector<8x256xf32>
    %668 = vector.extract_strided_slice %652 {offsets = [0, 256], sizes = [8, 128], strides = [1, 1]} : vector<8x384xf32> to vector<8x128xf32>
    %669 = vector.extract_strided_slice %667 {offsets = [0, 0], sizes = [8, 128], strides = [1, 1]} : vector<8x256xf32> to vector<8x128xf32>
    %670 = vector.extract_strided_slice %656 {offsets = [0, 256], sizes = [8, 128], strides = [1, 1]} : vector<8x384xf32> to vector<8x128xf32>
    %671 = arith.mulf %669, %670 : vector<8x128xf32>
    %672 = arith.addf %668, %671 : vector<8x128xf32>
    %673 = math.tanh %672 : vector<8x128xf32>
    %674 = vector.extract_strided_slice %667 {offsets = [0, 128], sizes = [8, 16], strides = [1, 1]} : vector<8x256xf32> to vector<8x16xf32>
    %cst_214 = arith.constant 1.000000e+00 : f32
    %675 = vector.broadcast %cst_214 : f32 to vector<8x16xf32>
    %676 = arith.subf %675, %674 : vector<8x16xf32>
    %677 = vector.extract_strided_slice %673 {offsets = [0, 0], sizes = [8, 16], strides = [1, 1]} : vector<8x128xf32> to vector<8x16xf32>
    %678 = arith.mulf %676, %677 : vector<8x16xf32>
    %679 = arith.mulf %674, %624 : vector<8x16xf32>
    %680 = arith.addf %678, %679 : vector<8x16xf32>
    %681 = vector.extract_strided_slice %653 {offsets = [0, 0], sizes = [8, 256], strides = [1, 1]} : vector<8x384xf32> to vector<8x256xf32>
    %682 = vector.extract_strided_slice %659 {offsets = [0, 0], sizes = [8, 256], strides = [1, 1]} : vector<8x384xf32> to vector<8x256xf32>
    %683 = arith.addf %681, %682 : vector<8x256xf32>
    %684 = arith.negf %683 : vector<8x256xf32>
    %685 = math.exp %684 : vector<8x256xf32>
    %cst_215 = arith.constant 1.000000e+00 : f32
    %686 = vector.broadcast %cst_215 : f32 to vector<8x256xf32>
    %687 = arith.addf %686, %685 : vector<8x256xf32>
    %688 = arith.divf %686, %687 : vector<8x256xf32>
    %689 = vector.extract_strided_slice %653 {offsets = [0, 256], sizes = [8, 128], strides = [1, 1]} : vector<8x384xf32> to vector<8x128xf32>
    %690 = vector.extract_strided_slice %688 {offsets = [0, 0], sizes = [8, 128], strides = [1, 1]} : vector<8x256xf32> to vector<8x128xf32>
    %691 = vector.extract_strided_slice %659 {offsets = [0, 256], sizes = [8, 128], strides = [1, 1]} : vector<8x384xf32> to vector<8x128xf32>
    %692 = arith.mulf %690, %691 : vector<8x128xf32>
    %693 = arith.addf %689, %692 : vector<8x128xf32>
    %694 = math.tanh %693 : vector<8x128xf32>
    %695 = vector.extract_strided_slice %688 {offsets = [0, 128], sizes = [8, 16], strides = [1, 1]} : vector<8x256xf32> to vector<8x16xf32>
    %cst_216 = arith.constant 1.000000e+00 : f32
    %696 = vector.broadcast %cst_216 : f32 to vector<8x16xf32>
    %697 = arith.subf %696, %695 : vector<8x16xf32>
    %698 = vector.extract_strided_slice %694 {offsets = [0, 0], sizes = [8, 16], strides = [1, 1]} : vector<8x128xf32> to vector<8x16xf32>
    %699 = arith.mulf %697, %698 : vector<8x16xf32>
    %700 = arith.mulf %695, %645 : vector<8x16xf32>
    %701 = arith.addf %699, %700 : vector<8x16xf32>
    %c3_217 = arith.constant 3 : index
    %c0_218 = arith.constant 0 : index
    %c0_219 = arith.constant 0 : index
    %702 = vector.load %arg10[%c3_217, %c0_218, %c0_219] : memref<8x8x32xf32, #tpu.memory_space<vmem>>, vector<1x8x16xf32>
    %703 = vector.shape_cast %702 : vector<1x8x16xf32> to vector<8x16xf32>
    %704 = vector.shape_cast %680 : vector<8x16xf32> to vector<1x8x16xf32>
    tpu.vector_store %arg10[%c3_217, %c0_218, %c0_219], %704 {strides = array<i32>} : memref<8x8x32xf32, #tpu.memory_space<vmem>>, vector<1x8x16xf32>,
    %c4_220 = arith.constant 4 : index
    %c0_221 = arith.constant 0 : index
    %c16_222 = arith.constant 16 : index
    %705 = vector.load %arg10[%c4_220, %c0_221, %c16_222] : memref<8x8x32xf32, #tpu.memory_space<vmem>>, vector<1x8x16xf32>
    %706 = vector.shape_cast %705 : vector<1x8x16xf32> to vector<8x16xf32>
    %707 = vector.shape_cast %701 : vector<8x16xf32> to vector<1x8x16xf32>
    tpu.vector_store %arg10[%c4_220, %c0_221, %c16_222], %707 {strides = array<i32>} : memref<8x8x32xf32, #tpu.memory_space<vmem>>, vector<1x8x16xf32>,
    %c32_223 = arith.constant 32 : index
    %c0_224 = arith.constant 0 : index
    %708 = vector.load %arg11[%c32_223, %c0_224] : memref<64x768xf32, #tpu.memory_space<vmem>>, vector<8x384xf32>
    %c24_225 = arith.constant 24 : index
    %c384_226 = arith.constant 384 : index
    %709 = vector.load %arg11[%c24_225, %c384_226] : memref<64x768xf32, #tpu.memory_space<vmem>>, vector<8x384xf32>
    %cst_227 = arith.constant dense<0.000000e+00> : vector<8x384xf32>
    %710 = tpu.matmul %680, %475, %cst_227 {dimension_numbers = #tpu.dot_dimension_numbers<[1], [0], [0], [1], [0, 0, 1, 1], [], []>} : vector<8x16xf32>, vector<16x384xf32>, vector<8x384xf32> -> vector<8x384xf32>
    %711 = vector.broadcast %479 : vector<1x384xf32> to vector<8x384xf32>
    %712 = arith.addf %710, %711 : vector<8x384xf32>
    %cst_228 = arith.constant dense<0.000000e+00> : vector<8x384xf32>
    %713 = tpu.matmul %701, %477, %cst_228 {dimension_numbers = #tpu.dot_dimension_numbers<[1], [0], [0], [1], [0, 0, 1, 1], [], []>} : vector<8x16xf32>, vector<16x384xf32>, vector<8x384xf32> -> vector<8x384xf32>
    %714 = vector.broadcast %481 : vector<1x384xf32> to vector<8x384xf32>
    %715 = arith.addf %713, %714 : vector<8x384xf32>
    %716 = vector.extract_strided_slice %708 {offsets = [0, 0], sizes = [8, 256], strides = [1, 1]} : vector<8x384xf32> to vector<8x256xf32>
    %717 = vector.extract_strided_slice %712 {offsets = [0, 0], sizes = [8, 256], strides = [1, 1]} : vector<8x384xf32> to vector<8x256xf32>
    %718 = arith.addf %716, %717 : vector<8x256xf32>
    %719 = arith.negf %718 : vector<8x256xf32>
    %720 = math.exp %719 : vector<8x256xf32>
    %cst_229 = arith.constant 1.000000e+00 : f32
    %721 = vector.broadcast %cst_229 : f32 to vector<8x256xf32>
    %722 = arith.addf %721, %720 : vector<8x256xf32>
    %723 = arith.divf %721, %722 : vector<8x256xf32>
    %724 = vector.extract_strided_slice %708 {offsets = [0, 256], sizes = [8, 128], strides = [1, 1]} : vector<8x384xf32> to vector<8x128xf32>
    %725 = vector.extract_strided_slice %723 {offsets = [0, 0], sizes = [8, 128], strides = [1, 1]} : vector<8x256xf32> to vector<8x128xf32>
    %726 = vector.extract_strided_slice %712 {offsets = [0, 256], sizes = [8, 128], strides = [1, 1]} : vector<8x384xf32> to vector<8x128xf32>
    %727 = arith.mulf %725, %726 : vector<8x128xf32>
    %728 = arith.addf %724, %727 : vector<8x128xf32>
    %729 = math.tanh %728 : vector<8x128xf32>
    %730 = vector.extract_strided_slice %723 {offsets = [0, 128], sizes = [8, 16], strides = [1, 1]} : vector<8x256xf32> to vector<8x16xf32>
    %cst_230 = arith.constant 1.000000e+00 : f32
    %731 = vector.broadcast %cst_230 : f32 to vector<8x16xf32>
    %732 = arith.subf %731, %730 : vector<8x16xf32>
    %733 = vector.extract_strided_slice %729 {offsets = [0, 0], sizes = [8, 16], strides = [1, 1]} : vector<8x128xf32> to vector<8x16xf32>
    %734 = arith.mulf %732, %733 : vector<8x16xf32>
    %735 = arith.mulf %730, %680 : vector<8x16xf32>
    %736 = arith.addf %734, %735 : vector<8x16xf32>
    %737 = vector.extract_strided_slice %709 {offsets = [0, 0], sizes = [8, 256], strides = [1, 1]} : vector<8x384xf32> to vector<8x256xf32>
    %738 = vector.extract_strided_slice %715 {offsets = [0, 0], sizes = [8, 256], strides = [1, 1]} : vector<8x384xf32> to vector<8x256xf32>
    %739 = arith.addf %737, %738 : vector<8x256xf32>
    %740 = arith.negf %739 : vector<8x256xf32>
    %741 = math.exp %740 : vector<8x256xf32>
    %cst_231 = arith.constant 1.000000e+00 : f32
    %742 = vector.broadcast %cst_231 : f32 to vector<8x256xf32>
    %743 = arith.addf %742, %741 : vector<8x256xf32>
    %744 = arith.divf %742, %743 : vector<8x256xf32>
    %745 = vector.extract_strided_slice %709 {offsets = [0, 256], sizes = [8, 128], strides = [1, 1]} : vector<8x384xf32> to vector<8x128xf32>
    %746 = vector.extract_strided_slice %744 {offsets = [0, 0], sizes = [8, 128], strides = [1, 1]} : vector<8x256xf32> to vector<8x128xf32>
    %747 = vector.extract_strided_slice %715 {offsets = [0, 256], sizes = [8, 128], strides = [1, 1]} : vector<8x384xf32> to vector<8x128xf32>
    %748 = arith.mulf %746, %747 : vector<8x128xf32>
    %749 = arith.addf %745, %748 : vector<8x128xf32>
    %750 = math.tanh %749 : vector<8x128xf32>
    %751 = vector.extract_strided_slice %744 {offsets = [0, 128], sizes = [8, 16], strides = [1, 1]} : vector<8x256xf32> to vector<8x16xf32>
    %cst_232 = arith.constant 1.000000e+00 : f32
    %752 = vector.broadcast %cst_232 : f32 to vector<8x16xf32>
    %753 = arith.subf %752, %751 : vector<8x16xf32>
    %754 = vector.extract_strided_slice %750 {offsets = [0, 0], sizes = [8, 16], strides = [1, 1]} : vector<8x128xf32> to vector<8x16xf32>
    %755 = arith.mulf %753, %754 : vector<8x16xf32>
    %756 = arith.mulf %751, %701 : vector<8x16xf32>
    %757 = arith.addf %755, %756 : vector<8x16xf32>
    %c4_233 = arith.constant 4 : index
    %c0_234 = arith.constant 0 : index
    %c0_235 = arith.constant 0 : index
    %758 = vector.load %arg10[%c4_233, %c0_234, %c0_235] : memref<8x8x32xf32, #tpu.memory_space<vmem>>, vector<1x8x16xf32>
    %759 = vector.shape_cast %758 : vector<1x8x16xf32> to vector<8x16xf32>
    %760 = vector.shape_cast %736 : vector<8x16xf32> to vector<1x8x16xf32>
    tpu.vector_store %arg10[%c4_233, %c0_234, %c0_235], %760 {strides = array<i32>} : memref<8x8x32xf32, #tpu.memory_space<vmem>>, vector<1x8x16xf32>,
    %c3_236 = arith.constant 3 : index
    %c0_237 = arith.constant 0 : index
    %c16_238 = arith.constant 16 : index
    %761 = vector.load %arg10[%c3_236, %c0_237, %c16_238] : memref<8x8x32xf32, #tpu.memory_space<vmem>>, vector<1x8x16xf32>
    %762 = vector.shape_cast %761 : vector<1x8x16xf32> to vector<8x16xf32>
    %763 = vector.shape_cast %757 : vector<8x16xf32> to vector<1x8x16xf32>
    tpu.vector_store %arg10[%c3_236, %c0_237, %c16_238], %763 {strides = array<i32>} : memref<8x8x32xf32, #tpu.memory_space<vmem>>, vector<1x8x16xf32>,
    %c40_239 = arith.constant 40 : index
    %c0_240 = arith.constant 0 : index
    %764 = vector.load %arg11[%c40_239, %c0_240] : memref<64x768xf32, #tpu.memory_space<vmem>>, vector<8x384xf32>
    %c16_241 = arith.constant 16 : index
    %c384_242 = arith.constant 384 : index
    %765 = vector.load %arg11[%c16_241, %c384_242] : memref<64x768xf32, #tpu.memory_space<vmem>>, vector<8x384xf32>
    %cst_243 = arith.constant dense<0.000000e+00> : vector<8x384xf32>
    %766 = tpu.matmul %736, %475, %cst_243 {dimension_numbers = #tpu.dot_dimension_numbers<[1], [0], [0], [1], [0, 0, 1, 1], [], []>} : vector<8x16xf32>, vector<16x384xf32>, vector<8x384xf32> -> vector<8x384xf32>
    %767 = vector.broadcast %479 : vector<1x384xf32> to vector<8x384xf32>
    %768 = arith.addf %766, %767 : vector<8x384xf32>
    %cst_244 = arith.constant dense<0.000000e+00> : vector<8x384xf32>
    %769 = tpu.matmul %757, %477, %cst_244 {dimension_numbers = #tpu.dot_dimension_numbers<[1], [0], [0], [1], [0, 0, 1, 1], [], []>} : vector<8x16xf32>, vector<16x384xf32>, vector<8x384xf32> -> vector<8x384xf32>
    %770 = vector.broadcast %481 : vector<1x384xf32> to vector<8x384xf32>
    %771 = arith.addf %769, %770 : vector<8x384xf32>
    %772 = vector.extract_strided_slice %764 {offsets = [0, 0], sizes = [8, 256], strides = [1, 1]} : vector<8x384xf32> to vector<8x256xf32>
    %773 = vector.extract_strided_slice %768 {offsets = [0, 0], sizes = [8, 256], strides = [1, 1]} : vector<8x384xf32> to vector<8x256xf32>
    %774 = arith.addf %772, %773 : vector<8x256xf32>
    %775 = arith.negf %774 : vector<8x256xf32>
    %776 = math.exp %775 : vector<8x256xf32>
    %cst_245 = arith.constant 1.000000e+00 : f32
    %777 = vector.broadcast %cst_245 : f32 to vector<8x256xf32>
    %778 = arith.addf %777, %776 : vector<8x256xf32>
    %779 = arith.divf %777, %778 : vector<8x256xf32>
    %780 = vector.extract_strided_slice %764 {offsets = [0, 256], sizes = [8, 128], strides = [1, 1]} : vector<8x384xf32> to vector<8x128xf32>
    %781 = vector.extract_strided_slice %779 {offsets = [0, 0], sizes = [8, 128], strides = [1, 1]} : vector<8x256xf32> to vector<8x128xf32>
    %782 = vector.extract_strided_slice %768 {offsets = [0, 256], sizes = [8, 128], strides = [1, 1]} : vector<8x384xf32> to vector<8x128xf32>
    %783 = arith.mulf %781, %782 : vector<8x128xf32>
    %784 = arith.addf %780, %783 : vector<8x128xf32>
    %785 = math.tanh %784 : vector<8x128xf32>
    %786 = vector.extract_strided_slice %779 {offsets = [0, 128], sizes = [8, 16], strides = [1, 1]} : vector<8x256xf32> to vector<8x16xf32>
    %cst_246 = arith.constant 1.000000e+00 : f32
    %787 = vector.broadcast %cst_246 : f32 to vector<8x16xf32>
    %788 = arith.subf %787, %786 : vector<8x16xf32>
    %789 = vector.extract_strided_slice %785 {offsets = [0, 0], sizes = [8, 16], strides = [1, 1]} : vector<8x128xf32> to vector<8x16xf32>
    %790 = arith.mulf %788, %789 : vector<8x16xf32>
    %791 = arith.mulf %786, %736 : vector<8x16xf32>
    %792 = arith.addf %790, %791 : vector<8x16xf32>
    %793 = vector.extract_strided_slice %765 {offsets = [0, 0], sizes = [8, 256], strides = [1, 1]} : vector<8x384xf32> to vector<8x256xf32>
    %794 = vector.extract_strided_slice %771 {offsets = [0, 0], sizes = [8, 256], strides = [1, 1]} : vector<8x384xf32> to vector<8x256xf32>
    %795 = arith.addf %793, %794 : vector<8x256xf32>
    %796 = arith.negf %795 : vector<8x256xf32>
    %797 = math.exp %796 : vector<8x256xf32>
    %cst_247 = arith.constant 1.000000e+00 : f32
    %798 = vector.broadcast %cst_247 : f32 to vector<8x256xf32>
    %799 = arith.addf %798, %797 : vector<8x256xf32>
    %800 = arith.divf %798, %799 : vector<8x256xf32>
    %801 = vector.extract_strided_slice %765 {offsets = [0, 256], sizes = [8, 128], strides = [1, 1]} : vector<8x384xf32> to vector<8x128xf32>
    %802 = vector.extract_strided_slice %800 {offsets = [0, 0], sizes = [8, 128], strides = [1, 1]} : vector<8x256xf32> to vector<8x128xf32>
    %803 = vector.extract_strided_slice %771 {offsets = [0, 256], sizes = [8, 128], strides = [1, 1]} : vector<8x384xf32> to vector<8x128xf32>
    %804 = arith.mulf %802, %803 : vector<8x128xf32>
    %805 = arith.addf %801, %804 : vector<8x128xf32>
    %806 = math.tanh %805 : vector<8x128xf32>
    %807 = vector.extract_strided_slice %800 {offsets = [0, 128], sizes = [8, 16], strides = [1, 1]} : vector<8x256xf32> to vector<8x16xf32>
    %cst_248 = arith.constant 1.000000e+00 : f32
    %808 = vector.broadcast %cst_248 : f32 to vector<8x16xf32>
    %809 = arith.subf %808, %807 : vector<8x16xf32>
    %810 = vector.extract_strided_slice %806 {offsets = [0, 0], sizes = [8, 16], strides = [1, 1]} : vector<8x128xf32> to vector<8x16xf32>
    %811 = arith.mulf %809, %810 : vector<8x16xf32>
    %812 = arith.mulf %807, %757 : vector<8x16xf32>
    %813 = arith.addf %811, %812 : vector<8x16xf32>
    %c5_249 = arith.constant 5 : index
    %c0_250 = arith.constant 0 : index
    %c0_251 = arith.constant 0 : index
    %814 = vector.load %arg10[%c5_249, %c0_250, %c0_251] : memref<8x8x32xf32, #tpu.memory_space<vmem>>, vector<1x8x16xf32>
    %815 = vector.shape_cast %814 : vector<1x8x16xf32> to vector<8x16xf32>
    %816 = vector.shape_cast %792 : vector<8x16xf32> to vector<1x8x16xf32>
    tpu.vector_store %arg10[%c5_249, %c0_250, %c0_251], %816 {strides = array<i32>} : memref<8x8x32xf32, #tpu.memory_space<vmem>>, vector<1x8x16xf32>,
    %c2_252 = arith.constant 2 : index
    %c0_253 = arith.constant 0 : index
    %c16_254 = arith.constant 16 : index
    %817 = vector.load %arg10[%c2_252, %c0_253, %c16_254] : memref<8x8x32xf32, #tpu.memory_space<vmem>>, vector<1x8x16xf32>
    %818 = vector.shape_cast %817 : vector<1x8x16xf32> to vector<8x16xf32>
    %819 = vector.shape_cast %813 : vector<8x16xf32> to vector<1x8x16xf32>
    tpu.vector_store %arg10[%c2_252, %c0_253, %c16_254], %819 {strides = array<i32>} : memref<8x8x32xf32, #tpu.memory_space<vmem>>, vector<1x8x16xf32>,
    %c48_255 = arith.constant 48 : index
    %c0_256 = arith.constant 0 : index
    %820 = vector.load %arg11[%c48_255, %c0_256] : memref<64x768xf32, #tpu.memory_space<vmem>>, vector<8x384xf32>
    %c8_257 = arith.constant 8 : index
    %c384_258 = arith.constant 384 : index
    %821 = vector.load %arg11[%c8_257, %c384_258] : memref<64x768xf32, #tpu.memory_space<vmem>>, vector<8x384xf32>
    %cst_259 = arith.constant dense<0.000000e+00> : vector<8x384xf32>
    %822 = tpu.matmul %792, %475, %cst_259 {dimension_numbers = #tpu.dot_dimension_numbers<[1], [0], [0], [1], [0, 0, 1, 1], [], []>} : vector<8x16xf32>, vector<16x384xf32>, vector<8x384xf32> -> vector<8x384xf32>
    %823 = vector.broadcast %479 : vector<1x384xf32> to vector<8x384xf32>
    %824 = arith.addf %822, %823 : vector<8x384xf32>
    %cst_260 = arith.constant dense<0.000000e+00> : vector<8x384xf32>
    %825 = tpu.matmul %813, %477, %cst_260 {dimension_numbers = #tpu.dot_dimension_numbers<[1], [0], [0], [1], [0, 0, 1, 1], [], []>} : vector<8x16xf32>, vector<16x384xf32>, vector<8x384xf32> -> vector<8x384xf32>
    %826 = vector.broadcast %481 : vector<1x384xf32> to vector<8x384xf32>
    %827 = arith.addf %825, %826 : vector<8x384xf32>
    %828 = vector.extract_strided_slice %820 {offsets = [0, 0], sizes = [8, 256], strides = [1, 1]} : vector<8x384xf32> to vector<8x256xf32>
    %829 = vector.extract_strided_slice %824 {offsets = [0, 0], sizes = [8, 256], strides = [1, 1]} : vector<8x384xf32> to vector<8x256xf32>
    %830 = arith.addf %828, %829 : vector<8x256xf32>
    %831 = arith.negf %830 : vector<8x256xf32>
    %832 = math.exp %831 : vector<8x256xf32>
    %cst_261 = arith.constant 1.000000e+00 : f32
    %833 = vector.broadcast %cst_261 : f32 to vector<8x256xf32>
    %834 = arith.addf %833, %832 : vector<8x256xf32>
    %835 = arith.divf %833, %834 : vector<8x256xf32>
    %836 = vector.extract_strided_slice %820 {offsets = [0, 256], sizes = [8, 128], strides = [1, 1]} : vector<8x384xf32> to vector<8x128xf32>
    %837 = vector.extract_strided_slice %835 {offsets = [0, 0], sizes = [8, 128], strides = [1, 1]} : vector<8x256xf32> to vector<8x128xf32>
    %838 = vector.extract_strided_slice %824 {offsets = [0, 256], sizes = [8, 128], strides = [1, 1]} : vector<8x384xf32> to vector<8x128xf32>
    %839 = arith.mulf %837, %838 : vector<8x128xf32>
    %840 = arith.addf %836, %839 : vector<8x128xf32>
    %841 = math.tanh %840 : vector<8x128xf32>
    %842 = vector.extract_strided_slice %835 {offsets = [0, 128], sizes = [8, 16], strides = [1, 1]} : vector<8x256xf32> to vector<8x16xf32>
    %cst_262 = arith.constant 1.000000e+00 : f32
    %843 = vector.broadcast %cst_262 : f32 to vector<8x16xf32>
    %844 = arith.subf %843, %842 : vector<8x16xf32>
    %845 = vector.extract_strided_slice %841 {offsets = [0, 0], sizes = [8, 16], strides = [1, 1]} : vector<8x128xf32> to vector<8x16xf32>
    %846 = arith.mulf %844, %845 : vector<8x16xf32>
    %847 = arith.mulf %842, %792 : vector<8x16xf32>
    %848 = arith.addf %846, %847 : vector<8x16xf32>
    %849 = vector.extract_strided_slice %821 {offsets = [0, 0], sizes = [8, 256], strides = [1, 1]} : vector<8x384xf32> to vector<8x256xf32>
    %850 = vector.extract_strided_slice %827 {offsets = [0, 0], sizes = [8, 256], strides = [1, 1]} : vector<8x384xf32> to vector<8x256xf32>
    %851 = arith.addf %849, %850 : vector<8x256xf32>
    %852 = arith.negf %851 : vector<8x256xf32>
    %853 = math.exp %852 : vector<8x256xf32>
    %cst_263 = arith.constant 1.000000e+00 : f32
    %854 = vector.broadcast %cst_263 : f32 to vector<8x256xf32>
    %855 = arith.addf %854, %853 : vector<8x256xf32>
    %856 = arith.divf %854, %855 : vector<8x256xf32>
    %857 = vector.extract_strided_slice %821 {offsets = [0, 256], sizes = [8, 128], strides = [1, 1]} : vector<8x384xf32> to vector<8x128xf32>
    %858 = vector.extract_strided_slice %856 {offsets = [0, 0], sizes = [8, 128], strides = [1, 1]} : vector<8x256xf32> to vector<8x128xf32>
    %859 = vector.extract_strided_slice %827 {offsets = [0, 256], sizes = [8, 128], strides = [1, 1]} : vector<8x384xf32> to vector<8x128xf32>
    %860 = arith.mulf %858, %859 : vector<8x128xf32>
    %861 = arith.addf %857, %860 : vector<8x128xf32>
    %862 = math.tanh %861 : vector<8x128xf32>
    %863 = vector.extract_strided_slice %856 {offsets = [0, 128], sizes = [8, 16], strides = [1, 1]} : vector<8x256xf32> to vector<8x16xf32>
    %cst_264 = arith.constant 1.000000e+00 : f32
    %864 = vector.broadcast %cst_264 : f32 to vector<8x16xf32>
    %865 = arith.subf %864, %863 : vector<8x16xf32>
    %866 = vector.extract_strided_slice %862 {offsets = [0, 0], sizes = [8, 16], strides = [1, 1]} : vector<8x128xf32> to vector<8x16xf32>
    %867 = arith.mulf %865, %866 : vector<8x16xf32>
    %868 = arith.mulf %863, %813 : vector<8x16xf32>
    %869 = arith.addf %867, %868 : vector<8x16xf32>
    %c6_265 = arith.constant 6 : index
    %c0_266 = arith.constant 0 : index
    %c0_267 = arith.constant 0 : index
    %870 = vector.load %arg10[%c6_265, %c0_266, %c0_267] : memref<8x8x32xf32, #tpu.memory_space<vmem>>, vector<1x8x16xf32>
    %871 = vector.shape_cast %870 : vector<1x8x16xf32> to vector<8x16xf32>
    %872 = vector.shape_cast %848 : vector<8x16xf32> to vector<1x8x16xf32>
    tpu.vector_store %arg10[%c6_265, %c0_266, %c0_267], %872 {strides = array<i32>} : memref<8x8x32xf32, #tpu.memory_space<vmem>>, vector<1x8x16xf32>,
    %c1_268 = arith.constant 1 : index
    %c0_269 = arith.constant 0 : index
    %c16_270 = arith.constant 16 : index
    %873 = vector.load %arg10[%c1_268, %c0_269, %c16_270] : memref<8x8x32xf32, #tpu.memory_space<vmem>>, vector<1x8x16xf32>
    %874 = vector.shape_cast %873 : vector<1x8x16xf32> to vector<8x16xf32>
    %875 = vector.shape_cast %869 : vector<8x16xf32> to vector<1x8x16xf32>
    tpu.vector_store %arg10[%c1_268, %c0_269, %c16_270], %875 {strides = array<i32>} : memref<8x8x32xf32, #tpu.memory_space<vmem>>, vector<1x8x16xf32>,
    %c56_271 = arith.constant 56 : index
    %c0_272 = arith.constant 0 : index
    %876 = vector.load %arg11[%c56_271, %c0_272] : memref<64x768xf32, #tpu.memory_space<vmem>>, vector<8x384xf32>
    %c0_273 = arith.constant 0 : index
    %c384_274 = arith.constant 384 : index
    %877 = vector.load %arg11[%c0_273, %c384_274] : memref<64x768xf32, #tpu.memory_space<vmem>>, vector<8x384xf32>
    %cst_275 = arith.constant dense<0.000000e+00> : vector<8x384xf32>
    %878 = tpu.matmul %848, %475, %cst_275 {dimension_numbers = #tpu.dot_dimension_numbers<[1], [0], [0], [1], [0, 0, 1, 1], [], []>} : vector<8x16xf32>, vector<16x384xf32>, vector<8x384xf32> -> vector<8x384xf32>
    %879 = vector.broadcast %479 : vector<1x384xf32> to vector<8x384xf32>
    %880 = arith.addf %878, %879 : vector<8x384xf32>
    %cst_276 = arith.constant dense<0.000000e+00> : vector<8x384xf32>
    %881 = tpu.matmul %869, %477, %cst_276 {dimension_numbers = #tpu.dot_dimension_numbers<[1], [0], [0], [1], [0, 0, 1, 1], [], []>} : vector<8x16xf32>, vector<16x384xf32>, vector<8x384xf32> -> vector<8x384xf32>
    %882 = vector.broadcast %481 : vector<1x384xf32> to vector<8x384xf32>
    %883 = arith.addf %881, %882 : vector<8x384xf32>
    %884 = vector.extract_strided_slice %876 {offsets = [0, 0], sizes = [8, 256], strides = [1, 1]} : vector<8x384xf32> to vector<8x256xf32>
    %885 = vector.extract_strided_slice %880 {offsets = [0, 0], sizes = [8, 256], strides = [1, 1]} : vector<8x384xf32> to vector<8x256xf32>
    %886 = arith.addf %884, %885 : vector<8x256xf32>
    %887 = arith.negf %886 : vector<8x256xf32>
    %888 = math.exp %887 : vector<8x256xf32>
    %cst_277 = arith.constant 1.000000e+00 : f32
    %889 = vector.broadcast %cst_277 : f32 to vector<8x256xf32>
    %890 = arith.addf %889, %888 : vector<8x256xf32>
    %891 = arith.divf %889, %890 : vector<8x256xf32>
    %892 = vector.extract_strided_slice %876 {offsets = [0, 256], sizes = [8, 128], strides = [1, 1]} : vector<8x384xf32> to vector<8x128xf32>
    %893 = vector.extract_strided_slice %891 {offsets = [0, 0], sizes = [8, 128], strides = [1, 1]} : vector<8x256xf32> to vector<8x128xf32>
    %894 = vector.extract_strided_slice %880 {offsets = [0, 256], sizes = [8, 128], strides = [1, 1]} : vector<8x384xf32> to vector<8x128xf32>
    %895 = arith.mulf %893, %894 : vector<8x128xf32>
    %896 = arith.addf %892, %895 : vector<8x128xf32>
    %897 = math.tanh %896 : vector<8x128xf32>
    %898 = vector.extract_strided_slice %891 {offsets = [0, 128], sizes = [8, 16], strides = [1, 1]} : vector<8x256xf32> to vector<8x16xf32>
    %cst_278 = arith.constant 1.000000e+00 : f32
    %899 = vector.broadcast %cst_278 : f32 to vector<8x16xf32>
    %900 = arith.subf %899, %898 : vector<8x16xf32>
    %901 = vector.extract_strided_slice %897 {offsets = [0, 0], sizes = [8, 16], strides = [1, 1]} : vector<8x128xf32> to vector<8x16xf32>
    %902 = arith.mulf %900, %901 : vector<8x16xf32>
    %903 = arith.mulf %898, %848 : vector<8x16xf32>
    %904 = arith.addf %902, %903 : vector<8x16xf32>
    %905 = vector.extract_strided_slice %877 {offsets = [0, 0], sizes = [8, 256], strides = [1, 1]} : vector<8x384xf32> to vector<8x256xf32>
    %906 = vector.extract_strided_slice %883 {offsets = [0, 0], sizes = [8, 256], strides = [1, 1]} : vector<8x384xf32> to vector<8x256xf32>
    %907 = arith.addf %905, %906 : vector<8x256xf32>
    %908 = arith.negf %907 : vector<8x256xf32>
    %909 = math.exp %908 : vector<8x256xf32>
    %cst_279 = arith.constant 1.000000e+00 : f32
    %910 = vector.broadcast %cst_279 : f32 to vector<8x256xf32>
    %911 = arith.addf %910, %909 : vector<8x256xf32>
    %912 = arith.divf %910, %911 : vector<8x256xf32>
    %913 = vector.extract_strided_slice %877 {offsets = [0, 256], sizes = [8, 128], strides = [1, 1]} : vector<8x384xf32> to vector<8x128xf32>
    %914 = vector.extract_strided_slice %912 {offsets = [0, 0], sizes = [8, 128], strides = [1, 1]} : vector<8x256xf32> to vector<8x128xf32>
    %915 = vector.extract_strided_slice %883 {offsets = [0, 256], sizes = [8, 128], strides = [1, 1]} : vector<8x384xf32> to vector<8x128xf32>
    %916 = arith.mulf %914, %915 : vector<8x128xf32>
    %917 = arith.addf %913, %916 : vector<8x128xf32>
    %918 = math.tanh %917 : vector<8x128xf32>
    %919 = vector.extract_strided_slice %912 {offsets = [0, 128], sizes = [8, 16], strides = [1, 1]} : vector<8x256xf32> to vector<8x16xf32>
    %cst_280 = arith.constant 1.000000e+00 : f32
    %920 = vector.broadcast %cst_280 : f32 to vector<8x16xf32>
    %921 = arith.subf %920, %919 : vector<8x16xf32>
    %922 = vector.extract_strided_slice %918 {offsets = [0, 0], sizes = [8, 16], strides = [1, 1]} : vector<8x128xf32> to vector<8x16xf32>
    %923 = arith.mulf %921, %922 : vector<8x16xf32>
    %924 = arith.mulf %919, %869 : vector<8x16xf32>
    %925 = arith.addf %923, %924 : vector<8x16xf32>
    %c7_281 = arith.constant 7 : index
    %c0_282 = arith.constant 0 : index
    %c0_283 = arith.constant 0 : index
    %926 = vector.load %arg10[%c7_281, %c0_282, %c0_283] : memref<8x8x32xf32, #tpu.memory_space<vmem>>, vector<1x8x16xf32>
    %927 = vector.shape_cast %926 : vector<1x8x16xf32> to vector<8x16xf32>
    %928 = vector.shape_cast %904 : vector<8x16xf32> to vector<1x8x16xf32>
    tpu.vector_store %arg10[%c7_281, %c0_282, %c0_283], %928 {strides = array<i32>} : memref<8x8x32xf32, #tpu.memory_space<vmem>>, vector<1x8x16xf32>,
    %c0_284 = arith.constant 0 : index
    %c0_285 = arith.constant 0 : index
    %c16_286 = arith.constant 16 : index
    %929 = vector.load %arg10[%c0_284, %c0_285, %c16_286] : memref<8x8x32xf32, #tpu.memory_space<vmem>>, vector<1x8x16xf32>
    %930 = vector.shape_cast %929 : vector<1x8x16xf32> to vector<8x16xf32>
    %931 = vector.shape_cast %925 : vector<8x16xf32> to vector<1x8x16xf32>
    tpu.vector_store %arg10[%c0_284, %c0_285, %c16_286], %931 {strides = array<i32>} : memref<8x8x32xf32, #tpu.memory_space<vmem>>, vector<1x8x16xf32>,
    return
  }
  func.func @transform_0(%arg0: i32) -> (i32, i32, i32) {
    %c0_i32 = arith.constant 0 : i32
    %c0_i32_0 = arith.constant 0 : i32
    %c0_i32_1 = arith.constant 0 : i32
    %c0_i32_2 = arith.constant 0 : i32
    return %c0_i32, %c0_i32_0, %c0_i32_1 : i32, i32, i32
  }
  func.func @transform_1(%arg0: i32) -> (i32, i32) {
    %c0_i32 = arith.constant 0 : i32
    %c0_i32_0 = arith.constant 0 : i32
    %c0_i32_1 = arith.constant 0 : i32
    return %c0_i32, %c0_i32_0 : i32, i32
  }
  func.func @transform_2(%arg0: i32) -> (i32, i32) {
    %c0_i32 = arith.constant 0 : i32
    %c0_i32_0 = arith.constant 0 : i32
    %c0_i32_1 = arith.constant 0 : i32
    return %c0_i32, %c0_i32_0 : i32, i32
  }
  func.func @transform_3(%arg0: i32) -> (i32, i32, i32) {
    %c0_i32 = arith.constant 0 : i32
    %c0_i32_0 = arith.constant 0 : i32
    %c0_i32_1 = arith.constant 0 : i32
    %c0_i32_2 = arith.constant 0 : i32
    return %c0_i32, %c0_i32_0, %c0_i32_1 : i32, i32, i32
  }
  func.func @transform_4(%arg0: i32) -> (i32, i32, i32) {
    %c0_i32 = arith.constant 0 : i32
    %c0_i32_0 = arith.constant 0 : i32
    %c0_i32_1 = arith.constant 0 : i32
    %c0_i32_2 = arith.constant 0 : i32
    return %c0_i32, %c0_i32_0, %c0_i32_1 : i32, i32, i32
  }
  func.func @transform_5(%arg0: i32) -> (i32, i32) {
    %c0_i32 = arith.constant 0 : i32
    %c0_i32_0 = arith.constant 0 : i32
    %c0_i32_1 = arith.constant 0 : i32
    return %c0_i32, %c0_i32_0 : i32, i32
  }
  func.func @transform_6(%arg0: i32) -> (i32, i32) {
    %c0_i32 = arith.constant 0 : i32
    %c0_i32_0 = arith.constant 0 : i32
    %c0_i32_1 = arith.constant 0 : i32
    return %c0_i32, %c0_i32_0 : i32, i32
  }
  func.func @transform_7(%arg0: i32) -> (i32, i32, i32) {
    %c0_i32 = arith.constant 0 : i32
    %c0_i32_0 = arith.constant 0 : i32
    %c0_i32_1 = arith.constant 0 : i32
    %c0_i32_2 = arith.constant 0 : i32
    return %c0_i32, %c0_i32_0, %c0_i32_1 : i32, i32, i32
  }
  func.func @transform_8(%arg0: i32) -> (i32, i32, i32) {
    %c0_i32 = arith.constant 0 : i32
    %c0_i32_0 = arith.constant 0 : i32
    %c0_i32_1 = arith.constant 0 : i32
    %c0_i32_2 = arith.constant 0 : i32
    return %c0_i32, %c0_i32_0, %c0_i32_1 : i32, i32, i32
  }
  func.func @transform_9(%arg0: i32) -> (i32, i32, i32) {
    %c0_i32 = arith.constant 0 : i32
    %c0_i32_0 = arith.constant 0 : i32
    %c0_i32_1 = arith.constant 0 : i32
    %c0_i32_2 = arith.constant 0 : i32
    return %c0_i32, %c0_i32_0, %c0_i32_1 : i32, i32, i32
  }
}

</mosaic_0001>

<bundles_post_ra>
// kernel: word_attention_forward.3
= control target key start
LH: loop header
LB: loop body
LE: loop exit
PB: predicated region body
PF: predicated region fallthrough
CT: control target
= control target key end

     0   :  { %s1314_s18 = smov 0   ;;  %s1435_s0 = inlined_call_operand.vmem [shape: f32[2,8,32], index: 0, kind: input, shape index: {}]   ;;  %s1436_s1 = inlined_call_operand.vmem [shape: f32[2,3,8,32], index: 1, kind: input, shape index: {}]   ;;  %s1437_s2 = inlined_call_operand.vmem [shape: f32[2,8,32], index: 2, kind: input, shape index: {}]   ;;  %s1438_s3 = inlined_call_operand.vmem [shape: f32[2,3,8,32], index: 3, kind: input, shape index: {}]   ;;  %s1439_s4 = inlined_call_operand.vmem [shape: f32[2,3,32], index: 4, kind: output, shape index: {0}]   ;;  %s1440_s5 = inlined_call_operand.vmem [shape: f32[2,3,8], index: 5, kind: output, shape index: {1}]  }
   0x1 LB: > { %s1156_s19 = sadd.s32 4294967295, %s1280_s18   ;;  %p1160_p0 = scmp.ge.s32.totalorder %s1280_s18, 1  ;;  %s1280_s18 = sphi %s1314_s18, %s16_s18  }
   0x2   : > { %p218_p1 = scmp.lt.s32.totalorder %s1280_s18, 3 }
   0x4   : > { %p219_p2 = pnand %p1160_p0, %p218_p1 }
   0x5   : > { %p262_p3 = scmp.lt.s32.totalorder (!%p219_p2), %s1156_s19, 1  ;;  %v1282_v0 = vmov (!%p219_p2), 0.0   ;;  %vm1283_vm0 = vmmov (!%p219_p2), 0   ;;  %vm292_vm1 = vcmask (!%p219_p2), 261120   ;;  %vm448_vm3 = vcmask (!%p219_p2), 64512  }
   0x6   : > { %222 = sbr.rel (%p219_p2) target bundleno = 1866 (0x74a), region = 36  ;;  %1206 = vmatprep.subr.mxu0 (!%p219_p2), %v1282_v0  ;;  %1211 = vmatprep.subr.mxu1 (!%p219_p2), %v1282_v0  ;;  %vm467_vm4 = vcmask (!%p219_p2), 57344   ;;  %vm542_vm5 = vcmask (!%p219_p2), 253952  }
   0x7   : > { %1208 = vmatprep.mubr.msk.f32.mxu0 (!%p219_p2), %vm1283_vm0, %v1282_v0  ;;  %1213 = vmatprep.mubr.msk.f32.mxu1 (!%p219_p2), %vm1283_vm0, %v1282_v0 }
   0xd   : > { %s1442_s19 = smov (!%p262_p3, %s1156_s19), 1 }
   0xe   : > { %s1251_s20 = smul.u32 24, %s1442_s19  ;;  %s1161_s21 = sshll.u32 %s1442_s19, 3 }
   0xf   : > { %s265_s24 = scalar_lea.vmem %s1435_s0, %s1161_s21  ;;  %s274_s27 = scalar_lea.vmem %s1437_s2, %s1161_s21 }
  0x10   : > { %s1341_s30 = scalar_lea.vmem %s1436_s1, %s1251_s20  ;;  %s1346_s8 = scalar_lea.vmem %s1438_s3, %s1251_s20  ;;  %v1352_v3 = vld [vmem:[%s265_s24] sm:$0xff] }
  0x11   : > { %v290_v1 = vld [vmem:[%s1341_s30] sm:$0xff]  ;;  %v1172_v17 = vld [vmem:[%s1341_s30 + $0x8] sm:$0xff]  ;;  %s1165_s9 = sshll.u32 %s1442_s19, 2  ;;  %v1179_v43 = vld [vmem:[%s1341_s30 + $0x10] sm:$0xff] }
  0x12   : > { %v291_v2 = vld [vmem:[%s1346_s8] sm:$0xff]  ;;  %1207 = vmatpush3.xpose.msk.msra.mxu0 %vm292_vm1, %v290_v1  ;;  %s1382_s12 = scalar_lea.vmem %s1440_s5, %s1165_s9  ;;  %v1173_v28 = vld [vmem:[%s1346_s8 + $0x8] sm:$0xff]  ;;  %s1399_s15 = scalar_lea.vmem %s1439_s4, %s1165_s9  ;;  %v1180_v54 = vld [vmem:[%s1346_s8 + $0x10] sm:$0xff] }
  0x13   : > { %1212 = vmatpush3.xpose.msk.msra.mxu1 %vm292_vm1, %v291_v2  ;;  %v1354_v4 = vld [vmem:[%s274_s27] sm:$0xff]  ;;  %1216 = vmatprep.subr.mxu0 %v1282_v0 }
  0x14   : > { %1221 = vmatprep.subr.mxu1 %v1282_v0 }
  0x15   : > { %1209 = vmatmul.mubr.msk.f32.vlgmr.msra.gmra.mrb[0].mxu0 %vm292_vm1, %v1352_v3 }
  0x16   : > { %1214 = vmatmul.mubr.msk.f32.vlgmr.msra.gmra.mrb[0].mxu1 %vm292_vm1, %v1354_v4  ;;  %1217 = vmatpush3.msra.mxu0 %v290_v1 }
  0x17   : > { %1218 = vmatprep.mubr.msk.f32.mxu0 %vm1283_vm0, %v1282_v0  ;;  %1226 = vmatprep.subr.mxu0 %v1282_v0 }
  0x18   : > { %1223 = vmatprep.mubr.msk.f32.mxu1 %vm1283_vm0, %v1282_v0  ;;  %1222 = vmatpush3.xpose.msk.msra.mxu1 %vm292_vm1, %v1172_v17 }
  0x19   : > { %1231 = vmatprep.subr.mxu1 %v1282_v0 }
  0x1b   : > { %1224 = vmatmul.mubr.msk.f32.vlgmr.msra.gmra.mrb[2].mxu1 %vm292_vm1, %v1352_v3 }
  0x1c   : > { %1232 = vmatpush3.msra.mxu1 %v1172_v17  ;;  %1233 = vmatprep.mubr.msk.f32.mxu1 %vm1283_vm0, %v1282_v0 }
  0x1d   : > { %1241 = vmatprep.subr.mxu1 %v1282_v0 }
  0xe8   : > { %v365_v5 = vpop.f32.mrb[0].mxu0 }
  0xe9   : > { %v442_v6 = vpop.f32.mrb[0].mxu1  ;;  %v369_v7 = vmul.f32 0.17677669, %v365_v5  ;;  %v1210_v8 = vpop.f32.mrb[1].mxu0 }
  0xea   : > { %vm446_vm2 = vcmp.ne.f32.partialorder %v442_v6, 0.0  ;;  %v1215_v9 = vpop.f32.mrb[1].mxu1 }
  0xeb   : > { %v447_v10 = vsel %vm446_vm2, %v369_v7, -1e+09 }
  0xec   : > { %v449_v11 = vsel %vm448_vm3, %v447_v10, -inf }
  0xed   : > { %450 = vmax.xlane.f32.xlu0 %v449_v11 }
  0xee   : > { %v617_v29 = vpop.f32.mrb[2].mxu1 }
  0xef   : > { %v1225_v30 = vpop.f32.mrb[3].mxu1  ;;  %v621_v33 = vmul.f32 0.17677669, %v617_v29 }
 0x17a   : > { %v451_v12 = vpop.xlane.xlu0 %450 }
 0x17b   : > { %v452_v13 = vsub.f32 %v447_v10, %v451_v12 }
 0x17d   : > { %v453_v14 = vmul.f32 1.442695, %v452_v13 }
 0x17f   : > { %1262 = vpow2.f32 %v453_v14 }
 0x189   : > { %v1263_v15 = vpop.eup %1262 }
 0x18a   : > { %v455_v16 = vsel %vm448_vm3, %v1263_v15, 0.0 }
 0x18b   : > { %456 = vadd.xlane.f32.xlu0 %v455_v16 }
 0x218   : > { %v457_v18 = vpop.xlane.xlu0 %456 }
 0x219   : > { %1264 = vrcp.f32 %v457_v18 }
 0x223   : > { %v1265_v19 = vpop.eup %1264 }
 0x224   : > { %v459_v20 = vmul.f32 %v1265_v19, %v1263_v15 }
 0x226   : > { %v460_v21 = vsel %vm448_vm3, %v459_v20, 0.0 }
 0x227   : > { %v461_v22 = vrot.slane %v460_v21, 4 }
 0x229   : > { %v462_v23 = vadd.f32 %v461_v22, %v460_v21 }
 0x22b   : > { %v463_v24 = vrot.slane %v462_v23, 2 }
 0x22d   : > { %v464_v25 = vadd.f32 %v463_v24, %v462_v23 }
 0x22f   : > { %v465_v26 = vrot.slane %v464_v25, 1 }
 0x231   : > { %v466_v27 = vadd.f32 %v465_v26, %v464_v25 }
 0x233   : > { %1219 = vmatmul.mubr.msk.f32.vlgmr.msra.gmra.mrb[2].mxu0 %vm448_vm3, %v466_v27  ;;  %468 = vst.msk [vmem:[%s1382_s12] sm:$0x1] %vm467_vm4, %v466_v27 }
 0x234   : > { %1227 = vmatpush3.xpose.msk.msra.mxu0 %vm292_vm1, %v1173_v28  ;;  %1228 = vmatprep.mubr.msk.f32.mxu0 %vm1283_vm0, %v1282_v0 }
 0x235   : > { %1236 = vmatprep.subr.mxu0 %v1282_v0 }
 0x237   : > { %1229 = vmatmul.mubr.msk.f32.vlgmr.msra.gmra.mrb[4].mxu0 %vm292_vm1, %v1354_v4 }
 0x238   : > { %1238 = vmatprep.mubr.msk.f32.mxu0 %vm1283_vm0, %v1282_v0  ;;  %1237 = vmatpush3.xpose.msk.msra.mxu0 %vm292_vm1, %v1179_v43 }
 0x239   : > { %1246 = vmatprep.subr.mxu0 %v1282_v0 }
 0x23b   : > { %1239 = vmatmul.mubr.msk.f32.vlgmr.msra.gmra.mrb[6].mxu0 %vm292_vm1, %v1352_v3 }
 0x23c   : > { %1247 = vmatpush3.msra.mxu0 %v1179_v43  ;;  %1248 = vmatprep.mubr.msk.f32.mxu0 %vm1283_vm0, %v1282_v0 }
 0x306   : > { %v538_v31 = vpop.f32.mrb[2].mxu0 }
 0x307   : > { %543 = vst.msk [vmem:[%s1399_s15] sm:$0x1] %vm542_vm5, %v538_v31  ;;  %v1220_v32 = vpop.f32.mrb[3].mxu0 }
 0x30a   : > { %v691_v34 = vpop.f32.mrb[4].mxu0 }
 0x30b   : > { %vm695_vm6 = vcmp.ne.f32.partialorder %v691_v34, 0.0  ;;  %v1230_v35 = vpop.f32.mrb[5].mxu0 }
 0x30c   : > { %v696_v36 = vsel %vm695_vm6, %v621_v33, -1e+09 }
 0x30d   : > { %v697_v37 = vsel %vm448_vm3, %v696_v36, -inf }
 0x30e   : > { %698 = vmax.xlane.f32.xlu1 %v697_v37  ;;  %v863_v55 = vpop.f32.mrb[6].mxu0 }
 0x30f   : > { %v1240_v56 = vpop.f32.mrb[7].mxu0  ;;  %v867_v59 = vmul.f32 0.17677669, %v863_v55 }
 0x39b   : > { %v699_v38 = vpop.xlane.xlu1 %698 }
 0x39c   : > { %v700_v39 = vsub.f32 %v696_v36, %v699_v38 }
 0x39e   : > { %v701_v40 = vmul.f32 1.442695, %v700_v39 }
 0x3a0   : > { %1266 = vpow2.f32 %v701_v40 }
 0x3aa   : > { %v1267_v41 = vpop.eup %1266 }
 0x3ab   : > { %v703_v42 = vsel %vm448_vm3, %v1267_v41, 0.0 }
 0x3ac   : > { %704 = vadd.xlane.f32.xlu1 %v703_v42 }
 0x439   : > { %v705_v44 = vpop.xlane.xlu1 %704 }
 0x43a   : > { %1268 = vrcp.f32 %v705_v44 }
 0x444   : > { %v1269_v45 = vpop.eup %1268 }
 0x445   : > { %v707_v46 = vmul.f32 %v1269_v45, %v1267_v41 }
 0x447   : > { %v708_v47 = vsel %vm448_vm3, %v707_v46, 0.0 }
 0x448   : > { %v709_v48 = vrot.slane %v708_v47, 4 }
 0x44a   : > { %v710_v49 = vadd.f32 %v709_v48, %v708_v47 }
 0x44c   : > { %v711_v50 = vrot.slane %v710_v49, 2 }
 0x44e   : > { %v712_v51 = vadd.f32 %v711_v50, %v710_v49 }
 0x450   : > { %v713_v52 = vrot.slane %v712_v51, 1 }
 0x452   : > { %v714_v53 = vadd.f32 %v713_v52, %v712_v51 }
 0x454   : > { %715 = vst.msk [vmem:[%s1382_s12 + $0x1] sm:$0x1] %vm467_vm4, %v714_v53  ;;  %1234 = vmatmul.mubr.msk.f32.vlgmr.msra.gmra.mrb[4].mxu1 %vm448_vm3, %v714_v53 }
 0x455   : > { %1242 = vmatpush3.xpose.msk.msra.mxu1 %vm292_vm1, %v1180_v54  ;;  %1243 = vmatprep.mubr.msk.f32.mxu1 %vm1283_vm0, %v1282_v0 }
 0x458   : > { %1244 = vmatmul.mubr.msk.f32.vlgmr.msra.gmra.mrb[6].mxu1 %vm292_vm1, %v1354_v4 }
 0x527   : > { %v785_v57 = vpop.f32.mrb[4].mxu1 }
 0x528   : > { %789 = vst.msk [vmem:[%s1399_s15 + $0x1] sm:$0x1] %vm542_vm5, %v785_v57  ;;  %v1235_v58 = vpop.f32.mrb[5].mxu1 }
 0x52b   : > { %v937_v60 = vpop.f32.mrb[6].mxu1 }
 0x52c   : > { %vm941_vm7 = vcmp.ne.f32.partialorder %v937_v60, 0.0  ;;  %v1245_v61 = vpop.f32.mrb[7].mxu1 }
 0x52d   : > { %v942_v62 = vsel %vm941_vm7, %v867_v59, -1e+09 }
 0x52e   : > { %v943_v63 = vsel %vm448_vm3, %v942_v62, -inf }
 0x52f   : > { %944 = vmax.xlane.f32.xlu0 %v943_v63 }
 0x5bc   : > { %v945_v1 = vpop.xlane.xlu0 %944 }
 0x5bd   : > { %v946_v2 = vsub.f32 %v942_v62, %v945_v1 }
 0x5bf   : > { %v947_v0 = vmul.f32 1.442695, %v946_v2 }
 0x5c1   : > { %1270 = vpow2.f32 %v947_v0 }
 0x5cb   : > { %v1271_v3 = vpop.eup %1270 }
 0x5cc   : > { %v949_v4 = vsel %vm448_vm3, %v1271_v3, 0.0 }
 0x5cd   : > { %950 = vadd.xlane.f32.xlu1 %v949_v4 }
 0x65a   : > { %v951_v5 = vpop.xlane.xlu1 %950 }
 0x65b   : > { %1272 = vrcp.f32 %v951_v5 }
 0x665   : > { %v1273_v6 = vpop.eup %1272 }
 0x666   : > { %v953_v7 = vmul.f32 %v1273_v6, %v1271_v3 }
 0x668   : > { %v954_v8 = vsel %vm448_vm3, %v953_v7, 0.0 }
 0x669   : > { %v955_v9 = vrot.slane %v954_v8, 4 }
 0x66b   : > { %v956_v10 = vadd.f32 %v955_v9, %v954_v8 }
 0x66d   : > { %v957_v11 = vrot.slane %v956_v10, 2 }
 0x66f   : > { %v958_v12 = vadd.f32 %v957_v11, %v956_v10 }
 0x671   : > { %v959_v13 = vrot.slane %v958_v12, 1 }
 0x673   : > { %v960_v14 = vadd.f32 %v959_v13, %v958_v12 }
 0x675   : > { %961 = vst.msk [vmem:[%s1382_s12 + $0x2] sm:$0x1] %vm467_vm4, %v960_v14  ;;  %1249 = vmatmul.mubr.msk.f32.vlgmr.msra.gmra.mrb[8].mxu0 %vm448_vm3, %v960_v14 }
 0x748   : > { %v1031_v15 = vpop.f32.mrb[8].mxu0 }
 0x749   : > { %1035 = vst.msk [vmem:[%s1399_s15 + $0x2] sm:$0x1] %vm542_vm5, %v1031_v15  ;;  %v1250_v16 = vpop.f32.mrb[9].mxu0 }
 0x74a PF: > { %s16_s18 = sadd.s32 1, %s1280_s18  }
 0x74b   : > { %p13_p4 = scmp.ge.s32.totalorder %s16_s18, 4  }
 0x74d   :  { %15 = sbr.rel (!%p13_p4) target bundleno = 1 (0x1), region = 91 }

// kernel: word_attention_forward.2
= control target key start
LH: loop header
LB: loop body
LE: loop exit
PB: predicated region body
PF: predicated region fallthrough
CT: control target
= control target key end

     0   :  { %v9164_v3 = vmov 0.0   ;;  %vm96_vm0 = vcmask 261120   ;;  %v9162_v37 = vmov 0.0|0.0   ;;  %vm7758_vm1 = vmmov 0   ;;  %s9149_s1 = inlined_call_operand.vmem [shape: f32[32,768], index: 1, kind: input, shape index: {}]   ;;  %s9150_s0 = inlined_call_operand.vmem [shape: f32[8,8,32], index: 0, kind: input, shape index: {}]   ;;  %s9151_s3 = inlined_call_operand.vmem [shape: f32[2,16,384], index: 3, kind: input, shape index: {}]   ;;  %s9152_s2 = inlined_call_operand.vmem [shape: f32[1,768], index: 2, kind: input, shape index: {}]   ;;  %s9153_s4 = inlined_call_operand.vmem [shape: f32[2,1,384], index: 4, kind: input, shape index: {}]   ;;  %s9154_s5 = inlined_call_operand.vmem [shape: f32[32,768], index: 5, kind: input, shape index: {}]   ;;  %s9155_s7 = inlined_call_operand.vmem [shape: f32[2,16,384], index: 7, kind: input, shape index: {}]   ;;  %s9156_s6 = inlined_call_operand.vmem [shape: f32[1,768], index: 6, kind: input, shape index: {}]   ;;  %s9157_s8 = inlined_call_operand.vmem [shape: f32[2,1,384], index: 8, kind: input, shape index: {}]   ;;  %s9158_s9 = inlined_call_operand.vmem [shape: f32[8,8,32], index: 9, kind: output, shape index: {}]  }
   0x1   :  { %v41_v0 = vld [vmem:[%s9149_s1 + $0x8] sm:$0xff]  ;;  %v47_v1 = vld [vmem:[%s9149_s1 + $0x38] sm:$0xff]  ;;  %185 = vmatprep.mubr.f32.mxu0 %v9164_v3  ;;  %298 = vmatprep.mubr.f32.mxu1 %v9164_v3  ;;  %v40_v6 = vld [vmem:[%s9149_s1] sm:$0xff]  ;;  %vm546_vm2 = vcmask 130048   ;;  %vm896_vm3 = vcmask 261248  }
   0x2   :  { %v43_v2 = vld [vmem:[%s9149_s1 + $0x18] sm:$0xff]  ;;  %v7064_v4 = vpack.c.bf16 %v47_v1, %v41_v0  ;;  %v49_v5 = vld [vmem:[%s9149_s1 + $0x48] sm:$0xff]  ;;  %v46_v7 = vld [vmem:[%s9149_s1 + $0x30] sm:$0xff]  ;;  %v66_v0 = vlaneseq }
   0x3   :  { %v7072_v8 = vpack.c.bf16 %v49_v5, %v43_v2  ;;  %v7066_v9 = vpack.c.bf16 %v46_v7, %v40_v6  ;;  %v42_v10 = vld [vmem:[%s9149_s1 + $0x10] sm:$0xff]  ;;  %v48_v11 = vld [vmem:[%s9149_s1 + $0x40] sm:$0xff]  ;;  %v53_v12 = vld [vmem:[%s9149_s1 + $0x68] sm:$0xff] }
   0x4   :  { %7065 = vmatprep.subr.bf16.mxu0 %v7064_v4  ;;  %v7074_v13 = vpack.c.bf16 %v48_v11, %v42_v10  ;;  %v59_v14 = vld [vmem:[%s9149_s1 + $0x98] sm:$0xff]  ;;  %v61_v16 = vld [vmem:[%s9149_s1 + $0xa8] sm:$0xff]  ;;  %v52_v19 = vld [vmem:[%s9149_s1 + $0x60] sm:$0xff]  ;;  %v8039_v1 = vshrl.u32 %v66_v0, 7 }
   0x5   :  { %v55_v15 = vld [vmem:[%s9149_s1 + $0x78] sm:$0xff]  ;;  %7073 = vmatprep.subr.bf16.mxu1 %v7072_v8  ;;  %7067 = vmatpush1.bf16.msra.mxu0 %v7066_v9  ;;  %v7068_v17 = vpack.c.bf16 %v59_v14, %v53_v12  ;;  %v58_v20 = vld [vmem:[%s9149_s1 + $0x90] sm:$0xff]  ;;  %v60_v23 = vld [vmem:[%s9149_s1 + $0xa0] sm:$0xff] }
   0x6   :  { %v7076_v18 = vpack.c.bf16 %v61_v16, %v55_v15  ;;  %v54_v21 = vld [vmem:[%s9149_s1 + $0x70] sm:$0xff]  ;;  %7075 = vmatpush1.bf16.msra.mxu1 %v7074_v13  ;;  %v7070_v22 = vpack.c.bf16 %v58_v20, %v52_v19  ;;  %v45_v24 = vld [vmem:[%s9149_s1 + $0x28] sm:$0xff]  ;;  %v51_v26 = vld [vmem:[%s9149_s1 + $0x58] sm:$0xff]  ;;  %9172 = vst [vmem:[#allocation4_spill] sm:$0xff] %v8039_v1  ;;  %v9161_v2 = vsub.s32 3, %v8039_v1  ;;  %v8051_v6 = vsub.s32 2, %v8039_v1 }
   0x7   :  { %7069 = vmatprep.subr.bf16.mxu0 %v7068_v17  ;;  %v7078_v25 = vpack.c.bf16 %v60_v23, %v54_v21  ;;  %v44_v27 = vld [vmem:[%s9149_s1 + $0x20] sm:$0xff]  ;;  %v50_v28 = vld [vmem:[%s9149_s1 + $0x50] sm:$0xff]  ;;  %v7080_v29 = vpack.c.bf16 %v51_v26, %v45_v24  ;;  %v57_v32 = vld [vmem:[%s9149_s1 + $0x88] sm:$0xff] }
   0x8   :  { %7077 = vmatprep.subr.bf16.mxu1 %v7076_v18  ;;  %v7875_v30 = vld [vmem:[%s9150_s0] sm:$0xff]  ;;  %v7082_v31 = vpack.c.bf16 %v50_v28, %v44_v27  ;;  %v63_v33 = vld [vmem:[%s9149_s1 + $0xb8] sm:$0xff]  ;;  %v62_v36 = vld [vmem:[%s9149_s1 + $0xb0] sm:$0xff] }
   0x9   :  { %7071 = vmatpush1.bf16.msra.mxu0 %v7070_v22  ;;  %v7084_v34 = vpack.c.bf16 %v63_v33, %v57_v32  ;;  %v56_v35 = vld [vmem:[%s9149_s1 + $0x80] sm:$0xff]  ;;  %v510_v38 = vld [vmem:[%s9151_s3 + $0x10] sm:$0xff]  ;;  %v513_v39 = vld [vmem:[%s9151_s3 + $0x28] sm:$0xff]  ;;  %v9160_v32 = vsub.s32 4, %v8039_v1 }
   0xa   :  { %7079 = vmatpush1.bf16.msra.mxu1 %v7078_v25  ;;  %7081 = vmatprep.subr.bf16.mxu0 %v7080_v29  ;;  %v509_v40 = vld [vmem:[%s9151_s3 + $0x8] sm:$0xff]  ;;  %v512_v41 = vld [vmem:[%s9151_s3 + $0x20] sm:$0xff]  ;;  %v7911_v43 = vpack.c.bf16 %v513_v39, %v510_v38  ;;  %v6573_v44 = vld [vmem:[%s9151_s3 + $0x38] sm:$0xff]  ;;  %v7086_v46 = vpack.c.bf16 %v62_v36, %v56_v35  ;;  %v9159_v35 = vsub.s32 5, %v8039_v1 }
   0xb   :  { %7092 = vmatprep.subr.bf16.mxu1 %v9162_v37  ;;  %v7909_v42 = vld [vmem:[%s9150_s0 + $0x8] sm:$0xff]  ;;  %v6576_v45 = vld [vmem:[%s9151_s3 + $0x50] sm:$0xff]  ;;  %v7924_v48 = vpack.c.bf16 %v512_v41, %v509_v40  ;;  %v35_v50 = vld [vmem:[%s9150_s0 + $0x18] sm:$0xff] }
   0xc   :  { %6548 = vmatmul.mubr.msk.f32.vlgmr.msra.gmra.mrb[0].mxu0 %vm96_vm0, %v7875_v30  ;;  %v7921_v47 = vpack.c.bf16 %v6576_v45, %v6573_v44  ;;  %v34_v49 = vld [vmem:[%s9150_s0 + $0x10] sm:$0xff]  ;;  %v36_v51 = vld [vmem:[%s9150_s0 + $0x20] sm:$0xff]  ;;  %v37_v52 = vld [vmem:[%s9150_s0 + $0x28] sm:$0xff]  ;;  %v8105_v44 = vsub.s32 0, %v8039_v1 }
   0xd   :  { %6556 = vmatmul.mubr.msk.f32.vlgmr.msra.gmra.mrb[0].mxu1 %vm96_vm0, %v7875_v30  ;;  %7083 = vmatpush1.bf16.msra.mxu0 %v7082_v31  ;;  %v38_v53 = vld [vmem:[%s9150_s0 + $0x30] sm:$0xff]  ;;  %v39_v54 = vld [vmem:[%s9150_s0 + $0x38] sm:$0xff]  ;;  %v508_v55 = vld [vmem:[%s9151_s3] sm:$0xff] }
   0xe   :  { %191 = vmatprep.mubr.f32.mxu0 %v9164_v3  ;;  %304 = vmatprep.mubr.f32.mxu1 %v9164_v3  ;;  %v511_v56 = vld [vmem:[%s9151_s3 + $0x18] sm:$0xff]  ;;  %v6572_v57 = vld [vmem:[%s9151_s3 + $0x30] sm:$0xff]  ;;  %v6575_v58 = vld [vmem:[%s9151_s3 + $0x48] sm:$0xff]  ;;  %9173 = vst [vmem:[#allocation5_spill] sm:$0xff] %v8105_v44 }
   0xf   :  { %7085 = vmatprep.subr.bf16.mxu0 %v7084_v34  ;;  %7094 = vmatpush3.bf16.msra.mxu1 %v7911_v43  ;;  %v7987_v59 = vpack.c.bf16 %v511_v56, %v508_v55  ;;  %v7991_v60 = vpack.c.bf16 %v6575_v58, %v6572_v57  ;;  %v6574_v61 = vld [vmem:[%s9151_s3 + $0x40] sm:$0xff]  ;;  %v6577_v62 = vld [vmem:[%s9151_s3 + $0x58] sm:$0xff] }
  0x10   :  { %6549 = vmatmul.mubr.msk.f32.gmra.mrb[2].mxu0 %vm96_vm0, %v7909_v42  ;;  %7096 = vmatprep.subr.bf16.mxu1 %v7921_v47  ;;  %v8005_v63 = vpack.c.bf16 %v6577_v62, %v6574_v61  ;;  %v8045_v4 = vld [vmem:[%s9152_s2] sm:$0x3f] }
  0x11   :  { %6557 = vmatmul.mubr.msk.f32.gmra.mrb[2].mxu1 %vm96_vm0, %v7909_v42  ;;  %197 = vmatprep.mubr.f32.mxu0 %v9164_v3  ;;  %v81_v5 = vrot.slane %v8045_v4, %v9161_v2  ;;  %v8059_v10 = vrot.slane %v8045_v4, %v8051_v6  ;;  %v85_v39 = vrot.slane %v8045_v4, %v9160_v32  ;;  %v6578_v45 = vld [vmem:[%s9153_s4 + $0x3] sm:$0x7] }
  0x12   :  { %310 = vmatprep.mubr.f32.mxu1 %v9164_v3  ;;  %7087 = vmatpush1.bf16.msra.mxu0 %v7086_v46 }
  0x13   :  { %7089 = vmatprep.subr.bf16.mxu0 %v7924_v48 }
  0x14   :  { %6550 = vmatmul.mubr.msk.f32.gmra.mrb[4].mxu0 %vm96_vm0, %v34_v49 }
  0x15   :  { %6558 = vmatmul.mubr.msk.f32.gmra.mrb[4].mxu1 %vm96_vm0, %v34_v49  ;;  %203 = vmatprep.mubr.f32.mxu0 %v9164_v3 }
  0x16   :  { %316 = vmatprep.mubr.f32.mxu1 %v9164_v3 }
  0x18   :  { %6551 = vmatmul.mubr.msk.f32.gmra.mrb[6].mxu0 %vm96_vm0, %v35_v50 }
  0x19   :  { %6559 = vmatmul.mubr.msk.f32.gmra.mrb[6].mxu1 %vm96_vm0, %v35_v50  ;;  %209 = vmatprep.mubr.f32.mxu0 %v9164_v3 }
  0x1a   :  { %322 = vmatprep.mubr.f32.mxu1 %v9164_v3 }
  0x1c   :  { %6552 = vmatmul.mubr.msk.f32.gmra.mrb[8].mxu0 %vm96_vm0, %v36_v51 }
  0x1d   :  { %6560 = vmatmul.mubr.msk.f32.gmra.mrb[8].mxu1 %vm96_vm0, %v36_v51  ;;  %215 = vmatprep.mubr.f32.mxu0 %v9164_v3 }
  0x1e   :  { %328 = vmatprep.mubr.f32.mxu1 %v9164_v3 }
  0x20   :  { %6553 = vmatmul.mubr.msk.f32.gmra.mrb[10].mxu0 %vm96_vm0, %v37_v52 }
  0x21   :  { %6561 = vmatmul.mubr.msk.f32.gmra.mrb[10].mxu1 %vm96_vm0, %v37_v52  ;;  %221 = vmatprep.mubr.f32.mxu0 %v9164_v3 }
  0x22   :  { %334 = vmatprep.mubr.f32.mxu1 %v9164_v3 }
  0x24   :  { %6554 = vmatmul.mubr.msk.f32.gmra.mrb[12].mxu0 %vm96_vm0, %v38_v53 }
  0x25   :  { %6562 = vmatmul.mubr.msk.f32.gmra.mrb[12].mxu1 %vm96_vm0, %v38_v53  ;;  %227 = vmatprep.mubr.f32.mxu0 %v9164_v3 }
  0x26   :  { %340 = vmatprep.mubr.f32.mxu1 %v9164_v3 }
  0x28   :  { %6555 = vmatmul.mubr.msk.f32.gmra.mrb[14].mxu0 %vm96_vm0, %v39_v54 }
  0x29   :  { %6563 = vmatmul.mubr.msk.f32.gmra.mrb[14].mxu1 %vm96_vm0, %v39_v54  ;;  %411 = vmatprep.mubr.f32.mxu0 %v9164_v3 }
  0x2a   :  { %6844 = vmatprep.mubr.msk.f32.mxu1 %vm7758_vm1, %v9164_v3 }
  0x2c   :  { %6564 = vmatmul.mubr.msk.f32.vlgmr.msra.gmra.mrb[16].mxu0 %vm96_vm0, %v7875_v30 }
  0x2d   :  { %6845 = vmatmul.mubr.f32.vlgmr.msra.gmra.mrb[16].mxu1 %v9164_v3  ;;  %7091 = vmatpush1.bf16.msra.mxu0 %v7987_v59 }
  0x2e   :  { %7098 = vmatpush1.bf16.msra.mxu1 %v7991_v60  ;;  %417 = vmatprep.mubr.f32.mxu0 %v9164_v3 }
  0x2f   :  { %771 = vmatprep.mubr.f32.mxu1 %v9164_v3  ;;  %7099 = vmatprep.subr.bf16.mxu1 %v9162_v37 }
  0x30   :  { %6565 = vmatmul.mubr.msk.f32.gmra.mrb[18].mxu0 %vm96_vm0, %v7909_v42  ;;  %7103 = vmatprep.subr.bf16.mxu0 %v7924_v48  ;;  %v8102_v42 = vrot.slane %v8045_v4, %v9159_v35 }
  0x31   :  { %772 = vmatmul.mubr.f32.vlgmr.msra.gmra.mrb[18].mxu1 %v9164_v3  ;;  %423 = vmatprep.mubr.f32.mxu0 %v9164_v3 }
  0x32   :  { %7101 = vmatpush3.bf16.msra.mxu1 %v8005_v63  ;;  %6851 = vmatprep.mubr.msk.f32.mxu1 %vm7758_vm1, %v9164_v3 }
  0x33   :  { %7106 = vmatprep.subr.bf16.mxu1 %v9162_v37 }
  0x34   :  { %6566 = vmatmul.mubr.msk.f32.gmra.mrb[20].mxu0 %vm96_vm0, %v34_v49 }
  0x35   :  { %429 = vmatprep.mubr.f32.mxu0 %v9164_v3  ;;  %6852 = vmatmul.mubr.f32.vlgmr.msra.gmra.mrb[20].mxu1 %v9164_v3 }
  0x36   :  { %7108 = vmatpush3.bf16.msra.mxu1 %v7911_v43  ;;  %6858 = vmatprep.mubr.msk.f32.mxu1 %vm7758_vm1, %v9164_v3 }
  0x37   :  { %7110 = vmatprep.subr.bf16.mxu1 %v7921_v47 }
  0x38   :  { %6567 = vmatmul.mubr.msk.f32.gmra.mrb[22].mxu0 %vm96_vm0, %v35_v50 }
  0x39   :  { %435 = vmatprep.mubr.f32.mxu0 %v9164_v3 }
  0x3c   :  { %6568 = vmatmul.mubr.msk.f32.gmra.mrb[24].mxu0 %vm96_vm0, %v36_v51 }
  0x3d   :  { %441 = vmatprep.mubr.f32.mxu0 %v9164_v3 }
  0x40   :  { %6569 = vmatmul.mubr.msk.f32.gmra.mrb[26].mxu0 %vm96_vm0, %v37_v52 }
  0x41   :  { %447 = vmatprep.mubr.f32.mxu0 %v9164_v3 }
  0x44   :  { %6570 = vmatmul.mubr.msk.f32.gmra.mrb[28].mxu0 %vm96_vm0, %v38_v53 }
  0x45   :  { %453 = vmatprep.mubr.f32.mxu0 %v9164_v3 }
  0x48   :  { %6571 = vmatmul.mubr.msk.f32.gmra.mrb[30].mxu0 %vm96_vm0, %v39_v54  ;;  %v8118_v54 = vrot.slane %v6578_v45, %v8105_v44 }
  0x49   :  { %614 = vmatprep.mubr.f32.mxu0 %v9164_v3 }
  0x4c   :  { %615 = vmatmul.mubr.f32.vlgmr.msra.gmra.mrb[0].mxu0 %v9164_v3 }
  0x4d   :  { %7105 = vmatpush1.bf16.msra.mxu0 %v7987_v59  ;;  %971 = vmatprep.mubr.f32.mxu0 %v9164_v3 }
  0x4e   :  { %7117 = vmatprep.subr.bf16.mxu0 %v7924_v48 }
  0xe0   :  { %v8053_v7 = vpop.f32.mrb[0].mxu1 }
  0xe1   :  { %v302_v8 = vpop.f32.mrb[1].mxu1 }
  0xe2   :  { %v8055_v9 = vadd.f32 %v302_v8, %v81_v5 }
  0xe4   :  { %v306_v11 = vpop.f32.mrb[2].mxu1 }
  0xe5   :  { %v8062_v12 = vadd.f32 %v306_v11, %v8059_v10  ;;  %v308_v13 = vpop.f32.mrb[3].mxu1 }
  0xe6   :  { %v8064_v14 = vadd.f32 %v308_v13, %v81_v5 }
  0xe8   :  { %v312_v15 = vpop.f32.mrb[4].mxu1 }
  0xe9   :  { %v8067_v16 = vadd.f32 %v312_v15, %v8059_v10  ;;  %v314_v17 = vpop.f32.mrb[5].mxu1 }
  0xea   :  { %v8069_v18 = vadd.f32 %v314_v17, %v81_v5 }
  0xec   :  { %v318_v19 = vpop.f32.mrb[6].mxu1 }
  0xed   :  { %v8072_v20 = vadd.f32 %v318_v19, %v8059_v10  ;;  %v320_v21 = vpop.f32.mrb[7].mxu1 }
  0xee   :  { %v8074_v22 = vadd.f32 %v320_v21, %v81_v5 }
  0xf0   :  { %v324_v23 = vpop.f32.mrb[8].mxu1 }
  0xf1   :  { %v8077_v24 = vadd.f32 %v324_v23, %v8059_v10  ;;  %v326_v25 = vpop.f32.mrb[9].mxu1 }
  0xf2   :  { %v8079_v26 = vadd.f32 %v326_v25, %v81_v5 }
  0xf4   :  { %v330_v27 = vpop.f32.mrb[10].mxu1 }
  0xf5   :  { %v8082_v28 = vadd.f32 %v330_v27, %v8059_v10  ;;  %v332_v29 = vpop.f32.mrb[11].mxu1 }
  0xf6   :  { %v8084_v30 = vadd.f32 %v332_v29, %v81_v5 }
  0xf8   :  { %v336_v31 = vpop.f32.mrb[12].mxu1 }
  0xf9   :  { %v8088_v33 = vadd.f32 %v336_v31, %v8059_v10  ;;  %v338_v34 = vpop.f32.mrb[13].mxu1 }
  0xfa   :  { %v8091_v36 = vadd.f32 %v338_v34, %v81_v5 }
  0xfc   :  { %v342_v38 = vpop.f32.mrb[14].mxu1 }
  0xfd   :  { %v8097_v40 = vadd.f32 %v342_v38, %v8059_v10  ;;  %v344_v41 = vpop.f32.mrb[15].mxu1 }
  0xfe   :  { %v345_v55 = vadd.f32 %v344_v41, %v81_v5 }
  0xff   :  { %v413_v46 = vpop.f32.mrb[16].mxu0 }
 0x100   :  { %v8110_v49 = vadd.f32 %v413_v46, %v85_v39  ;;  %v415_v50 = vpop.f32.mrb[17].mxu0  ;;  %v8112_v51 = vpop.f32.mrb[16].mxu1 }
 0x101   :  { %v8115_v52 = vadd.f32 %v415_v50, %v8102_v42  ;;  %v6846_v53 = vpop.f32.mrb[17].mxu1  ;;  %v8142_v50 = vsub.s32 1, %v8039_v1 }
 0x103   :  { %9174 = vst [vmem:[#allocation6_spill] sm:$0xff] %v8115_v52  ;;  %v419_v56 = vpop.f32.mrb[18].mxu0  ;;  %9175 = vst [vmem:[#allocation7_spill] sm:$0xff] %v8142_v50 }
 0x104   :  { %v8120_v57 = vadd.f32 %v419_v56, %v85_v39  ;;  %v773_v58 = vpop.f32.mrb[18].mxu1  ;;  %v421_v61 = vpop.f32.mrb[19].mxu0 }
 0x105   :  { %v774_v62 = vadd.f32 %v773_v58, %v8118_v54  ;;  %v8124_v0 = vadd.f32 %v421_v61, %v8102_v42  ;;  %v775_v8 = vpop.f32.mrb[19].mxu1  ;;  %v521_v61 = vld [vmem:[%s9153_s4] sm:$0x7]  ;;  %s7759_s4 = smov 16  }
 0x107   :  { %v869_v11 = vadd.f32 %v774_v62, %v345_v55  ;;  %v425_v13 = vpop.f32.mrb[20].mxu0 }
 0x108   :  { %v8126_v15 = vadd.f32 %v425_v13, %v85_v39  ;;  %v427_v17 = vpop.f32.mrb[21].mxu0  ;;  %v844_v19 = vpop.f32.mrb[20].mxu1  ;;  %v8153_v13 = vrot.slane %v6578_v45, %v8142_v50 }
 0x109   :  { %v6581_v21 = vmul.f32 -1.442695, %v869_v11  ;;  %v8129_v5 = vadd.f32 %v427_v17, %v8102_v42  ;;  %v6853_v23 = vpop.f32.mrb[21].mxu1 }
 0x10b   :  { %7436 = vpow2.f32 %v6581_v21  ;;  %v431_v25 = vpop.f32.mrb[22].mxu0 }
 0x10c   :  { %v8131_v27 = vadd.f32 %v431_v25, %v85_v39  ;;  %v433_v29 = vpop.f32.mrb[23].mxu0  ;;  %v69_v25 = vrot.slane %v8045_v4, %v8105_v44 }
 0x10d   :  { %v8134_v31 = vadd.f32 %v433_v29, %v8102_v42  ;;  %v534_v29 = vrot.slane %v521_v61, %v8105_v44 }
 0x10f   :  { %v437_v34 = vpop.f32.mrb[24].mxu0  ;;  %v8170_v32 = vadd.f32 %v534_v29, %v69_v25 }
 0x110   :  { %v8136_v38 = vadd.f32 %v437_v34, %v85_v39  ;;  %v439_v41 = vpop.f32.mrb[25].mxu0 }
 0x111   :  { %v8139_v46 = vadd.f32 %v439_v41, %v8102_v42  ;;  %v776_v41 = vadd.f32 %v775_v8, %v8153_v13 }
 0x113   :  { %v443_v53 = vpop.f32.mrb[26].mxu0 }
 0x114   :  { %v8144_v55 = vadd.f32 %v443_v53, %v85_v39  ;;  %v445_v56 = vpop.f32.mrb[27].mxu0 }
 0x115   :  { %v7437_v58 = vpop.eup %7436  ;;  %v8150_v62 = vadd.f32 %v445_v56, %v8102_v42  ;;  %v8165_v56 = vrot.slane %v6578_v45, %v8051_v6 }
 0x116   :  { %v877_v11 = vadd.f32 1.0, %v7437_v58  ;;  %v73_v58 = vrot.slane %v8045_v4, %v8142_v50 }
 0x117   :  { %v449_v17 = vpop.f32.mrb[28].mxu0 }
 0x118   :  { %7438 = vrcp.f32 %v877_v11  ;;  %v8155_v21 = vadd.f32 %v449_v17, %v85_v39  ;;  %v451_v23 = vpop.f32.mrb[29].mxu0  ;;  %v538_v11 = vrot.slane %v521_v61, %v8142_v50 }
 0x119   :  { %v8161_v34 = vadd.f32 %v451_v23, %v8102_v42  ;;  %v845_v23 = vadd.f32 %v844_v19, %v8165_v56 }
 0x11a   :  { %v8173_v3 = vadd.f32 %v538_v11, %v73_v58  ;;  %v8179_v58 = vrot.slane %v521_v61, %v8051_v6  ;;  %v301_v11 = vadd.f32 %v8053_v7, %v8059_v10  ;;  %v9176_v7 = vmov 0.0  }
 0x11b   :  { %v455_v53 = vpop.f32.mrb[30].mxu0  ;;  %v9177_v10 = vmov 0.0|0.0  }
 0x11c   :  { %v456_v17 = vadd.f32 %v455_v53, %v85_v39  ;;  %v457_v35 = vpop.f32.mrb[31].mxu0 }
 0x11d   :  { %v458_v4 = vadd.f32 %v457_v35, %v8102_v42  ;;  %v688_v42 = vadd.f32 %v8112_v51, %v8179_v58 }
 0x11e   :  { %v870_v2 = vadd.f32 %v776_v41, %v456_v17 }
 0x11f   :  { %v616_v37 = vpop.f32.mrb[0].mxu0 }
 0x120   :  { %v6582_v8 = vmul.f32 -1.442695, %v870_v2  ;;  %v7337_v44 = vadd.f32 %v8170_v32, %v616_v37  ;;  %v618_v45 = vpop.f32.mrb[1].mxu0 }
 0x121   :  { %v7339_v39 = vadd.f32 %v8173_v3, %v618_v45 }
 0x122   :  { %v7439_v1 = vpop.eup %7438  ;;  %7440 = vpow2.f32 %v6582_v8  ;;  %v6579_v52 = vmul.f32 -1.442695, %v7337_v44 }
 0x123   :  { %v883_v50 = vmul.f32 %v7439_v1, %v845_v23  ;;  %v6580_v29 = vmul.f32 -1.442695, %v7339_v39 }
 0x124   :  { %7442 = vpow2.f32 %v6579_v52 }
 0x125   :  { %v884_v25 = vadd.f32 %v883_v50, %v458_v4  ;;  %7444 = vpow2.f32 %v6580_v29 }
 0x12c   :  { %v7441_v41 = vpop.eup %7440 }
 0x12d   :  { %v878_v19 = vadd.f32 1.0, %v7441_v41 }
 0x12e   :  { %v7443_v53 = vpop.eup %7442 }
 0x12f   :  { %7446 = vrcp.f32 %v878_v19  ;;  %v856_v2 = vadd.f32 1.0, %v7443_v53  ;;  %v7445_v37 = vpop.eup %7444 }
 0x130   :  { %7448 = vtanh.f32 %v884_v25  ;;  %v857_v44 = vadd.f32 1.0, %v7445_v37 }
 0x131   :  { %7450 = vrcp.f32 %v856_v2 }
 0x132   :  { %7452 = vrcp.f32 %v857_v44 }
 0x139   :  { %v7447_v35 = vpop.eup %7446 }
 0x13a   :  { %v7449_v1 = vpop.eup %7448  ;;  %v886_v52 = vsub.f32 1.0, %v7447_v35  ;;  %v888_v8 = vmul.f32 0.0, %v7447_v35 }
 0x13b   :  { %v7451_v50 = vpop.eup %7450 }
 0x13c   :  { %v862_v17 = vmul.f32 %v7451_v50, %v688_v42  ;;  %v887_v23 = vmul.f32 %v7449_v1, %v886_v52  ;;  %v7453_v61 = vpop.eup %7452 }
 0x13d   :  { %v865_v39 = vsub.f32 1.0, %v7453_v61  ;;  %v867_v41 = vmul.f32 0.0, %v7453_v61 }
 0x13e   :  { %v863_v45 = vadd.f32 %v862_v17, %v301_v11  ;;  %v8185_v4 = vadd.f32 %v888_v8, %v887_v23 }
 0x140   :  { %7454 = vtanh.f32 %v863_v45 }
 0x14a   :  { %v7455_v25 = vpop.eup %7454 }
 0x14b   :  { %v866_v29 = vmul.f32 %v7455_v25, %v865_v39 }
 0x14d   :  { %v8187_v51 = vadd.f32 %v867_v41, %v866_v29 }
 0x14f   :  { %6583 = vmatmul.mubr.msk.f32.vlgmr.msra.gmra.mrb[2].mxu0 %vm546_vm2, %v8187_v51  ;;  %890 = vst.msk [vmem:[#allocation3] sm:$0xff] %vm546_vm2, %v8187_v51  ;;  %6859 = vmatmul.mubr.msk.f32.vlgmr.msra.gmra.mrb[22].mxu1 %vm546_vm2, %v8187_v51 }
 0x150   :  { %7112 = vmatpush1.bf16.msra.mxu1 %v7991_v60  ;;  %1114 = vmatprep.mubr.f32.mxu1 %v9176_v7 }
 0x151   :  { %7113 = vmatprep.subr.bf16.mxu1 %v9177_v10  ;;  %7119 = vmatpush1.bf16.msra.mxu0 %v7987_v59 }
 0x152   :  { %1314 = vmatprep.mubr.f32.mxu0 %v9176_v7  ;;  %7131 = vmatprep.subr.bf16.mxu0 %v7924_v48 }
 0x153   :  { %6585 = vmatmul.mubr.msk.f32.vlgmr.msra.gmra.mrb[24].mxu1 %vm546_vm2, %v8185_v4 }
 0x154   :  { %7115 = vmatpush3.bf16.msra.mxu1 %v8005_v63  ;;  %6865 = vmatprep.mubr.msk.f32.mxu1 %vm7758_vm1, %v9176_v7 }
 0x155   :  { %7120 = vmatprep.subr.bf16.mxu1 %v9177_v10 }
 0x157   :  { %6866 = vmatmul.mubr.msk.f32.vlgmr.msra.gmra.mrb[26].mxu1 %vm546_vm2, %v8185_v4 }
 0x158   :  { %7122 = vmatpush3.bf16.msra.mxu1 %v7911_v43  ;;  %6872 = vmatprep.mubr.msk.f32.mxu1 %vm7758_vm1, %v9176_v7 }
 0x159   :  { %7124 = vmatprep.subr.bf16.mxu1 %v7921_v47 }
 0x222   :  { %v973_v19 = vpop.f32.mrb[2].mxu0  ;;  %v1044_v53 = vpop.f32.mrb[22].mxu1 }
 0x223   :  { %v7341_v2 = vadd.f32 %v8170_v32, %v973_v19  ;;  %v975_v37 = vpop.f32.mrb[3].mxu0  ;;  %v6860_v44 = vpop.f32.mrb[23].mxu1 }
 0x224   :  { %v7343_v1 = vadd.f32 %v8173_v3, %v975_v37 }
 0x225   :  { %v6587_v35 = vmul.f32 -1.442695, %v7341_v2 }
 0x226   :  { %v1116_v42 = vpop.f32.mrb[24].mxu1  ;;  %v6588_v23 = vmul.f32 -1.442695, %v7343_v1 }
 0x227   :  { %7456 = vpow2.f32 %v6587_v35  ;;  %v1117_v52 = vadd.f32 %v1116_v42, %v8118_v54  ;;  %v1118_v50 = vpop.f32.mrb[25].mxu1 }
 0x228   :  { %v1119_v11 = vadd.f32 %v1118_v50, %v8153_v13 }
 0x229   :  { %v1212_v17 = vadd.f32 %v1117_v52, %v8091_v36  ;;  %v1045_v36 = vadd.f32 %v1044_v53, %v8179_v58 }
 0x22a   :  { %v1213_v8 = vadd.f32 %v1119_v11, %v8155_v21  ;;  %v1187_v45 = vpop.f32.mrb[26].mxu1 }
 0x22b   :  { %v6589_v61 = vmul.f32 -1.442695, %v1212_v17  ;;  %v6867_v39 = vpop.f32.mrb[27].mxu1  ;;  %v1188_v50 = vadd.f32 %v1187_v45, %v8165_v56 }
 0x22c   :  { %v6590_v25 = vmul.f32 -1.442695, %v1213_v8 }
 0x22d   :  { %7458 = vpow2.f32 %v6589_v61 }
 0x22e   :  { %7460 = vpow2.f32 %v6588_v23 }
 0x22f   :  { %7462 = vpow2.f32 %v6590_v25 }
 0x231   :  { %v7457_v29 = vpop.eup %7456 }
 0x232   :  { %v1199_v41 = vadd.f32 1.0, %v7457_v29 }
 0x234   :  { %7464 = vrcp.f32 %v1199_v41 }
 0x237   :  { %v7459_v19 = vpop.eup %7458 }
 0x238   :  { %v7461_v2 = vpop.eup %7460  ;;  %v1220_v37 = vadd.f32 1.0, %v7459_v19 }
 0x239   :  { %v1200_v44 = vadd.f32 1.0, %v7461_v2  ;;  %v7463_v35 = vpop.eup %7462 }
 0x23a   :  { %7466 = vrcp.f32 %v1220_v37  ;;  %v1221_v52 = vadd.f32 1.0, %v7463_v35 }
 0x23b   :  { %7468 = vrcp.f32 %v1200_v44 }
 0x23e   :  { %v7465_v1 = vpop.eup %7464 }
 0x23f   :  { %v1205_v21 = vmul.f32 %v7465_v1, %v1045_v36 }
 0x241   :  { %v1206_v42 = vadd.f32 %v1205_v21, %v8062_v12 }
 0x243   :  { %7470 = vtanh.f32 %v1206_v42 }
 0x244   :  { %v7467_v11 = vpop.eup %7466  ;;  %7472 = vrcp.f32 %v1221_v52 }
 0x245   :  { %v1226_v17 = vmul.f32 %v7467_v11, %v1188_v50  ;;  %v7469_v8 = vpop.eup %7468 }
 0x246   :  { %v1208_v61 = vsub.f32 1.0, %v7469_v8  ;;  %v1210_v53 = vmul.f32 %v7469_v8, %v8187_v51 }
 0x247   :  { %v1227_v23 = vadd.f32 %v1226_v17, %v8161_v34 }
 0x249   :  { %7474 = vtanh.f32 %v1227_v23 }
 0x24d   :  { %v7471_v39 = vpop.eup %7470 }
 0x24e   :  { %v1209_v25 = vmul.f32 %v7471_v39, %v1208_v61  ;;  %v7473_v29 = vpop.eup %7472 }
 0x24f   :  { %v1229_v12 = vsub.f32 1.0, %v7473_v29  ;;  %v1231_v51 = vmul.f32 %v7473_v29, %v8185_v4 }
 0x250   :  { %v8224_v41 = vadd.f32 %v1210_v53, %v1209_v25 }
 0x252   :  { %6591 = vmatmul.mubr.msk.f32.vlgmr.msra.gmra.mrb[4].mxu0 %vm546_vm2, %v8224_v41  ;;  %1234 = vst.msk [vmem:[#allocation3 + $0x8] sm:$0xff] %vm546_vm2, %v8224_v41  ;;  %6873 = vmatmul.mubr.msk.f32.vlgmr.msra.gmra.mrb[28].mxu1 %vm546_vm2, %v8224_v41 }
 0x253   :  { %v7475_v34 = vpop.eup %7474  ;;  %7126 = vmatpush1.bf16.msra.mxu1 %v7991_v60  ;;  %1457 = vmatprep.mubr.f32.mxu1 %v9176_v7 }
 0x254   :  { %v1230_v45 = vmul.f32 %v7475_v34, %v1229_v12  ;;  %7127 = vmatprep.subr.bf16.mxu1 %v9177_v10  ;;  %7133 = vmatpush1.bf16.msra.mxu0 %v7987_v59 }
 0x255   :  { %1657 = vmatprep.mubr.f32.mxu0 %v9176_v7  ;;  %7145 = vmatprep.subr.bf16.mxu0 %v7924_v48 }
 0x256   :  { %v8239_v19 = vadd.f32 %v1231_v51, %v1230_v45 }
 0x258   :  { %6593 = vmatmul.mubr.msk.f32.vlgmr.msra.gmra.mrb[30].mxu1 %vm546_vm2, %v8239_v19 }
 0x259   :  { %7129 = vmatpush3.bf16.msra.mxu1 %v8005_v63  ;;  %6879 = vmatprep.mubr.msk.f32.mxu1 %vm7758_vm1, %v9176_v7 }
 0x25a   :  { %7134 = vmatprep.subr.bf16.mxu1 %v9177_v10 }
 0x25c   :  { %6880 = vmatmul.mubr.msk.f32.vlgmr.msra.gmra.mrb[32].mxu1 %vm546_vm2, %v8239_v19 }
 0x25d   :  { %7136 = vmatpush3.bf16.msra.mxu1 %v7911_v43  ;;  %6886 = vmatprep.mubr.msk.f32.mxu1 %vm7758_vm1, %v9176_v7 }
 0x25e   :  { %7138 = vmatprep.subr.bf16.mxu1 %v7921_v47 }
 0x325   :  { %v1316_v2 = vpop.f32.mrb[4].mxu0  ;;  %v1387_v37 = vpop.f32.mrb[28].mxu1 }
 0x326   :  { %v7345_v44 = vadd.f32 %v8170_v32, %v1316_v2  ;;  %v1318_v35 = vpop.f32.mrb[5].mxu0  ;;  %v6874_v36 = vpop.f32.mrb[29].mxu1 }
 0x327   :  { %v7347_v21 = vadd.f32 %v8173_v3, %v1318_v35 }
 0x328   :  { %v6595_v1 = vmul.f32 -1.442695, %v7345_v44  ;;  %v1388_v44 = vadd.f32 %v1387_v37, %v8179_v58 }
 0x329   :  { %v6596_v11 = vmul.f32 -1.442695, %v7347_v21 }
 0x32a   :  { %7476 = vpow2.f32 %v6595_v1 }
 0x32b   :  { %v1459_v42 = vpop.f32.mrb[30].mxu1  ;;  %7478 = vpow2.f32 %v6596_v11 }
 0x32c   :  { %v1460_v52 = vadd.f32 %v1459_v42, %v8118_v54  ;;  %v1461_v50 = vpop.f32.mrb[31].mxu1 }
 0x32d   :  { %v1462_v17 = vadd.f32 %v1461_v50, %v8153_v13 }
 0x32e   :  { %v1555_v23 = vadd.f32 %v1460_v52, %v8084_v30 }
 0x32f   :  { %v1556_v8 = vadd.f32 %v1462_v17, %v8144_v55  ;;  %v1530_v61 = vpop.f32.mrb[32].mxu1 }
 0x330   :  { %v6597_v39 = vmul.f32 -1.442695, %v1555_v23  ;;  %v6881_v25 = vpop.f32.mrb[33].mxu1  ;;  %v1531_v21 = vadd.f32 %v1530_v61, %v8165_v56 }
 0x331   :  { %v6598_v12 = vmul.f32 -1.442695, %v1556_v8 }
 0x332   :  { %7480 = vpow2.f32 %v6597_v39 }
 0x334   :  { %v7477_v53 = vpop.eup %7476 }
 0x335   :  { %v1542_v29 = vadd.f32 1.0, %v7477_v53  ;;  %v7479_v34 = vpop.eup %7478 }
 0x336   :  { %v1543_v2 = vadd.f32 1.0, %v7479_v34 }
 0x337   :  { %7482 = vrcp.f32 %v1542_v29 }
 0x338   :  { %7484 = vpow2.f32 %v6598_v12 }
 0x33c   :  { %v7481_v45 = vpop.eup %7480 }
 0x33d   :  { %v1563_v51 = vadd.f32 1.0, %v7481_v45 }
 0x33f   :  { %7486 = vrcp.f32 %v1563_v51 }
 0x340   :  { %7488 = vrcp.f32 %v1543_v2 }
 0x341   :  { %v7483_v30 = vpop.eup %7482 }
 0x342   :  { %v1548_v35 = vmul.f32 %v7483_v30, %v1388_v44  ;;  %v7485_v55 = vpop.eup %7484 }
 0x343   :  { %v1564_v1 = vadd.f32 1.0, %v7485_v55 }
 0x344   :  { %v1549_v36 = vadd.f32 %v1548_v35, %v8067_v16 }
 0x346   :  { %7490 = vtanh.f32 %v1549_v36 }
 0x347   :  { %7492 = vrcp.f32 %v1564_v1 }
 0x349   :  { %v7487_v42 = vpop.eup %7486 }
 0x34a   :  { %v1569_v52 = vmul.f32 %v7487_v42, %v1531_v21  ;;  %v7489_v50 = vpop.eup %7488 }
 0x34b   :  { %v1551_v17 = vsub.f32 1.0, %v7489_v50  ;;  %v1553_v8 = vmul.f32 %v7489_v50, %v8224_v41 }
 0x34c   :  { %v1570_v11 = vadd.f32 %v1569_v52, %v8150_v62 }
 0x34e   :  { %7494 = vtanh.f32 %v1570_v11 }
 0x350   :  { %v7491_v23 = vpop.eup %7490 }
 0x351   :  { %v1552_v37 = vmul.f32 %v7491_v23, %v1551_v17  ;;  %v7493_v25 = vpop.eup %7492 }
 0x352   :  { %v1572_v16 = vsub.f32 1.0, %v7493_v25  ;;  %v1574_v61 = vmul.f32 %v7493_v25, %v8239_v19 }
 0x353   :  { %v8264_v39 = vadd.f32 %v1553_v8, %v1552_v37 }
 0x355   :  { %6599 = vmatmul.mubr.msk.f32.vlgmr.msra.gmra.mrb[6].mxu0 %vm546_vm2, %v8264_v39  ;;  %1577 = vst.msk [vmem:[#allocation3 + $0x10] sm:$0xff] %vm546_vm2, %v8264_v39  ;;  %6887 = vmatmul.mubr.msk.f32.vlgmr.msra.gmra.mrb[34].mxu1 %vm546_vm2, %v8264_v39 }
 0x356   :  { %7140 = vmatpush1.bf16.msra.mxu1 %v7991_v60  ;;  %1800 = vmatprep.mubr.f32.mxu1 %v9176_v7 }
 0x357   :  { %7141 = vmatprep.subr.bf16.mxu1 %v9177_v10  ;;  %7147 = vmatpush1.bf16.msra.mxu0 %v7987_v59 }
 0x358   :  { %v7495_v62 = vpop.eup %7494  ;;  %2000 = vmatprep.mubr.f32.mxu0 %v9176_v7  ;;  %7152 = vmatprep.subr.bf16.mxu0 %v7921_v47 }
 0x359   :  { %v1573_v41 = vmul.f32 %v7495_v62, %v1572_v16 }
 0x35b   :  { %v8279_v53 = vadd.f32 %v1574_v61, %v1573_v41 }
 0x35d   :  { %6601 = vmatmul.mubr.msk.f32.vlgmr.msra.gmra.mrb[36].mxu1 %vm546_vm2, %v8279_v53 }
 0x35e   :  { %7143 = vmatpush3.bf16.msra.mxu1 %v8005_v63  ;;  %6893 = vmatprep.mubr.msk.f32.mxu1 %vm7758_vm1, %v9176_v7 }
 0x35f   :  { %7148 = vmatprep.subr.bf16.mxu1 %v9177_v10 }
 0x361   :  { %6894 = vmatmul.mubr.msk.f32.vlgmr.msra.gmra.mrb[38].mxu1 %vm546_vm2, %v8279_v53 }
 0x362   :  { %7150 = vmatpush3.bf16.msra.mxu1 %v7911_v43  ;;  %6900 = vmatprep.mubr.msk.f32.mxu1 %vm7758_vm1, %v9176_v7 }
 0x363   :  { %7155 = vmatprep.subr.bf16.mxu1 %v9177_v10 }
 0x428   :  { %v1659_v29 = vpop.f32.mrb[6].mxu0  ;;  %v1730_v12 = vpop.f32.mrb[34].mxu1 }
 0x429   :  { %v7349_v34 = vadd.f32 %v8170_v32, %v1659_v29  ;;  %v1661_v45 = vpop.f32.mrb[7].mxu0  ;;  %v6888_v51 = vpop.f32.mrb[35].mxu1  ;;  %v1731_v41 = vadd.f32 %v1730_v12, %v8179_v58 }
 0x42a   :  { %v7351_v44 = vadd.f32 %v8173_v3, %v1661_v45 }
 0x42b   :  { %v6603_v2 = vmul.f32 -1.442695, %v7349_v34 }
 0x42c   :  { %v6604_v30 = vmul.f32 -1.442695, %v7351_v44 }
 0x42d   :  { %7496 = vpow2.f32 %v6603_v2 }
 0x42e   :  { %7498 = vpow2.f32 %v6604_v30 }
 0x430   :  { %v1802_v35 = vpop.f32.mrb[36].mxu1 }
 0x431   :  { %v1803_v55 = vadd.f32 %v1802_v35, %v8118_v54  ;;  %v1804_v36 = vpop.f32.mrb[37].mxu1 }
 0x432   :  { %v1805_v1 = vadd.f32 %v1804_v36, %v8153_v13 }
 0x433   :  { %v1898_v21 = vadd.f32 %v1803_v55, %v8079_v26 }
 0x434   :  { %v1899_v42 = vadd.f32 %v1805_v1, %v8136_v38  ;;  %v1873_v52 = vpop.f32.mrb[38].mxu1 }
 0x435   :  { %v6605_v50 = vmul.f32 -1.442695, %v1898_v21  ;;  %v6895_v11 = vpop.f32.mrb[39].mxu1  ;;  %v1874_v45 = vadd.f32 %v1873_v52, %v8165_v56 }
 0x436   :  { %v6606_v37 = vmul.f32 -1.442695, %v1899_v42 }
 0x437   :  { %v7497_v17 = vpop.eup %7496  ;;  %7500 = vpow2.f32 %v6605_v50 }
 0x438   :  { %v1885_v23 = vadd.f32 1.0, %v7497_v17  ;;  %v7499_v8 = vpop.eup %7498 }
 0x439   :  { %v1886_v16 = vadd.f32 1.0, %v7499_v8 }
 0x43a   :  { %7502 = vrcp.f32 %v1885_v23 }
 0x43b   :  { %7504 = vpow2.f32 %v6606_v37 }
 0x441   :  { %v7501_v25 = vpop.eup %7500 }
 0x442   :  { %v1906_v62 = vadd.f32 1.0, %v7501_v25 }
 0x444   :  { %v7503_v61 = vpop.eup %7502  ;;  %7506 = vrcp.f32 %v1906_v62 }
 0x445   :  { %v1891_v26 = vmul.f32 %v7503_v61, %v1731_v41  ;;  %7508 = vrcp.f32 %v1886_v16  ;;  %v7505_v29 = vpop.eup %7504 }
 0x446   :  { %v1907_v34 = vadd.f32 1.0, %v7505_v29 }
 0x447   :  { %v1892_v38 = vadd.f32 %v1891_v26, %v8072_v20 }
 0x449   :  { %7510 = vtanh.f32 %v1892_v38 }
 0x44a   :  { %7512 = vrcp.f32 %v1907_v34 }
 0x44e   :  { %v7507_v51 = vpop.eup %7506 }
 0x44f   :  { %v7509_v2 = vpop.eup %7508  ;;  %v1912_v44 = vmul.f32 %v7507_v51, %v1874_v45 }
 0x450   :  { %v1894_v35 = vsub.f32 1.0, %v7509_v2  ;;  %v1896_v36 = vmul.f32 %v7509_v2, %v8264_v39 }
 0x451   :  { %v1913_v30 = vadd.f32 %v1912_v44, %v8139_v46 }
 0x453   :  { %v7511_v55 = vpop.eup %7510  ;;  %7514 = vtanh.f32 %v1913_v30 }
 0x454   :  { %v1895_v12 = vmul.f32 %v7511_v55, %v1894_v35  ;;  %v7513_v20 = vpop.eup %7512 }
 0x455   :  { %v1915_v46 = vsub.f32 1.0, %v7513_v20  ;;  %v1917_v42 = vmul.f32 %v7513_v20, %v8279_v53 }
 0x456   :  { %v8304_v1 = vadd.f32 %v1896_v36, %v1895_v12 }
 0x458   :  { %6607 = vmatmul.mubr.msk.f32.vlgmr.msra.gmra.mrb[8].mxu0 %vm546_vm2, %v8304_v1  ;;  %1920 = vst.msk [vmem:[#allocation3 + $0x18] sm:$0xff] %vm546_vm2, %v8304_v1  ;;  %6901 = vmatmul.mubr.msk.f32.vlgmr.msra.gmra.mrb[40].mxu1 %vm546_vm2, %v8304_v1 }
 0x459   :  { %7154 = vmatpush1.bf16.msra.mxu0 %v7991_v60  ;;  %7157 = vmatpush3.bf16.msra.mxu1 %v8005_v63 }
 0x45a   :  { %2143 = vmatprep.mubr.f32.mxu0 %v9176_v7  ;;  %6907 = vmatprep.mubr.msk.f32.mxu1 %vm7758_vm1, %v9176_v7 }
 0x45b   :  { %7159 = vmatprep.subr.bf16.mxu0 %v7924_v48  ;;  %7162 = vmatprep.subr.bf16.mxu1 %v9177_v10 }
 0x45d   :  { %v7515_v39 = vpop.eup %7514 }
 0x45e   :  { %v1916_v21 = vmul.f32 %v7515_v39, %v1915_v46 }
 0x460   :  { %v8320_v52 = vadd.f32 %v1917_v42, %v1916_v21 }
 0x462   :  { %6609 = vmatmul.mubr.msk.f32.vlgmr.msra.gmra.mrb[32].mxu0 %vm546_vm2, %v8320_v52  ;;  %6908 = vmatmul.mubr.msk.f32.vlgmr.msra.gmra.mrb[42].mxu1 %vm546_vm2, %v8320_v52 }
 0x463   :  { %7161 = vmatpush1.bf16.msra.mxu0 %v7987_v59  ;;  %7164 = vmatpush3.bf16.msra.mxu1 %v7911_v43 }
 0x464   :  { %2341 = vmatprep.mubr.f32.mxu0 %v9176_v7  ;;  %6914 = vmatprep.mubr.msk.f32.mxu1 %vm7758_vm1, %v9176_v7 }
 0x465   :  { %7166 = vmatprep.subr.bf16.mxu0 %v7921_v47  ;;  %7169 = vmatprep.subr.bf16.mxu1 %v9177_v10 }
 0x52b   :  { %v2002_v50 = vpop.f32.mrb[8].mxu0  ;;  %v2073_v11 = vpop.f32.mrb[40].mxu1 }
 0x52c   :  { %v7353_v17 = vadd.f32 %v8170_v32, %v2002_v50  ;;  %v2004_v23 = vpop.f32.mrb[9].mxu0  ;;  %v6902_v37 = vpop.f32.mrb[41].mxu1  ;;  %v2074_v36 = vadd.f32 %v2073_v11, %v8179_v58 }
 0x52d   :  { %v7355_v25 = vadd.f32 %v8173_v3, %v2004_v23 }
 0x52e   :  { %v6611_v8 = vmul.f32 -1.442695, %v7353_v17 }
 0x52f   :  { %v6612_v16 = vmul.f32 -1.442695, %v7355_v25 }
 0x530   :  { %7516 = vpow2.f32 %v6611_v8 }
 0x531   :  { %7518 = vpow2.f32 %v6612_v16 }
 0x535   :  { %v2145_v62 = vpop.f32.mrb[32].mxu0  ;;  %v2216_v41 = vpop.f32.mrb[42].mxu1 }
 0x536   :  { %v2146_v61 = vadd.f32 %v2145_v62, %v8118_v54  ;;  %v2147_v26 = vpop.f32.mrb[33].mxu0  ;;  %v6909_v38 = vpop.f32.mrb[43].mxu1  ;;  %v2217_v50 = vadd.f32 %v2216_v41, %v8165_v56 }
 0x537   :  { %v2148_v29 = vadd.f32 %v2147_v26, %v8153_v13 }
 0x538   :  { %v2241_v34 = vadd.f32 %v2146_v61, %v8074_v22 }
 0x539   :  { %v2242_v45 = vadd.f32 %v2148_v29, %v8131_v27 }
 0x53a   :  { %v7517_v51 = vpop.eup %7516  ;;  %v6613_v2 = vmul.f32 -1.442695, %v2241_v34 }
 0x53b   :  { %v2228_v44 = vadd.f32 1.0, %v7517_v51  ;;  %v6614_v30 = vmul.f32 -1.442695, %v2242_v45  ;;  %v7519_v35 = vpop.eup %7518 }
 0x53c   :  { %7520 = vpow2.f32 %v6613_v2  ;;  %v2229_v55 = vadd.f32 1.0, %v7519_v35 }
 0x53d   :  { %7522 = vrcp.f32 %v2228_v44 }
 0x53e   :  { %7524 = vpow2.f32 %v6614_v30 }
 0x53f   :  { %7526 = vrcp.f32 %v2229_v55 }
 0x546   :  { %v7521_v12 = vpop.eup %7520 }
 0x547   :  { %v7523_v20 = vpop.eup %7522  ;;  %v2249_v46 = vadd.f32 1.0, %v7521_v12 }
 0x548   :  { %v2234_v39 = vmul.f32 %v7523_v20, %v2074_v36  ;;  %v7525_v27 = vpop.eup %7524 }
 0x549   :  { %7528 = vrcp.f32 %v2249_v46  ;;  %v2250_v21 = vadd.f32 1.0, %v7525_v27  ;;  %v7527_v42 = vpop.eup %7526 }
 0x54a   :  { %v2235_v22 = vadd.f32 %v2234_v39, %v8077_v24  ;;  %v2237_v37 = vsub.f32 1.0, %v7527_v42  ;;  %v2239_v16 = vmul.f32 %v7527_v42, %v8304_v1 }
 0x54c   :  { %7530 = vtanh.f32 %v2235_v22 }
 0x54d   :  { %7532 = vrcp.f32 %v2250_v21 }
 0x553   :  { %v7529_v17 = vpop.eup %7528 }
 0x554   :  { %v2255_v23 = vmul.f32 %v7529_v17, %v2217_v50 }
 0x556   :  { %v7531_v8 = vpop.eup %7530  ;;  %v2256_v11 = vadd.f32 %v2255_v23, %v8134_v31 }
 0x557   :  { %v2238_v25 = vmul.f32 %v7531_v8, %v2237_v37  ;;  %v7533_v24 = vpop.eup %7532 }
 0x558   :  { %7534 = vtanh.f32 %v2256_v11  ;;  %v2258_v31 = vsub.f32 1.0, %v7533_v24  ;;  %v2260_v61 = vmul.f32 %v7533_v24, %v8320_v52 }
 0x559   :  { %v8344_v62 = vadd.f32 %v2239_v16, %v2238_v25 }
 0x55b   :  { %6615 = vmatmul.mubr.msk.f32.vlgmr.msra.gmra.mrb[10].mxu0 %vm546_vm2, %v8344_v62  ;;  %6915 = vmatmul.mubr.msk.f32.vlgmr.msra.gmra.mrb[44].mxu1 %vm546_vm2, %v8344_v62 }
 0x55c   :  { %7168 = vmatpush1.bf16.msra.mxu0 %v7991_v60  ;;  %7171 = vmatpush3.bf16.msra.mxu1 %v8005_v63 }
 0x55d   :  { %2484 = vmatprep.mubr.f32.mxu0 %v9176_v7  ;;  %6921 = vmatprep.mubr.msk.f32.mxu1 %vm7758_vm1, %v9176_v7 }
 0x55e   :  { %7173 = vmatprep.subr.bf16.mxu0 %v7924_v48  ;;  %7176 = vmatprep.subr.bf16.mxu1 %v9177_v10 }
 0x562   :  { %v7535_v1 = vpop.eup %7534 }
 0x563   :  { %v2259_v41 = vmul.f32 %v7535_v1, %v2258_v31 }
 0x565   :  { %v8358_v26 = vadd.f32 %v2260_v61, %v2259_v41 }
 0x567   :  { %6617 = vmatmul.mubr.msk.f32.vlgmr.msra.gmra.mrb[34].mxu0 %vm546_vm2, %v8358_v26  ;;  %6922 = vmatmul.mubr.msk.f32.vlgmr.msra.gmra.mrb[46].mxu1 %vm546_vm2, %v8358_v26 }
 0x568   :  { %7175 = vmatpush1.bf16.msra.mxu0 %v7987_v59  ;;  %7178 = vmatpush3.bf16.msra.mxu1 %v7911_v43 }
 0x569   :  { %2682 = vmatprep.mubr.f32.mxu0 %v9176_v7  ;;  %6928 = vmatprep.mubr.msk.f32.mxu1 %vm7758_vm1, %v9176_v7 }
 0x56a   :  { %7180 = vmatprep.subr.bf16.mxu0 %v7921_v47  ;;  %7183 = vmatprep.subr.bf16.mxu1 %v9177_v10 }
 0x62e   :  { %v2343_v38 = vpop.f32.mrb[10].mxu0  ;;  %v2414_v29 = vpop.f32.mrb[44].mxu1 }
 0x62f   :  { %v7357_v34 = vadd.f32 %v8170_v32, %v2343_v38  ;;  %v2345_v45 = vpop.f32.mrb[11].mxu0  ;;  %v6916_v51 = vpop.f32.mrb[45].mxu1  ;;  %v2415_v37 = vadd.f32 %v2414_v29, %v8179_v58 }
 0x630   :  { %v7359_v44 = vadd.f32 %v8173_v3, %v2345_v45 }
 0x631   :  { %v6619_v2 = vmul.f32 -1.442695, %v7357_v34 }
 0x632   :  { %v6620_v30 = vmul.f32 -1.442695, %v7359_v44 }
 0x633   :  { %7536 = vpow2.f32 %v6619_v2 }
 0x634   :  { %7538 = vpow2.f32 %v6620_v30 }
 0x63a   :  { %v2486_v35 = vpop.f32.mrb[34].mxu0  ;;  %v2557_v55 = vpop.f32.mrb[46].mxu1 }
 0x63b   :  { %v2487_v12 = vadd.f32 %v2486_v35, %v8118_v54  ;;  %v2488_v36 = vpop.f32.mrb[35].mxu0  ;;  %v6923_v20 = vpop.f32.mrb[47].mxu1  ;;  %v2558_v61 = vadd.f32 %v2557_v55, %v8165_v56 }
 0x63c   :  { %v2489_v46 = vadd.f32 %v2488_v36, %v8153_v13 }
 0x63d   :  { %v7537_v39 = vpop.eup %7536  ;;  %v2582_v22 = vadd.f32 %v2487_v12, %v8069_v18 }
 0x63e   :  { %v2569_v27 = vadd.f32 1.0, %v7537_v39  ;;  %v2583_v21 = vadd.f32 %v2489_v46, %v8126_v15  ;;  %v7539_v50 = vpop.eup %7538 }
 0x63f   :  { %v6621_v42 = vmul.f32 -1.442695, %v2582_v22  ;;  %v2570_v23 = vadd.f32 1.0, %v7539_v50 }
 0x640   :  { %7540 = vrcp.f32 %v2569_v27  ;;  %v6622_v17 = vmul.f32 -1.442695, %v2583_v21 }
 0x641   :  { %7542 = vpow2.f32 %v6621_v42 }
 0x642   :  { %7544 = vpow2.f32 %v6622_v17 }
 0x643   :  { %7546 = vrcp.f32 %v2570_v23 }
 0x64a   :  { %v7541_v8 = vpop.eup %7540 }
 0x64b   :  { %v2575_v11 = vmul.f32 %v7541_v8, %v2415_v37  ;;  %v7543_v25 = vpop.eup %7542 }
 0x64c   :  { %v2590_v24 = vadd.f32 1.0, %v7543_v25  ;;  %v7545_v18 = vpop.eup %7544 }
 0x64d   :  { %v2576_v16 = vadd.f32 %v2575_v11, %v8082_v28  ;;  %v7547_v15 = vpop.eup %7546  ;;  %v2591_v31 = vadd.f32 1.0, %v7545_v18 }
 0x64e   :  { %v2578_v1 = vsub.f32 1.0, %v7547_v15  ;;  %v2580_v29 = vmul.f32 %v7547_v15, %v8344_v62 }
 0x64f   :  { %7548 = vtanh.f32 %v2576_v16 }
 0x650   :  { %7550 = vrcp.f32 %v2590_v24 }
 0x651   :  { %7552 = vrcp.f32 %v2591_v31 }
 0x659   :  { %v7549_v41 = vpop.eup %7548 }
 0x65a   :  { %v7551_v38 = vpop.eup %7550  ;;  %v2579_v34 = vmul.f32 %v7549_v41, %v2578_v1 }
 0x65b   :  { %v2596_v45 = vmul.f32 %v7551_v38, %v2558_v61 }
 0x65c   :  { %v8381_v51 = vadd.f32 %v2580_v29, %v2579_v34 }
 0x65d   :  { %v2597_v28 = vadd.f32 %v2596_v45, %v8129_v5  ;;  %v7553_v5 = vpop.eup %7552 }
 0x65e   :  { %6623 = vmatmul.mubr.msk.f32.vlgmr.msra.gmra.mrb[12].mxu0 %vm546_vm2, %v8381_v51  ;;  %6929 = vmatmul.mubr.msk.f32.vlgmr.msra.gmra.mrb[48].mxu1 %vm546_vm2, %v8381_v51  ;;  %v2599_v2 = vsub.f32 1.0, %v7553_v5  ;;  %v2601_v35 = vmul.f32 %v7553_v5, %v8358_v26 }
 0x65f   :  { %7554 = vtanh.f32 %v2597_v28  ;;  %7182 = vmatpush1.bf16.msra.mxu0 %v7991_v60  ;;  %7185 = vmatpush3.bf16.msra.mxu1 %v8005_v63 }
 0x660   :  { %2825 = vmatprep.mubr.f32.mxu0 %v9176_v7  ;;  %6935 = vmatprep.mubr.msk.f32.mxu1 %vm7758_vm1, %v9176_v7 }
 0x661   :  { %7187 = vmatprep.subr.bf16.mxu0 %v7924_v48  ;;  %7190 = vmatprep.subr.bf16.mxu1 %v9177_v10 }
 0x669   :  { %v7555_v44 = vpop.eup %7554 }
 0x66a   :  { %v2600_v30 = vmul.f32 %v7555_v44, %v2599_v2 }
 0x66c   :  { %v8396_v55 = vadd.f32 %v2601_v35, %v2600_v30 }
 0x66e   :  { %2605 = vrot.lane.b32.xlu1 %v8396_v55, %s7759_s4  ;;  %6625 = vmatmul.mubr.msk.f32.vlgmr.msra.gmra.mrb[36].mxu0 %vm546_vm2, %v8396_v55 }
 0x66f   :  { %6936 = vmatmul.mubr.msk.f32.vlgmr.msra.gmra.mrb[50].mxu1 %vm546_vm2, %v8396_v55  ;;  %7189 = vmatpush1.bf16.msra.mxu0 %v7987_v59 }
 0x670   :  { %7192 = vmatpush3.bf16.msra.mxu1 %v7911_v43  ;;  %3023 = vmatprep.mubr.f32.mxu0 %v9176_v7 }
 0x671   :  { %6942 = vmatprep.mubr.msk.f32.mxu1 %vm7758_vm1, %v9176_v7  ;;  %7194 = vmatprep.subr.bf16.mxu0 %v7921_v47 }
 0x672   :  { %2264 = vrot.lane.b32.xlu1 %v8358_v26, %s7759_s4  ;;  %7197 = vmatprep.subr.bf16.mxu1 %v9177_v10 }
 0x676   :  { %1579 = vrot.lane.b32.xlu1 %v8279_v53, %s7759_s4 }
 0x67a   :  { %892 = vrot.lane.b32.xlu1 %v8185_v4, %s7759_s4 }
 0x6e0   :  { %v2606_v43 = vpop.permute.xlu1 %2605 }
 0x6e1   :  { %2608 = vst.msk [vmem:[#allocation3 + $0x10] sm:$0xff] %vm896_vm3, %v2606_v43 }
 0x6e4   :  { %v2265_v48 = vpop.permute.xlu1 %2264 }
 0x6e5   :  { %2267 = vst.msk [vmem:[#allocation3 + $0x18] sm:$0xff] %vm896_vm3, %v2265_v48 }
 0x6e8   :  { %v1580_v59 = vpop.permute.xlu1 %1579 }
 0x6e9   :  { %1583 = vst.msk [vmem:[#allocation3 + $0x28] sm:$0xff] %vm896_vm3, %v1580_v59 }
 0x6ea   :  { %2603 = vst.msk [vmem:[#allocation3 + $0x28] sm:$0xff] %vm546_vm2, %v8381_v51 }
 0x6ec   :  { %v893_v47 = vpop.permute.xlu1 %892 }
 0x6ed   :  { %897 = vst.msk [vmem:[#allocation3 + $0x38] sm:$0xff] %vm896_vm3, %v893_v47 }
 0x731   :  { %v2684_v53 = vpop.f32.mrb[12].mxu0  ;;  %v2755_v26 = vpop.f32.mrb[48].mxu1 }
 0x732   :  { %v7361_v4 = vadd.f32 %v8170_v32, %v2684_v53  ;;  %v2686_v12 = vpop.f32.mrb[13].mxu0  ;;  %v6930_v36 = vpop.f32.mrb[49].mxu1  ;;  %v2756_v15 = vadd.f32 %v2755_v26, %v8179_v58 }
 0x733   :  { %v7363_v46 = vadd.f32 %v8173_v3, %v2686_v12 }
 0x734   :  { %v6627_v20 = vmul.f32 -1.442695, %v7361_v4 }
 0x735   :  { %v6628_v39 = vmul.f32 -1.442695, %v7363_v46 }
 0x736   :  { %7556 = vpow2.f32 %v6627_v20 }
 0x737   :  { %7558 = vpow2.f32 %v6628_v39 }
 0x740   :  { %v7557_v22 = vpop.eup %7556 }
 0x741   :  { %v2910_v27 = vadd.f32 1.0, %v7557_v22  ;;  %v2827_v21 = vpop.f32.mrb[36].mxu0  ;;  %v7559_v16 = vpop.eup %7558 }
 0x742   :  { %v2828_v42 = vadd.f32 %v2827_v21, %v8118_v54  ;;  %v2898_v50 = vpop.f32.mrb[50].mxu1  ;;  %v2829_v17 = vpop.f32.mrb[37].mxu0  ;;  %v2911_v24 = vadd.f32 1.0, %v7559_v16 }
 0x743   :  { %7560 = vrcp.f32 %v2910_v27  ;;  %v2830_v23 = vadd.f32 %v2829_v17, %v8153_v13  ;;  %v6937_v37 = vpop.f32.mrb[51].mxu1  ;;  %v2899_v2 = vadd.f32 %v2898_v50, %v8165_v56 }
 0x744   :  { %v2923_v8 = vadd.f32 %v2828_v42, %v8064_v14 }
 0x745   :  { %v2924_v11 = vadd.f32 %v2830_v23, %v8120_v57 }
 0x746   :  { %v6629_v25 = vmul.f32 -1.442695, %v2923_v8 }
 0x747   :  { %v6630_v18 = vmul.f32 -1.442695, %v2924_v11 }
 0x748   :  { %7562 = vpow2.f32 %v6629_v25 }
 0x749   :  { %7564 = vrcp.f32 %v2911_v24 }
 0x74a   :  { %7566 = vpow2.f32 %v6630_v18 }
 0x74d   :  { %v7561_v31 = vpop.eup %7560 }
 0x74e   :  { %v2916_v1 = vmul.f32 %v7561_v31, %v2756_v15 }
 0x750   :  { %v2917_v41 = vadd.f32 %v2916_v1, %v8088_v33 }
 0x752   :  { %v7563_v61 = vpop.eup %7562  ;;  %7568 = vtanh.f32 %v2917_v41 }
 0x753   :  { %v2931_v38 = vadd.f32 1.0, %v7563_v61  ;;  %v7565_v14 = vpop.eup %7564 }
 0x754   :  { %v7567_v34 = vpop.eup %7566  ;;  %v2919_v57 = vsub.f32 1.0, %v7565_v14  ;;  %v2921_v5 = vmul.f32 %v7565_v14, %v8381_v51  ;;  %v9178_v14 = vld [vmem:[#allocation6_spill] sm:$0xff] }
 0x755   :  { %7570 = vrcp.f32 %v2931_v38  ;;  %v2932_v45 = vadd.f32 1.0, %v7567_v34 }
 0x757   :  { %7572 = vrcp.f32 %v2932_v45 }
 0x75c   :  { %v7569_v29 = vpop.eup %7568 }
 0x75d   :  { %v2920_v28 = vmul.f32 %v7569_v29, %v2919_v57  ;;  %v3300_v57 = vld [vmem:[%s9154_s5 + $0x8] sm:$0xff]  ;;  %v3306_v29 = vld [vmem:[%s9154_s5 + $0x38] sm:$0xff] }
 0x75e   :  { %v7200_v45 = vpack.c.bf16 %v3306_v29, %v3300_v57  ;;  %v6663_v29 = vld [vmem:[%s9155_s7 + $0x30] sm:$0xff] }
 0x75f   :  { %v7571_v44 = vpop.eup %7570  ;;  %v8433_v30 = vadd.f32 %v2921_v5, %v2920_v28  ;;  %v3308_v28 = vld [vmem:[%s9154_s5 + $0x48] sm:$0xff]  ;;  %v3299_v5 = vld [vmem:[%s9154_s5] sm:$0xff] }
 0x760   :  { %v2937_v35 = vmul.f32 %v7571_v44, %v2899_v2  ;;  %v3305_v2 = vld [vmem:[%s9154_s5 + $0x30] sm:$0xff] }
 0x761   :  { %6631 = vmatmul.mubr.msk.f32.vlgmr.msra.gmra.mrb[14].mxu0 %vm546_vm2, %v8433_v30  ;;  %6943 = vmatmul.mubr.msk.f32.vlgmr.msra.gmra.mrb[52].mxu1 %vm546_vm2, %v8433_v30  ;;  %v7573_v51 = vpop.eup %7572 }
 0x762   :  { %v2938_v33 = vadd.f32 %v2937_v35, %v8124_v0  ;;  %7196 = vmatpush1.bf16.msra.mxu0 %v7991_v60  ;;  %7199 = vmatpush3.bf16.msra.mxu1 %v8005_v63  ;;  %v2940_v43 = vsub.f32 1.0, %v7573_v51  ;;  %v2942_v47 = vmul.f32 %v7573_v51, %v8396_v55  ;;  %v7202_v35 = vpack.c.bf16 %v3305_v2, %v3299_v5  ;;  %v3307_v51 = vld [vmem:[%s9154_s5 + $0x40] sm:$0xff] }
 0x763   :  { %3166 = vmatprep.mubr.f32.mxu0 %v9176_v7  ;;  %6949 = vmatprep.mubr.msk.f32.mxu1 %vm7758_vm1, %v9176_v7 }
 0x764   :  { %7574 = vtanh.f32 %v2938_v33  ;;  %v3301_v33 = vld [vmem:[%s9154_s5 + $0x10] sm:$0xff]  ;;  %7201 = vmatprep.subr.bf16.mxu0 %v7200_v45  ;;  %v3769_v45 = vld [vmem:[%s9155_s7 + $0x18] sm:$0xff] }
 0x76e   :  { %v7575_v48 = vpop.eup %7574 }
 0x76f   :  { %v2941_v59 = vmul.f32 %v7575_v48, %v2940_v43  ;;  %v7210_v43 = vpack.c.bf16 %v3307_v51, %v3301_v33  ;;  %v3312_v48 = vld [vmem:[%s9154_s5 + $0x68] sm:$0xff]  ;;  %v6668_v33 = vld [vmem:[%s9155_s7 + $0x58] sm:$0xff] }
 0x771   :  { %v8446_v53 = vadd.f32 %v2942_v47, %v2941_v59  ;;  %v3318_v59 = vld [vmem:[%s9154_s5 + $0x98] sm:$0xff] }
 0x772   :  { %v3314_v47 = vld [vmem:[%s9154_s5 + $0x78] sm:$0xff] }
 0x773   :  { %6633 = vmatmul.mubr.msk.f32.vlgmr.msra.gmra.mrb[38].mxu0 %vm546_vm2, %v8446_v53  ;;  %6950 = vmatmul.mubr.msk.f32.vlgmr.msra.gmra.mrb[54].mxu1 %vm546_vm2, %v8446_v53 }
 0x774   :  { %3443 = vmatprep.mubr.f32.mxu0 %v9176_v7  ;;  %3556 = vmatprep.mubr.f32.mxu1 %v9176_v7 }
 0x775   :  { %7203 = vmatpush1.bf16.msra.mxu0 %v7202_v35  ;;  %v6665_v35 = vld [vmem:[%s9155_s7 + $0x40] sm:$0xff] }
 0x776   :  { %v8646_v51 = vpack.c.bf16 %v6668_v33, %v6665_v35 }
 0x834   :  { %v3025_v60 = vpop.f32.mrb[14].mxu0  ;;  %v3096_v63 = vpop.f32.mrb[52].mxu1 }
 0x835   :  { %v7365_v0 = vadd.f32 %v8170_v32, %v3025_v60  ;;  %v3027_v26 = vpop.f32.mrb[15].mxu0  ;;  %v6944_v4 = vpop.f32.mrb[53].mxu1  ;;  %v3097_v8 = vadd.f32 %v3096_v63, %v8179_v58  ;;  %v7204_v60 = vpack.c.bf16 %v3318_v59, %v3312_v48  ;;  %v3320_v63 = vld [vmem:[%s9154_s5 + $0xa8] sm:$0xff]  ;;  %v9179_v48 = vld [vmem:[#allocation4_spill] sm:$0xff] }
 0x836   :  { %v7367_v55 = vadd.f32 %v8173_v3, %v3027_v26  ;;  %v3317_v26 = vld [vmem:[%s9154_s5 + $0x90] sm:$0xff]  ;;  %v9180_v59 = vsub.s32 3, %v9179_v48 }
 0x837   :  { %v6635_v12 = vmul.f32 -1.442695, %v7365_v0  ;;  %v3311_v0 = vld [vmem:[%s9154_s5 + $0x60] sm:$0xff]  ;;  %7205 = vmatprep.subr.bf16.mxu0 %v7204_v60 }
 0x838   :  { %v6636_v36 = vmul.f32 -1.442695, %v7367_v55  ;;  %v7206_v55 = vpack.c.bf16 %v3317_v26, %v3311_v0 }
 0x839   :  { %7576 = vpow2.f32 %v6635_v12  ;;  %v7212_v12 = vpack.c.bf16 %v3320_v63, %v3314_v47 }
 0x83a   :  { %7578 = vpow2.f32 %v6636_v36  ;;  %v3313_v36 = vld [vmem:[%s9154_s5 + $0x70] sm:$0xff]  ;;  %7207 = vmatpush1.bf16.msra.mxu0 %v7206_v55 }
 0x843   :  { %v7577_v20 = vpop.eup %7576 }
 0x844   :  { %v3251_v46 = vadd.f32 1.0, %v7577_v20  ;;  %v7579_v17 = vpop.eup %7578  ;;  %v3319_v20 = vld [vmem:[%s9154_s5 + $0xa0] sm:$0xff] }
 0x845   :  { %v3252_v37 = vadd.f32 1.0, %v7579_v17 }
 0x846   :  { %7580 = vrcp.f32 %v3251_v46  ;;  %v3168_v39 = vpop.f32.mrb[38].mxu0  ;;  %v3239_v22 = vpop.f32.mrb[54].mxu1  ;;  %v7214_v46 = vpack.c.bf16 %v3319_v20, %v3313_v36 }
 0x847   :  { %v3169_v27 = vadd.f32 %v3168_v39, %v8118_v54  ;;  %v3170_v21 = vpop.f32.mrb[39].mxu0  ;;  %v6951_v42 = vpop.f32.mrb[55].mxu1  ;;  %v3240_v61 = vadd.f32 %v3239_v22, %v8165_v56  ;;  %v3302_v56 = vld [vmem:[%s9154_s5 + $0x18] sm:$0xff] }
 0x848   :  { %v3171_v50 = vadd.f32 %v3170_v21, %v8153_v13  ;;  %v7208_v44 = vpack.c.bf16 %v3308_v28, %v3302_v56  ;;  %v3304_v42 = vld [vmem:[%s9154_s5 + $0x28] sm:$0xff]  ;;  %v3766_v56 = vld [vmem:[%s9155_s7] sm:$0xff] }
 0x849   :  { %v3264_v32 = vadd.f32 %v3169_v27, %v8055_v9  ;;  %v6666_v28 = vld [vmem:[%s9155_s7 + $0x48] sm:$0xff]  ;;  %v8631_v2 = vpack.c.bf16 %v3769_v45, %v3766_v56 }
 0x84a   :  { %v3265_v23 = vadd.f32 %v3171_v50, %v8110_v49  ;;  %7209 = vmatprep.subr.bf16.mxu1 %v7208_v44  ;;  %v3310_v50 = vld [vmem:[%s9154_s5 + $0x58] sm:$0xff]  ;;  %v8633_v44 = vpack.c.bf16 %v6666_v28, %v6663_v29 }
 0x84b   :  { %v6637_v3 = vmul.f32 -1.442695, %v3264_v32  ;;  %7211 = vmatpush1.bf16.msra.mxu1 %v7210_v43  ;;  %v7216_v32 = vpack.c.bf16 %v3310_v50, %v3304_v42  ;;  %v8683_v43 = vld [vmem:[%s9156_s6] sm:$0x3f] }
 0x84c   :  { %v6638_v25 = vmul.f32 -1.442695, %v3265_v23  ;;  %7213 = vmatprep.subr.bf16.mxu1 %v7212_v12  ;;  %v3340_v47 = vrot.slane %v8683_v43, %v9180_v59  ;;  %v8694_v26 = vrot.slane %v8683_v43, %v8051_v6 }
 0x84d   :  { %7582 = vpow2.f32 %v6637_v3  ;;  %7217 = vmatprep.subr.bf16.mxu0 %v7216_v32  ;;  %v3303_v3 = vld [vmem:[%s9154_s5 + $0x20] sm:$0xff] }
 0x84e   :  { %7584 = vrcp.f32 %v3252_v37  ;;  %v3309_v37 = vld [vmem:[%s9154_s5 + $0x50] sm:$0xff] }
 0x84f   :  { %7586 = vpow2.f32 %v6638_v25  ;;  %7215 = vmatpush1.bf16.msra.mxu1 %v7214_v46  ;;  %v7218_v25 = vpack.c.bf16 %v3309_v37, %v3303_v3 }
 0x850   :  { %v7581_v11 = vpop.eup %7580  ;;  %7228 = vmatprep.subr.bf16.mxu1 %v9177_v10 }
 0x851   :  { %v3257_v16 = vmul.f32 %v7581_v11, %v3097_v8  ;;  %v3771_v11 = vld [vmem:[%s9155_s7 + $0x28] sm:$0xff] }
 0x853   :  { %v3258_v54 = vadd.f32 %v3257_v16, %v8097_v40 }
 0x855   :  { %7588 = vtanh.f32 %v3258_v54  ;;  %v3315_v54 = vld [vmem:[%s9154_s5 + $0x80] sm:$0xff] }
 0x857   :  { %v7583_v24 = vpop.eup %7582 }
 0x858   :  { %v3272_v13 = vadd.f32 1.0, %v7583_v24  ;;  %v7585_v9 = vpop.eup %7584  ;;  %v3321_v24 = vld [vmem:[%s9154_s5 + $0xb0] sm:$0xff] }
 0x859   :  { %v7587_v18 = vpop.eup %7586  ;;  %v3260_v15 = vsub.f32 1.0, %v7585_v9  ;;  %v3262_v1 = vmul.f32 %v7585_v9, %v8433_v30 }
 0x85a   :  { %7590 = vrcp.f32 %v3272_v13  ;;  %v3273_v41 = vadd.f32 1.0, %v7587_v18 }
 0x85c   :  { %7592 = vrcp.f32 %v3273_v41  ;;  %v7222_v41 = vpack.c.bf16 %v3321_v24, %v3315_v54 }
 0x85f   :  { %v7589_v49 = vpop.eup %7588 }
 0x860   :  { %v3261_v31 = vmul.f32 %v7589_v49, %v3260_v15  ;;  %v6664_v15 = vld [vmem:[%s9155_s7 + $0x38] sm:$0xff]  ;;  %v6667_v49 = vld [vmem:[%s9155_s7 + $0x50] sm:$0xff] }
 0x862   :  { %v3263_v58 = vadd.f32 %v3262_v1, %v3261_v31  ;;  %v3767_v31 = vld [vmem:[%s9155_s7 + $0x8] sm:$0xff]  ;;  %v3770_v1 = vld [vmem:[%s9155_s7 + $0x20] sm:$0xff] }
 0x864   :  { %v7591_v38 = vpop.eup %7590  ;;  %3285 = vst.msk [vmem:[#allocation3 + $0x38] sm:$0xff] %vm546_vm2, %v3263_v58  ;;  %v8580_v58 = vpack.c.bf16 %v6667_v49, %v6664_v15  ;;  %v9183_v49 = vsub.s32 5, %v9179_v48 }
 0x865   :  { %v3278_v40 = vmul.f32 %v7591_v38, %v3240_v61 }
 0x866   :  { %v7593_v4 = vpop.eup %7592 }
 0x867   :  { %v3279_v34 = vadd.f32 %v3278_v40, %v9178_v14  ;;  %v3281_v39 = vsub.f32 1.0, %v7593_v4  ;;  %v3283_v21 = vmul.f32 %v7593_v4, %v8446_v53  ;;  %v8583_v40 = vpack.c.bf16 %v3770_v1, %v3767_v31  ;;  %v3294_v14 = vld [vmem:[#allocation3 + $0x18] sm:$0xff]  ;;  %v6669_v1 = vld [vmem:[%s9157_s8 + $0x3] sm:$0x7] }
 0x868   :  { %v8735_v31 = vrot.slane %v8683_v43, %v9183_v49 }
 0x869   :  { %7594 = vtanh.f32 %v3279_v34  ;;  %v3296_v34 = vld [vmem:[#allocation3 + $0x28] sm:$0xff] }
 0x86b   :  { %v3298_v5 = vld [vmem:[#allocation3 + $0x38] sm:$0xff] }
 0x873   :  { %v7595_v22 = vpop.eup %7594 }
 0x874   :  { %v3282_v27 = vmul.f32 %v7595_v22, %v3281_v39 }
 0x876   :  { %v3284_v17 = vadd.f32 %v3283_v21, %v3282_v27 }
 0x878   :  { %3287 = vrot.lane.b32.xlu0 %v3284_v17, %s7759_s4 }
 0x87c   :  { %2946 = vrot.lane.b32.xlu0 %v8446_v53, %s7759_s4  ;;  %v3316_v53 = vld [vmem:[%s9154_s5 + $0x88] sm:$0xff] }
 0x880   :  { %1922 = vrot.lane.b32.xlu0 %v8320_v52, %s7759_s4  ;;  %v3768_v52 = vld [vmem:[%s9155_s7 + $0x10] sm:$0xff] }
 0x881   :  { %v8557_v18 = vpack.c.bf16 %v3771_v11, %v3768_v52 }
 0x884   :  { %1236 = vrot.lane.b32.xlu0 %v8239_v19, %s7759_s4  ;;  %v3322_v19 = vld [vmem:[%s9154_s5 + $0xb8] sm:$0xff] }
 0x885   :  { %v7220_v16 = vpack.c.bf16 %v3322_v19, %v3316_v53 }
 0x8ea   :  { %v3288_v23 = vpop.permute.xlu0 %3287 }
 0x8eb   :  { %3290 = vst.msk [vmem:[#allocation3] sm:$0xff] %vm896_vm3, %v3288_v23 }
 0x8ee   :  { %v2947_v8 = vpop.permute.xlu0 %2946 }
 0x8ef   :  { %2949 = vst.msk [vmem:[#allocation3 + $0x8] sm:$0xff] %vm896_vm3, %v2947_v8 }
 0x8f2   :  { %v1923_v13 = vpop.permute.xlu0 %1922  ;;  %v8555_v9 = vld [vmem:[#allocation3] sm:$0xff] }
 0x8f3   :  { %1926 = vst.msk [vmem:[#allocation3 + $0x20] sm:$0xff] %vm896_vm3, %v1923_v13  ;;  %6639 = vmatmul.mubr.msk.f32.vlgmr.msra.gmra.mrb[40].mxu0 %vm96_vm0, %v8555_v9  ;;  %6647 = vmatmul.mubr.msk.f32.vlgmr.msra.gmra.mrb[56].mxu1 %vm96_vm0, %v8555_v9 }
 0x8f4   :  { %2262 = vst.msk [vmem:[#allocation3 + $0x20] sm:$0xff] %vm546_vm2, %v8344_v62  ;;  %7219 = vmatpush1.bf16.msra.mxu0 %v7218_v25  ;;  %3449 = vmatprep.mubr.f32.mxu0 %v9176_v7  ;;  %v3293_v62 = vld [vmem:[#allocation3 + $0x10] sm:$0xff] }
 0x8f5   :  { %3562 = vmatprep.mubr.f32.mxu1 %v9176_v7  ;;  %7221 = vmatprep.subr.bf16.mxu0 %v7220_v16 }
 0x8f6   :  { %v1237_v61 = vpop.permute.xlu0 %1236  ;;  %v3292_v38 = vld [vmem:[#allocation3 + $0x8] sm:$0xff]  ;;  %7230 = vmatpush3.bf16.msra.mxu1 %v8557_v18 }
 0x8f7   :  { %1240 = vst.msk [vmem:[#allocation3 + $0x30] sm:$0xff] %vm896_vm3, %v1237_v61  ;;  %6640 = vmatmul.mubr.msk.f32.gmra.mrb[42].mxu0 %vm96_vm0, %v3292_v38  ;;  %6648 = vmatmul.mubr.msk.f32.gmra.mrb[58].mxu1 %vm96_vm0, %v3292_v38 }
 0x8f8   :  { %2944 = vst.msk [vmem:[#allocation3 + $0x30] sm:$0xff] %vm546_vm2, %v8433_v30  ;;  %3455 = vmatprep.mubr.f32.mxu0 %v9176_v7  ;;  %3568 = vmatprep.mubr.f32.mxu1 %v9176_v7 }
 0x8f9   :  { %7223 = vmatpush1.bf16.msra.mxu0 %v7222_v41  ;;  %7232 = vmatprep.subr.bf16.mxu1 %v8580_v58 }
 0x8fa   :  { %7225 = vmatprep.subr.bf16.mxu0 %v8583_v40 }
 0x8fb   :  { %6641 = vmatmul.mubr.msk.f32.gmra.mrb[44].mxu0 %vm96_vm0, %v3293_v62  ;;  %6649 = vmatmul.mubr.msk.f32.gmra.mrb[60].mxu1 %vm96_vm0, %v3293_v62  ;;  %v3295_v30 = vld [vmem:[#allocation3 + $0x20] sm:$0xff] }
 0x8fc   :  { %3461 = vmatprep.mubr.f32.mxu0 %v9176_v7  ;;  %3574 = vmatprep.mubr.f32.mxu1 %v9176_v7 }
 0x8ff   :  { %6642 = vmatmul.mubr.msk.f32.gmra.mrb[46].mxu0 %vm96_vm0, %v3294_v14  ;;  %6650 = vmatmul.mubr.msk.f32.gmra.mrb[62].mxu1 %vm96_vm0, %v3294_v14  ;;  %v3297_v57 = vld [vmem:[#allocation3 + $0x30] sm:$0xff] }
 0x900   :  { %3467 = vmatprep.mubr.f32.mxu0 %v9176_v7  ;;  %3580 = vmatprep.mubr.f32.mxu1 %v9176_v7 }
 0x903   :  { %6643 = vmatmul.mubr.msk.f32.gmra.mrb[48].mxu0 %vm96_vm0, %v3295_v30  ;;  %6651 = vmatmul.mubr.msk.f32.gmra.mrb[64].mxu1 %vm96_vm0, %v3295_v30 }
 0x904   :  { %3473 = vmatprep.mubr.f32.mxu0 %v9176_v7  ;;  %3586 = vmatprep.mubr.f32.mxu1 %v9176_v7 }
 0x907   :  { %6644 = vmatmul.mubr.msk.f32.gmra.mrb[50].mxu0 %vm96_vm0, %v3296_v34  ;;  %6652 = vmatmul.mubr.msk.f32.gmra.mrb[66].mxu1 %vm96_vm0, %v3296_v34 }
 0x908   :  { %3479 = vmatprep.mubr.f32.mxu0 %v9176_v7  ;;  %3592 = vmatprep.mubr.f32.mxu1 %v9176_v7 }
 0x90b   :  { %6645 = vmatmul.mubr.msk.f32.gmra.mrb[52].mxu0 %vm96_vm0, %v3297_v57  ;;  %6653 = vmatmul.mubr.msk.f32.gmra.mrb[68].mxu1 %vm96_vm0, %v3297_v57 }
 0x90c   :  { %3485 = vmatprep.mubr.f32.mxu0 %v9176_v7  ;;  %3598 = vmatprep.mubr.f32.mxu1 %v9176_v7 }
 0x90f   :  { %6646 = vmatmul.mubr.msk.f32.gmra.mrb[54].mxu0 %vm96_vm0, %v3298_v5  ;;  %6654 = vmatmul.mubr.msk.f32.gmra.mrb[70].mxu1 %vm96_vm0, %v3298_v5 }
 0x910   :  { %3669 = vmatprep.mubr.f32.mxu0 %v9176_v7  ;;  %6956 = vmatprep.mubr.msk.f32.mxu1 %vm7758_vm1, %v9176_v7 }
 0x913   :  { %6655 = vmatmul.mubr.msk.f32.vlgmr.msra.gmra.mrb[56].mxu0 %vm96_vm0, %v8555_v9  ;;  %6957 = vmatmul.mubr.f32.vlgmr.msra.gmra.mrb[72].mxu1 %v9176_v7  ;;  %v9182_v9 = vsub.s32 4, %v9179_v48 }
 0x914   :  { %7227 = vmatpush1.bf16.msra.mxu0 %v8631_v2  ;;  %7234 = vmatpush1.bf16.msra.mxu1 %v8633_v44 }
 0x915   :  { %3675 = vmatprep.mubr.f32.mxu0 %v9176_v7  ;;  %4025 = vmatprep.mubr.f32.mxu1 %v9176_v7  ;;  %v3344_v15 = vrot.slane %v8683_v43, %v9182_v9 }
 0x916   :  { %7235 = vmatprep.subr.bf16.mxu1 %v9177_v10  ;;  %7239 = vmatprep.subr.bf16.mxu0 %v8583_v40 }
 0x917   :  { %6656 = vmatmul.mubr.msk.f32.gmra.mrb[58].mxu0 %vm96_vm0, %v3292_v38  ;;  %4026 = vmatmul.mubr.f32.vlgmr.msra.gmra.mrb[74].mxu1 %v9176_v7 }
 0x918   :  { %3681 = vmatprep.mubr.f32.mxu0 %v9176_v7  ;;  %7237 = vmatpush3.bf16.msra.mxu1 %v8646_v51 }
 0x919   :  { %6963 = vmatprep.mubr.msk.f32.mxu1 %vm7758_vm1, %v9176_v7  ;;  %7242 = vmatprep.subr.bf16.mxu1 %v9177_v10 }
 0x91b   :  { %6657 = vmatmul.mubr.msk.f32.gmra.mrb[60].mxu0 %vm96_vm0, %v3293_v62  ;;  %6964 = vmatmul.mubr.f32.vlgmr.msra.gmra.mrb[76].mxu1 %v9176_v7 }
 0x91c   :  { %3687 = vmatprep.mubr.f32.mxu0 %v9176_v7  ;;  %7244 = vmatpush3.bf16.msra.mxu1 %v8557_v18 }
 0x91d   :  { %6970 = vmatprep.mubr.msk.f32.mxu1 %vm7758_vm1, %v9176_v7  ;;  %7246 = vmatprep.subr.bf16.mxu1 %v8580_v58 }
 0x91f   :  { %6658 = vmatmul.mubr.msk.f32.gmra.mrb[62].mxu0 %vm96_vm0, %v3294_v14 }
 0x920   :  { %3693 = vmatprep.mubr.f32.mxu0 %v9176_v7 }
 0x923   :  { %6659 = vmatmul.mubr.msk.f32.gmra.mrb[64].mxu0 %vm96_vm0, %v3295_v30  ;;  %v9185_v30 = vld [vmem:[#allocation5_spill] sm:$0xff] }
 0x924   :  { %3699 = vmatprep.mubr.f32.mxu0 %v9176_v7 }
 0x927   :  { %6660 = vmatmul.mubr.msk.f32.gmra.mrb[66].mxu0 %vm96_vm0, %v3296_v34  ;;  %v8745_v34 = vrot.slane %v6669_v1, %v9185_v30 }
 0x928   :  { %3705 = vmatprep.mubr.f32.mxu0 %v9176_v7 }
 0x92b   :  { %6661 = vmatmul.mubr.msk.f32.gmra.mrb[68].mxu0 %vm96_vm0, %v3297_v57 }
 0x92c   :  { %3711 = vmatprep.mubr.f32.mxu0 %v9176_v7 }
 0x92f   :  { %6662 = vmatmul.mubr.msk.f32.gmra.mrb[70].mxu0 %vm96_vm0, %v3298_v5 }
 0x930   :  { %3868 = vmatprep.mubr.f32.mxu0 %v9176_v7 }
 0x933   :  { %3869 = vmatmul.mubr.f32.vlgmr.msra.gmra.mrb[40].mxu0 %v9176_v7 }
 0x934   :  { %7241 = vmatpush1.bf16.msra.mxu0 %v8631_v2  ;;  %4224 = vmatprep.mubr.f32.mxu0 %v9176_v7 }
 0x935   :  { %7253 = vmatprep.subr.bf16.mxu0 %v8583_v40 }
 0x9c6   :  { %v8688_v60 = vpop.f32.mrb[56].mxu1 }
 0x9c7   :  { %v3560_v63 = vpop.f32.mrb[57].mxu1 }
 0x9c8   :  { %v8690_v0 = vadd.f32 %v3560_v63, %v3340_v47 }
 0x9ca   :  { %v3564_v4 = vpop.f32.mrb[58].mxu1 }
 0x9cb   :  { %v8697_v12 = vadd.f32 %v3564_v4, %v8694_v26  ;;  %v3566_v55 = vpop.f32.mrb[59].mxu1 }
 0x9cc   :  { %v8699_v36 = vadd.f32 %v3566_v55, %v3340_v47 }
 0x9ce   :  { %v3570_v20 = vpop.f32.mrb[60].mxu1 }
 0x9cf   :  { %v8702_v46 = vadd.f32 %v3570_v20, %v8694_v26  ;;  %v3572_v39 = vpop.f32.mrb[61].mxu1 }
 0x9d0   :  { %v8704_v22 = vadd.f32 %v3572_v39, %v3340_v47 }
 0x9d2   :  { %v3576_v27 = vpop.f32.mrb[62].mxu1 }
 0x9d3   :  { %v8707_v21 = vadd.f32 %v3576_v27, %v8694_v26  ;;  %v3578_v42 = vpop.f32.mrb[63].mxu1 }
 0x9d4   :  { %v8709_v50 = vadd.f32 %v3578_v42, %v3340_v47 }
 0x9d6   :  { %v3582_v32 = vpop.f32.mrb[64].mxu1 }
 0x9d7   :  { %v8712_v17 = vadd.f32 %v3582_v32, %v8694_v26  ;;  %v3584_v23 = vpop.f32.mrb[65].mxu1 }
 0x9d8   :  { %v8714_v3 = vadd.f32 %v3584_v23, %v3340_v47 }
 0x9da   :  { %v3588_v37 = vpop.f32.mrb[66].mxu1 }
 0x9db   :  { %v8717_v8 = vadd.f32 %v3588_v37, %v8694_v26  ;;  %v3590_v53 = vpop.f32.mrb[67].mxu1 }
 0x9dc   :  { %v8719_v19 = vadd.f32 %v3590_v53, %v3340_v47 }
 0x9de   :  { %v3594_v52 = vpop.f32.mrb[68].mxu1 }
 0x9df   :  { %v8722_v11 = vadd.f32 %v3594_v52, %v8694_v26  ;;  %v3596_v25 = vpop.f32.mrb[69].mxu1 }
 0x9e0   :  { %v8724_v16 = vadd.f32 %v3596_v25, %v3340_v47 }
 0x9e2   :  { %v3600_v54 = vpop.f32.mrb[70].mxu1 }
 0x9e3   :  { %v8727_v24 = vadd.f32 %v3600_v54, %v8694_v26  ;;  %v3602_v13 = vpop.f32.mrb[71].mxu1 }
 0x9e4   :  { %v3603_v45 = vadd.f32 %v3602_v13, %v3340_v47 }
 0x9e5   :  { %9181 = vst [vmem:[#allocation6_spill] sm:$0xff] %v8727_v24 }
 0x9e6   :  { %v3671_v41 = vpop.f32.mrb[56].mxu0  ;;  %v8740_v61 = vpop.f32.mrb[72].mxu1 }
 0x9e7   :  { %v8742_v38 = vadd.f32 %v3671_v41, %v3344_v15  ;;  %v3673_v62 = vpop.f32.mrb[57].mxu0  ;;  %v6958_v14 = vpop.f32.mrb[73].mxu1 }
 0x9e8   :  { %v8748_v57 = vadd.f32 %v3673_v62, %v8735_v31  ;;  %v3779_v62 = vld [vmem:[%s9157_s8] sm:$0x7] }
 0x9e9   :  { %9184 = vst [vmem:[#allocation4_spill] sm:$0xff] %v8742_v38 }
 0x9ea   :  { %9186 = vst [vmem:[#allocation5_spill] sm:$0xff] %v8748_v57  ;;  %v3677_v29 = vpop.f32.mrb[58].mxu0  ;;  %v4027_v56 = vpop.f32.mrb[74].mxu1 }
 0x9eb   :  { %v8750_v28 = vadd.f32 %v3677_v29, %v3344_v15  ;;  %v4028_v5 = vadd.f32 %v4027_v56, %v8745_v34  ;;  %v3679_v35 = vpop.f32.mrb[59].mxu0  ;;  %v4029_v33 = vpop.f32.mrb[75].mxu1  ;;  %v9187_v56 = vld [vmem:[#allocation7_spill] sm:$0xff] }
 0x9ec   :  { %v8754_v48 = vadd.f32 %v3679_v35, %v8735_v31 }
 0x9ed   :  { %v4123_v59 = vadd.f32 %v4028_v5, %v3603_v45  ;;  %v8780_v45 = vrot.slane %v6669_v1, %v9187_v56 }
 0x9ee   :  { %v3683_v63 = vpop.f32.mrb[60].mxu0  ;;  %v4098_v4 = vpop.f32.mrb[76].mxu1 }
 0x9ef   :  { %v6672_v55 = vmul.f32 -1.442695, %v4123_v59  ;;  %v8756_v20 = vadd.f32 %v3683_v63, %v3344_v15  ;;  %v3685_v39 = vpop.f32.mrb[61].mxu0  ;;  %v6965_v27 = vpop.f32.mrb[77].mxu1  ;;  %v3328_v63 = vrot.slane %v8683_v43, %v9185_v30 }
 0x9f0   :  { %v8759_v42 = vadd.f32 %v3685_v39, %v8735_v31  ;;  %v4030_v27 = vadd.f32 %v4029_v33, %v8780_v45 }
 0x9f1   :  { %7596 = vpow2.f32 %v6672_v55  ;;  %v3792_v55 = vrot.slane %v3779_v62, %v9185_v30 }
 0x9f2   :  { %v3689_v47 = vpop.f32.mrb[62].mxu0 }
 0x9f3   :  { %v8761_v32 = vadd.f32 %v3689_v47, %v3344_v15  ;;  %v3691_v23 = vpop.f32.mrb[63].mxu0  ;;  %v8792_v47 = vrot.slane %v6669_v1, %v8051_v6 }
 0x9f4   :  { %v8764_v37 = vadd.f32 %v3691_v23, %v8735_v31 }
 0x9f5   :  { %v4099_v30 = vadd.f32 %v4098_v4, %v8792_v47 }
 0x9f6   :  { %v3695_v53 = vpop.f32.mrb[64].mxu0 }
 0x9f7   :  { %v8766_v52 = vadd.f32 %v3695_v53, %v3344_v15  ;;  %v3697_v25 = vpop.f32.mrb[65].mxu0  ;;  %v3332_v53 = vrot.slane %v8683_v43, %v9187_v56 }
 0x9f8   :  { %v8769_v54 = vadd.f32 %v3697_v25, %v8735_v31  ;;  %v3796_v25 = vrot.slane %v3779_v62, %v9187_v56 }
 0x9fa   :  { %v3701_v13 = vpop.f32.mrb[66].mxu0 }
 0x9fb   :  { %v7597_v9 = vpop.eup %7596  ;;  %v8771_v49 = vadd.f32 %v3701_v13, %v3344_v15  ;;  %v3703_v41 = vpop.f32.mrb[67].mxu0 }
 0x9fc   :  { %v4131_v14 = vadd.f32 1.0, %v7597_v9  ;;  %v8777_v29 = vadd.f32 %v3703_v41, %v8735_v31  ;;  %v8797_v41 = vadd.f32 %v3792_v55, %v3328_v63 }
 0x9fe   :  { %7598 = vrcp.f32 %v4131_v14  ;;  %v3707_v5 = vpop.f32.mrb[68].mxu0 }
 0x9ff   :  { %v8782_v35 = vadd.f32 %v3707_v5, %v3344_v15  ;;  %v3709_v59 = vpop.f32.mrb[69].mxu0 }
 0xa00   :  { %v8788_v39 = vadd.f32 %v3709_v59, %v8735_v31  ;;  %v8800_v59 = vadd.f32 %v3796_v25, %v3332_v53 }
 0xa02   :  { %v3713_v23 = vpop.f32.mrb[70].mxu0 }
 0xa03   :  { %v3714_v13 = vadd.f32 %v3713_v23, %v3344_v15  ;;  %v3715_v9 = vpop.f32.mrb[71].mxu0 }
 0xa04   :  { %v3716_v43 = vadd.f32 %v3715_v9, %v8735_v31 }
 0xa05   :  { %v4124_v14 = vadd.f32 %v4030_v27, %v3714_v13  ;;  %v8806_v13 = vrot.slane %v3779_v62, %v8051_v6 }
 0xa06   :  { %v3870_v5 = vpop.f32.mrb[40].mxu0 }
 0xa07   :  { %v6673_v33 = vmul.f32 -1.442695, %v4124_v14  ;;  %v7369_v1 = vadd.f32 %v8797_v41, %v3870_v5  ;;  %v3872_v57 = vpop.f32.mrb[41].mxu0 }
 0xa08   :  { %v7599_v24 = vpop.eup %7598  ;;  %v7371_v15 = vadd.f32 %v8800_v59, %v3872_v57 }
 0xa09   :  { %7600 = vpow2.f32 %v6673_v33  ;;  %v6670_v38 = vmul.f32 -1.442695, %v7369_v1  ;;  %v4137_v56 = vmul.f32 %v7599_v24, %v4099_v30  ;;  %v3559_v30 = vadd.f32 %v8688_v60, %v8694_v26 }
 0xa0a   :  { %v6671_v55 = vmul.f32 -1.442695, %v7371_v15 }
 0xa0b   :  { %7602 = vpow2.f32 %v6670_v38  ;;  %v4138_v63 = vadd.f32 %v4137_v56, %v3716_v43  ;;  %v3942_v38 = vadd.f32 %v8740_v61, %v8806_v13 }
 0xa0c   :  { %7604 = vpow2.f32 %v6671_v55 }
 0xa13   :  { %v7601_v4 = vpop.eup %7600 }
 0xa14   :  { %v4132_v27 = vadd.f32 1.0, %v7601_v4 }
 0xa15   :  { %v7603_v23 = vpop.eup %7602 }
 0xa16   :  { %7606 = vrcp.f32 %v4132_v27  ;;  %v4110_v53 = vadd.f32 1.0, %v7603_v23  ;;  %v7605_v25 = vpop.eup %7604 }
 0xa17   :  { %7608 = vtanh.f32 %v4138_v63  ;;  %v4111_v31 = vadd.f32 1.0, %v7605_v25 }
 0xa18   :  { %7610 = vrcp.f32 %v4110_v53 }
 0xa19   :  { %7612 = vrcp.f32 %v4111_v31 }
 0xa20   :  { %v7607_v9 = vpop.eup %7606 }
 0xa21   :  { %v7609_v24 = vpop.eup %7608  ;;  %v4140_v57 = vsub.f32 1.0, %v7607_v9  ;;  %v4142_v1 = vmul.f32 0.0, %v7607_v9 }
 0xa22   :  { %v7611_v14 = vpop.eup %7610 }
 0xa23   :  { %v4116_v5 = vmul.f32 %v7611_v14, %v3942_v38  ;;  %v4141_v33 = vmul.f32 %v7609_v24, %v4140_v57  ;;  %v7613_v6 = vpop.eup %7612 }
 0xa24   :  { %v4119_v62 = vsub.f32 1.0, %v7613_v6  ;;  %v4121_v63 = vmul.f32 0.0, %v7613_v6 }
 0xa25   :  { %v4117_v43 = vadd.f32 %v4116_v5, %v3559_v30  ;;  %v8812_v56 = vadd.f32 %v4142_v1, %v4141_v33 }
 0xa27   :  { %7614 = vtanh.f32 %v4117_v43  ;;  %4146 = vrot.lane.b32.xlu0 %v8812_v56, %s7759_s4 }
 0xa31   :  { %v7615_v15 = vpop.eup %7614 }
 0xa32   :  { %v4120_v61 = vmul.f32 %v7615_v15, %v4119_v62 }
 0xa34   :  { %v8816_v55 = vadd.f32 %v4121_v63, %v4120_v61 }
 0xa36   :  { %6675 = vmatmul.mubr.msk.f32.vlgmr.msra.gmra.mrb[42].mxu0 %vm546_vm2, %v8816_v55  ;;  %6971 = vmatmul.mubr.msk.f32.vlgmr.msra.gmra.mrb[78].mxu1 %vm546_vm2, %v8816_v55  ;;  %4144 = vst.msk [vmem:[%s9158_s9] sm:$0xff] %vm546_vm2, %v8816_v55 }
 0xa37   :  { %7248 = vmatpush1.bf16.msra.mxu1 %v8633_v44  ;;  %4367 = vmatprep.mubr.f32.mxu1 %v9176_v7 }
 0xa38   :  { %7249 = vmatprep.subr.bf16.mxu1 %v9177_v10  ;;  %7255 = vmatpush1.bf16.msra.mxu0 %v8631_v2 }
 0xa39   :  { %4567 = vmatprep.mubr.f32.mxu0 %v9176_v7  ;;  %7267 = vmatprep.subr.bf16.mxu0 %v8583_v40 }
 0xa3a   :  { %6677 = vmatmul.mubr.msk.f32.vlgmr.msra.gmra.mrb[80].mxu1 %vm546_vm2, %v8812_v56 }
 0xa3b   :  { %7251 = vmatpush3.bf16.msra.mxu1 %v8646_v51  ;;  %6977 = vmatprep.mubr.msk.f32.mxu1 %vm7758_vm1, %v9176_v7 }
 0xa3c   :  { %7256 = vmatprep.subr.bf16.mxu1 %v9177_v10 }
 0xa3e   :  { %6978 = vmatmul.mubr.msk.f32.vlgmr.msra.gmra.mrb[82].mxu1 %vm546_vm2, %v8812_v56 }
 0xa3f   :  { %7258 = vmatpush3.bf16.msra.mxu1 %v8557_v18  ;;  %6984 = vmatprep.mubr.msk.f32.mxu1 %vm7758_vm1, %v9176_v7 }
 0xa40   :  { %7260 = vmatprep.subr.bf16.mxu1 %v8580_v58 }
 0xa99   :  { %v4147_v60 = vpop.permute.xlu0 %4146 }
 0xa9a   :  { %6674 = vst.msk [vmem:[%s9158_s9 + $0x38] sm:$0xff] %vm896_vm3, %v4147_v60 }
 0xb09   :  { %v4226_v26 = vpop.f32.mrb[42].mxu0  ;;  %v4297_v4 = vpop.f32.mrb[78].mxu1 }
 0xb0a   :  { %v7373_v27 = vadd.f32 %v8797_v41, %v4226_v26  ;;  %v4228_v23 = vpop.f32.mrb[43].mxu0  ;;  %v6972_v53 = vpop.f32.mrb[79].mxu1 }
 0xb0b   :  { %v7375_v31 = vadd.f32 %v8800_v59, %v4228_v23 }
 0xb0c   :  { %v6679_v25 = vmul.f32 -1.442695, %v7373_v27 }
 0xb0d   :  { %v4369_v9 = vpop.f32.mrb[80].mxu1  ;;  %v6680_v30 = vmul.f32 -1.442695, %v7375_v31 }
 0xb0e   :  { %7616 = vpow2.f32 %v6679_v25  ;;  %v4370_v24 = vadd.f32 %v4369_v9, %v8745_v34  ;;  %v4371_v38 = vpop.f32.mrb[81].mxu1 }
 0xb0f   :  { %v4372_v57 = vadd.f32 %v4371_v38, %v8780_v45 }
 0xb10   :  { %v4465_v14 = vadd.f32 %v4370_v24, %v8724_v16  ;;  %v4298_v16 = vadd.f32 %v4297_v4, %v8806_v13 }
 0xb11   :  { %v4466_v5 = vadd.f32 %v4372_v57, %v8782_v35  ;;  %v4440_v33 = vpop.f32.mrb[82].mxu1 }
 0xb12   :  { %v6681_v1 = vmul.f32 -1.442695, %v4465_v14  ;;  %v6979_v43 = vpop.f32.mrb[83].mxu1  ;;  %v4441_v31 = vadd.f32 %v4440_v33, %v8792_v47 }
 0xb13   :  { %v6682_v6 = vmul.f32 -1.442695, %v4466_v5 }
 0xb14   :  { %7618 = vpow2.f32 %v6681_v1 }
 0xb15   :  { %7620 = vpow2.f32 %v6680_v30 }
 0xb16   :  { %7622 = vpow2.f32 %v6682_v6 }
 0xb18   :  { %v7617_v62 = vpop.eup %7616 }
 0xb19   :  { %v4452_v15 = vadd.f32 1.0, %v7617_v62 }
 0xb1b   :  { %7624 = vrcp.f32 %v4452_v15 }
 0xb1e   :  { %v7619_v61 = vpop.eup %7618 }
 0xb1f   :  { %v7621_v63 = vpop.eup %7620  ;;  %v4473_v60 = vadd.f32 1.0, %v7619_v61 }
 0xb20   :  { %v4453_v26 = vadd.f32 1.0, %v7621_v63  ;;  %v7623_v27 = vpop.eup %7622 }
 0xb21   :  { %7626 = vrcp.f32 %v4473_v60  ;;  %v4474_v25 = vadd.f32 1.0, %v7623_v27 }
 0xb22   :  { %7628 = vrcp.f32 %v4453_v26 }
 0xb25   :  { %v7625_v23 = vpop.eup %7624 }
 0xb26   :  { %v4458_v35 = vmul.f32 %v7625_v23, %v4298_v16 }
 0xb28   :  { %v4459_v53 = vadd.f32 %v4458_v35, %v8697_v12 }
 0xb2a   :  { %7630 = vtanh.f32 %v4459_v53 }
 0xb2b   :  { %v7627_v9 = vpop.eup %7626  ;;  %7632 = vrcp.f32 %v4474_v25 }
 0xb2c   :  { %v4479_v24 = vmul.f32 %v7627_v9, %v4441_v31  ;;  %v7629_v57 = vpop.eup %7628 }
 0xb2d   :  { %v4461_v14 = vsub.f32 1.0, %v7629_v57  ;;  %v4463_v4 = vmul.f32 %v7629_v57, %v8816_v55 }
 0xb2e   :  { %v4480_v38 = vadd.f32 %v4479_v24, %v8788_v39 }
 0xb30   :  { %7634 = vtanh.f32 %v4480_v38 }
 0xb34   :  { %v7631_v30 = vpop.eup %7630 }
 0xb35   :  { %v4462_v5 = vmul.f32 %v7631_v30, %v4461_v14  ;;  %v7633_v1 = vpop.eup %7632 }
 0xb36   :  { %v4482_v12 = vsub.f32 1.0, %v7633_v1  ;;  %v4484_v33 = vmul.f32 %v7633_v1, %v8812_v56 }
 0xb37   :  { %v8860_v43 = vadd.f32 %v4463_v4, %v4462_v5 }
 0xb39   :  { %6685 = vmatmul.mubr.msk.f32.vlgmr.msra.gmra.mrb[44].mxu0 %vm546_vm2, %v8860_v43  ;;  %6683 = vst.msk [vmem:[%s9158_s9 + $0x8] sm:$0xff] %vm546_vm2, %v8860_v43  ;;  %6985 = vmatmul.mubr.msk.f32.vlgmr.msra.gmra.mrb[84].mxu1 %vm546_vm2, %v8860_v43 }
 0xb3a   :  { %v7635_v39 = vpop.eup %7634  ;;  %7262 = vmatpush1.bf16.msra.mxu1 %v8633_v44  ;;  %4710 = vmatprep.mubr.f32.mxu1 %v9176_v7 }
 0xb3b   :  { %7263 = vmatprep.subr.bf16.mxu1 %v9177_v10  ;;  %v4483_v55 = vmul.f32 %v7635_v39, %v4482_v12  ;;  %7269 = vmatpush1.bf16.msra.mxu0 %v8631_v2 }
 0xb3c   :  { %4910 = vmatprep.mubr.f32.mxu0 %v9176_v7  ;;  %7281 = vmatprep.subr.bf16.mxu0 %v8583_v40 }
 0xb3d   :  { %v8878_v6 = vadd.f32 %v4484_v33, %v4483_v55 }
 0xb3f   :  { %4489 = vrot.lane.b32.xlu1 %v8878_v6, %s7759_s4  ;;  %6687 = vmatmul.mubr.msk.f32.vlgmr.msra.gmra.mrb[86].mxu1 %vm546_vm2, %v8878_v6 }
 0xb40   :  { %7265 = vmatpush3.bf16.msra.mxu1 %v8646_v51  ;;  %6991 = vmatprep.mubr.msk.f32.mxu1 %vm7758_vm1, %v9176_v7 }
 0xb41   :  { %7270 = vmatprep.subr.bf16.mxu1 %v9177_v10 }
 0xb43   :  { %6992 = vmatmul.mubr.msk.f32.vlgmr.msra.gmra.mrb[88].mxu1 %vm546_vm2, %v8878_v6 }
 0xb44   :  { %7272 = vmatpush3.bf16.msra.mxu1 %v8557_v18  ;;  %6998 = vmatprep.mubr.msk.f32.mxu1 %vm7758_vm1, %v9176_v7 }
 0xb45   :  { %7274 = vmatprep.subr.bf16.mxu1 %v8580_v58 }
 0xbb1   :  { %v4490_v56 = vpop.permute.xlu1 %4489 }
 0xbb2   :  { %6684 = vst.msk [vmem:[%s9158_s9 + $0x30] sm:$0xff] %vm896_vm3, %v4490_v56 }
 0xc0c   :  { %v4569_v62 = vpop.f32.mrb[44].mxu0  ;;  %v4640_v15 = vpop.f32.mrb[84].mxu1 }
 0xc0d   :  { %v7377_v61 = vadd.f32 %v8797_v41, %v4569_v62  ;;  %v4571_v63 = vpop.f32.mrb[45].mxu0  ;;  %v6986_v60 = vpop.f32.mrb[85].mxu1  ;;  %v4641_v55 = vadd.f32 %v4640_v15, %v8806_v13 }
 0xc0e   :  { %v7379_v27 = vadd.f32 %v8800_v59, %v4571_v63 }
 0xc0f   :  { %v6689_v26 = vmul.f32 -1.442695, %v7377_v61 }
 0xc10   :  { %v6690_v53 = vmul.f32 -1.442695, %v7379_v27 }
 0xc11   :  { %7636 = vpow2.f32 %v6689_v26 }
 0xc12   :  { %v4712_v16 = vpop.f32.mrb[86].mxu1  ;;  %7638 = vpow2.f32 %v6690_v53 }
 0xc13   :  { %v4713_v23 = vadd.f32 %v4712_v16, %v8745_v34  ;;  %v4714_v35 = vpop.f32.mrb[87].mxu1 }
 0xc14   :  { %v4715_v25 = vadd.f32 %v4714_v35, %v8780_v45 }
 0xc15   :  { %v4808_v31 = vadd.f32 %v4713_v23, %v8719_v19 }
 0xc16   :  { %v4809_v9 = vadd.f32 %v4715_v25, %v8771_v49  ;;  %v4783_v24 = vpop.f32.mrb[88].mxu1 }
 0xc17   :  { %v6691_v38 = vmul.f32 -1.442695, %v4808_v31  ;;  %v6993_v57 = vpop.f32.mrb[89].mxu1  ;;  %v4784_v61 = vadd.f32 %v4783_v24, %v8792_v47 }
 0xc18   :  { %v6692_v5 = vmul.f32 -1.442695, %v4809_v9 }
 0xc19   :  { %7640 = vpow2.f32 %v6691_v38 }
 0xc1b   :  { %v7637_v14 = vpop.eup %7636 }
 0xc1c   :  { %v4795_v30 = vadd.f32 1.0, %v7637_v14  ;;  %v7639_v4 = vpop.eup %7638 }
 0xc1d   :  { %v4796_v39 = vadd.f32 1.0, %v7639_v4 }
 0xc1e   :  { %7642 = vrcp.f32 %v4795_v30 }
 0xc1f   :  { %7644 = vpow2.f32 %v6692_v5 }
 0xc23   :  { %v7641_v1 = vpop.eup %7640 }
 0xc24   :  { %v4816_v12 = vadd.f32 1.0, %v7641_v1 }
 0xc26   :  { %7646 = vrcp.f32 %v4816_v12 }
 0xc27   :  { %7648 = vrcp.f32 %v4796_v39 }
 0xc28   :  { %v7643_v19 = vpop.eup %7642 }
 0xc29   :  { %v4801_v33 = vmul.f32 %v7643_v19, %v4641_v55  ;;  %v7645_v49 = vpop.eup %7644 }
 0xc2a   :  { %v4817_v62 = vadd.f32 1.0, %v7645_v49 }
 0xc2b   :  { %v4802_v56 = vadd.f32 %v4801_v33, %v8702_v46 }
 0xc2d   :  { %7650 = vtanh.f32 %v4802_v56 }
 0xc2e   :  { %7652 = vrcp.f32 %v4817_v62 }
 0xc30   :  { %v7647_v63 = vpop.eup %7646 }
 0xc31   :  { %v4822_v60 = vmul.f32 %v7647_v63, %v4784_v61  ;;  %v7649_v26 = vpop.eup %7648 }
 0xc32   :  { %v4804_v16 = vsub.f32 1.0, %v7649_v26  ;;  %v4806_v35 = vmul.f32 %v7649_v26, %v8860_v43 }
 0xc33   :  { %v4823_v27 = vadd.f32 %v4822_v60, %v8777_v29 }
 0xc35   :  { %7654 = vtanh.f32 %v4823_v27 }
 0xc37   :  { %v7651_v23 = vpop.eup %7650 }
 0xc38   :  { %v4805_v15 = vmul.f32 %v7651_v23, %v4804_v16  ;;  %v7653_v25 = vpop.eup %7652 }
 0xc39   :  { %v4825_v46 = vsub.f32 1.0, %v7653_v25  ;;  %v4827_v31 = vmul.f32 %v7653_v25, %v8878_v6 }
 0xc3a   :  { %v8909_v53 = vadd.f32 %v4806_v35, %v4805_v15 }
 0xc3c   :  { %6695 = vmatmul.mubr.msk.f32.vlgmr.msra.gmra.mrb[46].mxu0 %vm546_vm2, %v8909_v53  ;;  %6693 = vst.msk [vmem:[%s9158_s9 + $0x10] sm:$0xff] %vm546_vm2, %v8909_v53  ;;  %6999 = vmatmul.mubr.msk.f32.vlgmr.msra.gmra.mrb[90].mxu1 %vm546_vm2, %v8909_v53 }
 0xc3d   :  { %7276 = vmatpush1.bf16.msra.mxu1 %v8633_v44  ;;  %5053 = vmatprep.mubr.f32.mxu1 %v9176_v7 }
 0xc3e   :  { %7277 = vmatprep.subr.bf16.mxu1 %v9177_v10  ;;  %7283 = vmatpush1.bf16.msra.mxu0 %v8631_v2 }
 0xc3f   :  { %v7655_v29 = vpop.eup %7654  ;;  %5253 = vmatprep.mubr.f32.mxu0 %v9176_v7  ;;  %7288 = vmatprep.subr.bf16.mxu0 %v8580_v58 }
 0xc40   :  { %v4826_v43 = vmul.f32 %v7655_v29, %v4825_v46 }
 0xc42   :  { %v8927_v9 = vadd.f32 %v4827_v31, %v4826_v43 }
 0xc44   :  { %4832 = vrot.lane.b32.xlu0 %v8927_v9, %s7759_s4  ;;  %6697 = vmatmul.mubr.msk.f32.vlgmr.msra.gmra.mrb[92].mxu1 %vm546_vm2, %v8927_v9 }
 0xc45   :  { %7279 = vmatpush3.bf16.msra.mxu1 %v8646_v51  ;;  %7005 = vmatprep.mubr.msk.f32.mxu1 %vm7758_vm1, %v9176_v7 }
 0xc46   :  { %7284 = vmatprep.subr.bf16.mxu1 %v9177_v10 }
 0xc48   :  { %7006 = vmatmul.mubr.msk.f32.vlgmr.msra.gmra.mrb[94].mxu1 %vm546_vm2, %v8927_v9 }
 0xc49   :  { %7286 = vmatpush3.bf16.msra.mxu1 %v8557_v18  ;;  %7012 = vmatprep.mubr.msk.f32.mxu1 %vm7758_vm1, %v9176_v7 }
 0xc4a   :  { %7291 = vmatprep.subr.bf16.mxu1 %v9177_v10 }
 0xcb6   :  { %v4833_v6 = vpop.permute.xlu0 %4832 }
 0xcb7   :  { %6694 = vst.msk [vmem:[%s9158_s9 + $0x28] sm:$0xff] %vm896_vm3, %v4833_v6 }
 0xd0f   :  { %v4912_v24 = vpop.f32.mrb[46].mxu0  ;;  %v4983_v38 = vpop.f32.mrb[90].mxu1 }
 0xd10   :  { %v7381_v57 = vadd.f32 %v8797_v41, %v4912_v24  ;;  %v4914_v14 = vpop.f32.mrb[47].mxu0  ;;  %v7000_v30 = vpop.f32.mrb[91].mxu1  ;;  %v4984_v35 = vadd.f32 %v4983_v38, %v8806_v13 }
 0xd11   :  { %v7383_v4 = vadd.f32 %v8800_v59, %v4914_v14 }
 0xd12   :  { %v6699_v5 = vmul.f32 -1.442695, %v7381_v57 }
 0xd13   :  { %v6700_v1 = vmul.f32 -1.442695, %v7383_v4 }
 0xd14   :  { %7656 = vpow2.f32 %v6699_v5 }
 0xd15   :  { %7658 = vpow2.f32 %v6700_v1 }
 0xd17   :  { %v5055_v12 = vpop.f32.mrb[92].mxu1 }
 0xd18   :  { %v5056_v39 = vadd.f32 %v5055_v12, %v8745_v34  ;;  %v5057_v55 = vpop.f32.mrb[93].mxu1 }
 0xd19   :  { %v5058_v19 = vadd.f32 %v5057_v55, %v8780_v45 }
 0xd1a   :  { %v5151_v33 = vadd.f32 %v5056_v39, %v8714_v3 }
 0xd1b   :  { %v5152_v49 = vadd.f32 %v5058_v19, %v8766_v52  ;;  %v5126_v56 = vpop.f32.mrb[94].mxu1 }
 0xd1c   :  { %v6701_v62 = vmul.f32 -1.442695, %v5151_v33  ;;  %v7007_v61 = vpop.f32.mrb[95].mxu1  ;;  %v5127_v43 = vadd.f32 %v5126_v56, %v8792_v47 }
 0xd1d   :  { %v6702_v26 = vmul.f32 -1.442695, %v5152_v49 }
 0xd1e   :  { %v7657_v63 = vpop.eup %7656  ;;  %7660 = vpow2.f32 %v6701_v62 }
 0xd1f   :  { %v5138_v60 = vadd.f32 1.0, %v7657_v63  ;;  %v7659_v27 = vpop.eup %7658 }
 0xd20   :  { %v5139_v23 = vadd.f32 1.0, %v7659_v27 }
 0xd21   :  { %7662 = vrcp.f32 %v5138_v60 }
 0xd22   :  { %7664 = vpow2.f32 %v6702_v26 }
 0xd28   :  { %v7661_v16 = vpop.eup %7660 }
 0xd29   :  { %v5159_v15 = vadd.f32 1.0, %v7661_v16 }
 0xd2b   :  { %v7663_v25 = vpop.eup %7662  ;;  %7666 = vrcp.f32 %v5159_v15 }
 0xd2c   :  { %v5144_v3 = vmul.f32 %v7663_v25, %v4984_v35  ;;  %7668 = vrcp.f32 %v5139_v23  ;;  %v7665_v46 = vpop.eup %7664 }
 0xd2d   :  { %v5160_v29 = vadd.f32 1.0, %v7665_v46 }
 0xd2e   :  { %v5145_v52 = vadd.f32 %v5144_v3, %v8707_v21 }
 0xd30   :  { %7670 = vtanh.f32 %v5145_v52 }
 0xd31   :  { %7672 = vrcp.f32 %v5160_v29 }
 0xd35   :  { %v7667_v31 = vpop.eup %7666 }
 0xd36   :  { %v7669_v6 = vpop.eup %7668  ;;  %v5165_v24 = vmul.f32 %v7667_v31, %v5127_v43 }
 0xd37   :  { %v5147_v14 = vsub.f32 1.0, %v7669_v6  ;;  %v5149_v5 = vmul.f32 %v7669_v6, %v8909_v53 }
 0xd38   :  { %v5166_v57 = vadd.f32 %v5165_v24, %v8769_v54 }
 0xd3a   :  { %v7671_v30 = vpop.eup %7670  ;;  %7674 = vtanh.f32 %v5166_v57 }
 0xd3b   :  { %v5148_v38 = vmul.f32 %v7671_v30, %v5147_v14  ;;  %v7673_v21 = vpop.eup %7672 }
 0xd3c   :  { %v5168_v54 = vsub.f32 1.0, %v7673_v21  ;;  %v5170_v12 = vmul.f32 %v7673_v21, %v8927_v9 }
 0xd3d   :  { %v8958_v4 = vadd.f32 %v5149_v5, %v5148_v38 }
 0xd3f   :  { %6705 = vmatmul.mubr.msk.f32.vlgmr.msra.gmra.mrb[48].mxu0 %vm546_vm2, %v8958_v4  ;;  %6703 = vst.msk [vmem:[%s9158_s9 + $0x18] sm:$0xff] %vm546_vm2, %v8958_v4  ;;  %7013 = vmatmul.mubr.msk.f32.vlgmr.msra.gmra.mrb[96].mxu1 %vm546_vm2, %v8958_v4 }
 0xd40   :  { %7290 = vmatpush1.bf16.msra.mxu0 %v8633_v44  ;;  %7293 = vmatpush3.bf16.msra.mxu1 %v8646_v51 }
 0xd41   :  { %5396 = vmatprep.mubr.f32.mxu0 %v9176_v7  ;;  %7019 = vmatprep.mubr.msk.f32.mxu1 %vm7758_vm1, %v9176_v7 }
 0xd42   :  { %7295 = vmatprep.subr.bf16.mxu0 %v8583_v40  ;;  %7298 = vmatprep.subr.bf16.mxu1 %v9177_v10 }
 0xd44   :  { %v7675_v53 = vpop.eup %7674 }
 0xd45   :  { %v5169_v1 = vmul.f32 %v7675_v53, %v5168_v54 }
 0xd47   :  { %v8977_v39 = vadd.f32 %v5170_v12, %v5169_v1 }
 0xd49   :  { %5175 = vrot.lane.b32.xlu1 %v8977_v39, %s7759_s4  ;;  %6707 = vmatmul.mubr.msk.f32.vlgmr.msra.gmra.mrb[72].mxu0 %vm546_vm2, %v8977_v39 }
 0xd4a   :  { %7020 = vmatmul.mubr.msk.f32.vlgmr.msra.gmra.mrb[98].mxu1 %vm546_vm2, %v8977_v39  ;;  %7297 = vmatpush1.bf16.msra.mxu0 %v8631_v2 }
 0xd4b   :  { %7300 = vmatpush3.bf16.msra.mxu1 %v8557_v18  ;;  %5594 = vmatprep.mubr.f32.mxu0 %v9176_v7 }
 0xd4c   :  { %7026 = vmatprep.mubr.msk.f32.mxu1 %vm7758_vm1, %v9176_v7  ;;  %7302 = vmatprep.subr.bf16.mxu0 %v8580_v58 }
 0xd4d   :  { %7305 = vmatprep.subr.bf16.mxu1 %v9177_v10 }
 0xdbb   :  { %v5176_v9 = vpop.permute.xlu1 %5175 }
 0xdbc   :  { %6704 = vst.msk [vmem:[%s9158_s9 + $0x20] sm:$0xff] %vm896_vm3, %v5176_v9 }
 0xe12   :  { %v5255_v55 = vpop.f32.mrb[48].mxu0  ;;  %v5326_v19 = vpop.f32.mrb[96].mxu1 }
 0xe13   :  { %v7385_v33 = vadd.f32 %v8797_v41, %v5255_v55  ;;  %v5257_v49 = vpop.f32.mrb[49].mxu0  ;;  %v7014_v56 = vpop.f32.mrb[97].mxu1  ;;  %v5327_v24 = vadd.f32 %v5326_v19, %v8806_v13 }
 0xe14   :  { %v7387_v61 = vadd.f32 %v8800_v59, %v5257_v49 }
 0xe15   :  { %v6709_v62 = vmul.f32 -1.442695, %v7385_v33 }
 0xe16   :  { %v6710_v63 = vmul.f32 -1.442695, %v7387_v61 }
 0xe17   :  { %7676 = vpow2.f32 %v6709_v62 }
 0xe18   :  { %7678 = vpow2.f32 %v6710_v63 }
 0xe1c   :  { %v5398_v60 = vpop.f32.mrb[72].mxu0 }
 0xe1d   :  { %v5399_v26 = vadd.f32 %v5398_v60, %v8745_v34  ;;  %v5469_v27 = vpop.f32.mrb[98].mxu1  ;;  %v5400_v16 = vpop.f32.mrb[73].mxu0 }
 0xe1e   :  { %v5401_v23 = vadd.f32 %v5400_v16, %v8780_v45  ;;  %v7021_v15 = vpop.f32.mrb[99].mxu1  ;;  %v5470_v21 = vadd.f32 %v5469_v27, %v8792_v47 }
 0xe1f   :  { %v5494_v35 = vadd.f32 %v5399_v26, %v8709_v50 }
 0xe20   :  { %v5495_v25 = vadd.f32 %v5401_v23, %v8761_v32 }
 0xe21   :  { %v7677_v3 = vpop.eup %7676  ;;  %v6711_v52 = vmul.f32 -1.442695, %v5494_v35 }
 0xe22   :  { %v5481_v46 = vadd.f32 1.0, %v7677_v3  ;;  %v6712_v29 = vmul.f32 -1.442695, %v5495_v25  ;;  %v7679_v43 = vpop.eup %7678 }
 0xe23   :  { %7680 = vpow2.f32 %v6711_v52  ;;  %v5482_v31 = vadd.f32 1.0, %v7679_v43 }
 0xe24   :  { %7682 = vrcp.f32 %v5481_v46 }
 0xe25   :  { %7684 = vpow2.f32 %v6712_v29 }
 0xe26   :  { %7686 = vrcp.f32 %v5482_v31 }
 0xe2d   :  { %v7681_v6 = vpop.eup %7680 }
 0xe2e   :  { %v7683_v57 = vpop.eup %7682  ;;  %v5502_v14 = vadd.f32 1.0, %v7681_v6 }
 0xe2f   :  { %v5487_v30 = vmul.f32 %v7683_v57, %v5327_v24  ;;  %v7685_v32 = vpop.eup %7684 }
 0xe30   :  { %7688 = vrcp.f32 %v5502_v14  ;;  %v5503_v38 = vadd.f32 1.0, %v7685_v32  ;;  %v7687_v5 = vpop.eup %7686 }
 0xe31   :  { %v5488_v50 = vadd.f32 %v5487_v30, %v8712_v17  ;;  %v5490_v1 = vsub.f32 1.0, %v7687_v5  ;;  %v5492_v19 = vmul.f32 %v7687_v5, %v8958_v4 }
 0xe33   :  { %7690 = vtanh.f32 %v5488_v50 }
 0xe34   :  { %7692 = vrcp.f32 %v5503_v38 }
 0xe3a   :  { %v7689_v54 = vpop.eup %7688 }
 0xe3b   :  { %v5508_v53 = vmul.f32 %v7689_v54, %v5470_v21 }
 0xe3d   :  { %v7691_v12 = vpop.eup %7690  ;;  %v5509_v9 = vadd.f32 %v5508_v53, %v8764_v37 }
 0xe3e   :  { %v5491_v55 = vmul.f32 %v7691_v12, %v5490_v1  ;;  %v7693_v17 = vpop.eup %7692 }
 0xe3f   :  { %7694 = vtanh.f32 %v5509_v9  ;;  %v5511_v37 = vsub.f32 1.0, %v7693_v17  ;;  %v5513_v56 = vmul.f32 %v7693_v17, %v8977_v39 }
 0xe40   :  { %v9007_v33 = vadd.f32 %v5492_v19, %v5491_v55 }
 0xe42   :  { %6713 = vst.msk [vmem:[%s9158_s9 + $0x20] sm:$0xff] %vm546_vm2, %v9007_v33  ;;  %6715 = vmatmul.mubr.msk.f32.vlgmr.msra.gmra.mrb[50].mxu0 %vm546_vm2, %v9007_v33  ;;  %7027 = vmatmul.mubr.msk.f32.vlgmr.msra.gmra.mrb[100].mxu1 %vm546_vm2, %v9007_v33 }
 0xe43   :  { %7304 = vmatpush1.bf16.msra.mxu0 %v8633_v44  ;;  %7307 = vmatpush3.bf16.msra.mxu1 %v8646_v51 }
 0xe44   :  { %5737 = vmatprep.mubr.f32.mxu0 %v9176_v7  ;;  %7033 = vmatprep.mubr.msk.f32.mxu1 %vm7758_vm1, %v9176_v7 }
 0xe45   :  { %7309 = vmatprep.subr.bf16.mxu0 %v8583_v40  ;;  %7312 = vmatprep.subr.bf16.mxu1 %v9177_v10 }
 0xe49   :  { %v7695_v4 = vpop.eup %7694 }
 0xe4a   :  { %v5512_v49 = vmul.f32 %v7695_v4, %v5511_v37 }
 0xe4c   :  { %v9026_v62 = vadd.f32 %v5513_v56, %v5512_v49 }
 0xe4e   :  { %5517 = vrot.lane.b32.xlu0 %v9026_v62, %s7759_s4  ;;  %6717 = vmatmul.mubr.msk.f32.vlgmr.msra.gmra.mrb[74].mxu0 %vm546_vm2, %v9026_v62 }
 0xe4f   :  { %7034 = vmatmul.mubr.msk.f32.vlgmr.msra.gmra.mrb[102].mxu1 %vm546_vm2, %v9026_v62  ;;  %7311 = vmatpush1.bf16.msra.mxu0 %v8631_v2 }
 0xe50   :  { %7314 = vmatpush3.bf16.msra.mxu1 %v8557_v18  ;;  %5935 = vmatprep.mubr.f32.mxu0 %v9176_v7 }
 0xe51   :  { %7040 = vmatprep.mubr.msk.f32.mxu1 %vm7758_vm1, %v9176_v7  ;;  %7316 = vmatprep.subr.bf16.mxu0 %v8580_v58 }
 0xe52   :  { %7319 = vmatprep.subr.bf16.mxu1 %v9177_v10 }
 0xec0   :  { %v5518_v39 = vpop.permute.xlu0 %5517 }
 0xec1   :  { %6714 = vst.msk [vmem:[%s9158_s9 + $0x18] sm:$0xff] %vm896_vm3, %v5518_v39 }
 0xf15   :  { %v5596_v61 = vpop.f32.mrb[50].mxu0  ;;  %v5667_v63 = vpop.f32.mrb[100].mxu1 }
 0xf16   :  { %v7389_v60 = vadd.f32 %v8797_v41, %v5596_v61  ;;  %v5598_v26 = vpop.f32.mrb[51].mxu0  ;;  %v7028_v27 = vpop.f32.mrb[101].mxu1  ;;  %v5668_v32 = vadd.f32 %v5667_v63, %v8806_v13 }
 0xf17   :  { %v7391_v23 = vadd.f32 %v8800_v59, %v5598_v26 }
 0xf18   :  { %v6719_v16 = vmul.f32 -1.442695, %v7389_v60 }
 0xf19   :  { %v6720_v15 = vmul.f32 -1.442695, %v7391_v23 }
 0xf1a   :  { %7696 = vpow2.f32 %v6719_v16 }
 0xf1b   :  { %7698 = vpow2.f32 %v6720_v15 }
 0xf21   :  { %v5739_v35 = vpop.f32.mrb[74].mxu0 }
 0xf22   :  { %v5740_v25 = vadd.f32 %v5739_v35, %v8745_v34  ;;  %v5810_v3 = vpop.f32.mrb[102].mxu1  ;;  %v5741_v52 = vpop.f32.mrb[75].mxu0 }
 0xf23   :  { %v5742_v46 = vadd.f32 %v5741_v52, %v8780_v45  ;;  %v7035_v29 = vpop.f32.mrb[103].mxu1  ;;  %v5811_v55 = vadd.f32 %v5810_v3, %v8792_v47 }
 0xf24   :  { %v7697_v43 = vpop.eup %7696  ;;  %v5835_v31 = vadd.f32 %v5740_v25, %v8704_v22 }
 0xf25   :  { %v5822_v6 = vadd.f32 1.0, %v7697_v43  ;;  %v5836_v24 = vadd.f32 %v5742_v46, %v8756_v20  ;;  %v7699_v14 = vpop.eup %7698 }
 0xf26   :  { %v6721_v57 = vmul.f32 -1.442695, %v5835_v31  ;;  %v5823_v50 = vadd.f32 1.0, %v7699_v14 }
 0xf27   :  { %7700 = vrcp.f32 %v5822_v6  ;;  %v6722_v30 = vmul.f32 -1.442695, %v5836_v24 }
 0xf28   :  { %7702 = vpow2.f32 %v6721_v57 }
 0xf29   :  { %7704 = vpow2.f32 %v6722_v30 }
 0xf2a   :  { %7706 = vrcp.f32 %v5823_v50 }
 0xf31   :  { %v7701_v38 = vpop.eup %7700 }
 0xf32   :  { %v5828_v5 = vmul.f32 %v7701_v38, %v5668_v32  ;;  %v7703_v21 = vpop.eup %7702 }
 0xf33   :  { %v5843_v53 = vadd.f32 1.0, %v7703_v21  ;;  %v7705_v22 = vpop.eup %7704 }
 0xf34   :  { %v5829_v54 = vadd.f32 %v5828_v5, %v8717_v8  ;;  %v7707_v20 = vpop.eup %7706  ;;  %v5844_v1 = vadd.f32 1.0, %v7705_v22 }
 0xf35   :  { %v5831_v12 = vsub.f32 1.0, %v7707_v20  ;;  %v5833_v37 = vmul.f32 %v7707_v20, %v9007_v33 }
 0xf36   :  { %7708 = vtanh.f32 %v5829_v54 }
 0xf37   :  { %7710 = vrcp.f32 %v5843_v53 }
 0xf38   :  { %7712 = vrcp.f32 %v5844_v1 }
 0xf40   :  { %v7709_v9 = vpop.eup %7708 }
 0xf41   :  { %v7711_v19 = vpop.eup %7710  ;;  %v5832_v17 = vmul.f32 %v7709_v9, %v5831_v12 }
 0xf42   :  { %v5849_v4 = vmul.f32 %v7711_v19, %v5811_v55 }
 0xf43   :  { %v9055_v49 = vadd.f32 %v5833_v37, %v5832_v17 }
 0xf44   :  { %v5850_v8 = vadd.f32 %v5849_v4, %v8759_v42  ;;  %v7713_v42 = vpop.eup %7712 }
 0xf45   :  { %6723 = vst.msk [vmem:[%s9158_s9 + $0x28] sm:$0xff] %vm546_vm2, %v9055_v49  ;;  %6725 = vmatmul.mubr.msk.f32.vlgmr.msra.gmra.mrb[52].mxu0 %vm546_vm2, %v9055_v49  ;;  %7041 = vmatmul.mubr.msk.f32.vlgmr.msra.gmra.mrb[104].mxu1 %vm546_vm2, %v9055_v49  ;;  %v5852_v33 = vsub.f32 1.0, %v7713_v42  ;;  %v5854_v61 = vmul.f32 %v7713_v42, %v9026_v62 }
 0xf46   :  { %7714 = vtanh.f32 %v5850_v8  ;;  %7318 = vmatpush1.bf16.msra.mxu0 %v8633_v44  ;;  %7321 = vmatpush3.bf16.msra.mxu1 %v8646_v51 }
 0xf47   :  { %6078 = vmatprep.mubr.f32.mxu0 %v9176_v7  ;;  %7047 = vmatprep.mubr.msk.f32.mxu1 %vm7758_vm1, %v9176_v7 }
 0xf48   :  { %7323 = vmatprep.subr.bf16.mxu0 %v8583_v40  ;;  %7326 = vmatprep.subr.bf16.mxu1 %v9177_v10 }
 0xf50   :  { %v7715_v56 = vpop.eup %7714 }
 0xf51   :  { %v5853_v39 = vmul.f32 %v7715_v56, %v5852_v33 }
 0xf53   :  { %v9075_v63 = vadd.f32 %v5854_v61, %v5853_v39 }
 0xf55   :  { %5858 = vrot.lane.b32.xlu1 %v9075_v63, %s7759_s4  ;;  %6727 = vmatmul.mubr.msk.f32.vlgmr.msra.gmra.mrb[76].mxu0 %vm546_vm2, %v9075_v63 }
 0xf56   :  { %7048 = vmatmul.mubr.msk.f32.vlgmr.msra.gmra.mrb[106].mxu1 %vm546_vm2, %v9075_v63  ;;  %7325 = vmatpush1.bf16.msra.mxu0 %v8631_v2 }
 0xf57   :  { %7328 = vmatpush3.bf16.msra.mxu1 %v8557_v18  ;;  %6276 = vmatprep.mubr.f32.mxu0 %v9176_v7 }
 0xf58   :  { %7054 = vmatprep.mubr.msk.f32.mxu1 %vm7758_vm1, %v9176_v7  ;;  %7330 = vmatprep.subr.bf16.mxu0 %v8580_v58 }
 0xf59   :  { %7333 = vmatprep.subr.bf16.mxu1 %v9177_v10 }
 0xfc7   :  { %v5859_v40 = vpop.permute.xlu1 %5858 }
 0xfc8   :  { %6724 = vst.msk [vmem:[%s9158_s9 + $0x10] sm:$0xff] %vm896_vm3, %v5859_v40 }
0x1018   :  { %v5937_v62 = vpop.f32.mrb[52].mxu0  ;;  %v6008_v60 = vpop.f32.mrb[104].mxu1 }
0x1019   :  { %v7393_v2 = vadd.f32 %v8797_v41, %v5937_v62  ;;  %v5939_v18 = vpop.f32.mrb[53].mxu0  ;;  %v7042_v26 = vpop.f32.mrb[105].mxu1  ;;  %v6009_v14 = vadd.f32 %v6008_v60, %v8806_v13 }
0x101a   :  { %v7395_v16 = vadd.f32 %v8800_v59, %v5939_v18 }
0x101b   :  { %v6729_v27 = vmul.f32 -1.442695, %v7393_v2 }
0x101c   :  { %v6730_v23 = vmul.f32 -1.442695, %v7395_v16 }
0x101d   :  { %7716 = vpow2.f32 %v6729_v27 }
0x101e   :  { %7718 = vpow2.f32 %v6730_v23  ;;  %v9188_v23 = vld [vmem:[#allocation4_spill] sm:$0xff] }
0x1027   :  { %v7717_v58 = vpop.eup %7716 }
0x1028   :  { %v6163_v10 = vadd.f32 1.0, %v7717_v58  ;;  %v6080_v15 = vpop.f32.mrb[76].mxu0  ;;  %v7719_v6 = vpop.eup %7718 }
0x1029   :  { %v6081_v35 = vadd.f32 %v6080_v15, %v8745_v34  ;;  %v6151_v25 = vpop.f32.mrb[106].mxu1  ;;  %v6082_v3 = vpop.f32.mrb[77].mxu0  ;;  %v6164_v24 = vadd.f32 1.0, %v7719_v6 }
0x102a   :  { %7720 = vrcp.f32 %v6163_v10  ;;  %v6083_v52 = vadd.f32 %v6082_v3, %v8780_v45  ;;  %v7049_v46 = vpop.f32.mrb[107].mxu1  ;;  %v6152_v1 = vadd.f32 %v6151_v25, %v8792_v47 }
0x102b   :  { %v6176_v29 = vadd.f32 %v6081_v35, %v8699_v36 }
0x102c   :  { %v6177_v43 = vadd.f32 %v6083_v52, %v8750_v28 }
0x102d   :  { %v6731_v31 = vmul.f32 -1.442695, %v6176_v29 }
0x102e   :  { %v6732_v57 = vmul.f32 -1.442695, %v6177_v43 }
0x102f   :  { %7722 = vpow2.f32 %v6731_v31 }
0x1030   :  { %7724 = vrcp.f32 %v6164_v24 }
0x1031   :  { %7726 = vpow2.f32 %v6732_v57 }
0x1034   :  { %v7721_v30 = vpop.eup %7720 }
0x1035   :  { %v6169_v50 = vmul.f32 %v7721_v30, %v6009_v14 }
0x1037   :  { %v6170_v32 = vadd.f32 %v6169_v50, %v8722_v11 }
0x1039   :  { %v7723_v38 = vpop.eup %7722  ;;  %7728 = vtanh.f32 %v6170_v32  ;;  %v9190_v32 = vld [vmem:[#allocation5_spill] sm:$0xff] }
0x103a   :  { %v6184_v5 = vadd.f32 1.0, %v7723_v38  ;;  %v7725_v36 = vpop.eup %7724 }
0x103b   :  { %v7727_v21 = vpop.eup %7726  ;;  %v6172_v28 = vsub.f32 1.0, %v7725_v36  ;;  %v6174_v20 = vmul.f32 %v7725_v36, %v9055_v49 }
0x103c   :  { %7730 = vrcp.f32 %v6184_v5  ;;  %v6185_v53 = vadd.f32 1.0, %v7727_v21 }
0x103e   :  { %7732 = vrcp.f32 %v6185_v53 }
0x1043   :  { %v7729_v54 = vpop.eup %7728 }
0x1044   :  { %v6173_v22 = vmul.f32 %v7729_v54, %v6172_v28 }
0x1046   :  { %v7731_v12 = vpop.eup %7730  ;;  %v9104_v9 = vadd.f32 %v6174_v20, %v6173_v22 }
0x1047   :  { %v6190_v55 = vmul.f32 %v7731_v12, %v6152_v1 }
0x1048   :  { %6733 = vst.msk [vmem:[%s9158_s9 + $0x30] sm:$0xff] %vm546_vm2, %v9104_v9  ;;  %6735 = vmatmul.mubr.msk.f32.vlgmr.msra.gmra.mrb[54].mxu0 %vm546_vm2, %v9104_v9  ;;  %7055 = vmatmul.mubr.msk.f32.vlgmr.msra.gmra.mrb[108].mxu1 %vm546_vm2, %v9104_v9  ;;  %v7733_v19 = vpop.eup %7732 }
0x1049   :  { %v6191_v11 = vadd.f32 %v6190_v55, %v8754_v48  ;;  %7332 = vmatpush1.bf16.msra.mxu0 %v8633_v44  ;;  %7335 = vmatpush3.bf16.msra.mxu1 %v8646_v51  ;;  %v6193_v17 = vsub.f32 1.0, %v7733_v19  ;;  %v6195_v49 = vmul.f32 %v7733_v19, %v9075_v63 }
0x104a   :  { %6419 = vmatprep.mubr.f32.mxu0 %v9176_v7  ;;  %7061 = vmatprep.mubr.msk.f32.mxu1 %vm7758_vm1, %v9176_v7 }
0x104b   :  { %7734 = vtanh.f32 %v6191_v11 }
0x1055   :  { %v7735_v37 = vpop.eup %7734 }
0x1056   :  { %v6194_v4 = vmul.f32 %v7735_v37, %v6193_v17 }
0x1058   :  { %v6196_v8 = vadd.f32 %v6195_v49, %v6194_v4 }
0x105a   :  { %6199 = vrot.lane.b32.xlu0 %v6196_v8, %s7759_s4  ;;  %6737 = vmatmul.mubr.msk.f32.vlgmr.msra.gmra.mrb[78].mxu0 %vm546_vm2, %v6196_v8 }
0x105b   :  { %7062 = vmatmul.mubr.msk.f32.vlgmr.msra.gmra.mrb[110].mxu1 %vm546_vm2, %v6196_v8 }
0x10cc   :  { %v6200_v44 = vpop.permute.xlu0 %6199 }
0x10cd   :  { %6734 = vst.msk [vmem:[%s9158_s9 + $0x8] sm:$0xff] %vm896_vm3, %v6200_v44 }
0x111b   :  { %v6278_v7 = vpop.f32.mrb[54].mxu0  ;;  %v6349_v51 = vpop.f32.mrb[108].mxu1 }
0x111c   :  { %v7397_v48 = vadd.f32 %v8797_v41, %v6278_v7  ;;  %v6280_v42 = vpop.f32.mrb[55].mxu0  ;;  %v7056_v33 = vpop.f32.mrb[109].mxu1  ;;  %v6350_v15 = vadd.f32 %v6349_v51, %v8806_v13 }
0x111d   :  { %v7399_v39 = vadd.f32 %v8800_v59, %v6280_v42 }
0x111e   :  { %v6739_v56 = vmul.f32 -1.442695, %v7397_v48 }
0x111f   :  { %v6740_v61 = vmul.f32 -1.442695, %v7399_v39 }
0x1120   :  { %7736 = vpow2.f32 %v6739_v56 }
0x1121   :  { %7738 = vpow2.f32 %v6740_v61 }
0x112a   :  { %v7737_v63 = vpop.eup %7736 }
0x112b   :  { %v6504_v40 = vadd.f32 1.0, %v7737_v63  ;;  %v7739_v16 = vpop.eup %7738 }
0x112c   :  { %v6505_v10 = vadd.f32 1.0, %v7739_v16 }
0x112d   :  { %7740 = vrcp.f32 %v6504_v40  ;;  %v6421_v62 = vpop.f32.mrb[78].mxu0 }
0x112e   :  { %v6422_v60 = vadd.f32 %v6421_v62, %v8745_v34  ;;  %v6492_v2 = vpop.f32.mrb[110].mxu1  ;;  %v6423_v18 = vpop.f32.mrb[79].mxu0  ;;  %v9189_v34 = vld [vmem:[#allocation6_spill] sm:$0xff] }
0x112f   :  { %v6424_v26 = vadd.f32 %v6423_v18, %v8780_v45  ;;  %v7063_v27 = vpop.f32.mrb[111].mxu1  ;;  %v6493_v14 = vadd.f32 %v6492_v2, %v8792_v47 }
0x1130   :  { %v6517_v41 = vadd.f32 %v6422_v60, %v8690_v0 }
0x1131   :  { %v6518_v58 = vadd.f32 %v6424_v26, %v9188_v23 }
0x1132   :  { %v6741_v59 = vmul.f32 -1.442695, %v6517_v41 }
0x1133   :  { %v6742_v25 = vmul.f32 -1.442695, %v6518_v58 }
0x1134   :  { %7742 = vpow2.f32 %v6741_v59 }
0x1135   :  { %7744 = vrcp.f32 %v6505_v10 }
0x1136   :  { %7746 = vpow2.f32 %v6742_v25 }
0x1137   :  { %v7741_v35 = vpop.eup %7740 }
0x1138   :  { %v6510_v3 = vmul.f32 %v7741_v35, %v6350_v15 }
0x113a   :  { %v6511_v52 = vadd.f32 %v6510_v3, %v9189_v34 }
0x113c   :  { %7748 = vtanh.f32 %v6511_v52 }
0x113e   :  { %v7743_v45 = vpop.eup %7742 }
0x113f   :  { %v6525_v46 = vadd.f32 1.0, %v7743_v45  ;;  %v7745_v0 = vpop.eup %7744 }
0x1140   :  { %v7747_v29 = vpop.eup %7746  ;;  %v6513_v43 = vsub.f32 1.0, %v7745_v0  ;;  %v6515_v24 = vmul.f32 %v7745_v0, %v9104_v9 }
0x1141   :  { %7750 = vrcp.f32 %v6525_v46  ;;  %v6526_v57 = vadd.f32 1.0, %v7747_v29 }
0x1143   :  { %7752 = vrcp.f32 %v6526_v57 }
0x1146   :  { %v7749_v31 = vpop.eup %7748 }
0x1147   :  { %v6514_v6 = vmul.f32 %v7749_v31, %v6513_v43 }
0x1149   :  { %v6516_v13 = vadd.f32 %v6515_v24, %v6514_v6 }
0x114b   :  { %v7751_v30 = vpop.eup %7750  ;;  %6743 = vst.msk [vmem:[%s9158_s9 + $0x38] sm:$0xff] %vm546_vm2, %v6516_v13 }
0x114c   :  { %v6531_v50 = vmul.f32 %v7751_v30, %v6493_v14 }
0x114d   :  { %v7753_v5 = vpop.eup %7752 }
0x114e   :  { %v6532_v38 = vadd.f32 %v6531_v50, %v9190_v32  ;;  %v6534_v36 = vsub.f32 1.0, %v7753_v5  ;;  %v6536_v54 = vmul.f32 %v7753_v5, %v6196_v8 }
0x1150   :  { %7754 = vtanh.f32 %v6532_v38 }
0x115a   :  { %v7755_v21 = vpop.eup %7754 }
0x115b   :  { %v6535_v28 = vmul.f32 %v7755_v21, %v6534_v36 }
0x115d   :  { %v6537_v53 = vadd.f32 %v6536_v54, %v6535_v28 }
0x115f   :  { %6540 = vrot.lane.b32.xlu1 %v6537_v53, %s7759_s4 }
0x11d1   :  { %v6541_v47 = vpop.permute.xlu1 %6540 }
0x11d2   :  { %6543 = vst.msk [vmem:[%s9158_s9] sm:$0xff] %vm896_vm3, %v6541_v47 }

</bundles_post_ra>
